<compile_context>
chip_gen: v7x
topology: tpu7x:2x2x1
jax: 0.10.0
libtpu: 0.0.40
codegen_flags: <defaults>
</compile_context>

<pallas_src>
import functools

import jax
import jax.numpy as jnp
from jax.experimental import pallas as pl
from jax.experimental.pallas import tpu as pltpu


# ----------------------------------------------------------------------------
# Fused BasicBlock kernel
# ----------------------------------------------------------------------------
def _make_basic_block_kernel(H, W, Cin, Cp, Ho, Wo, stride, has_shortcut_conv):
    """Fused BasicBlock for one image.  Shapes are static Python ints."""
    M = Ho * Wo

    def tap(xp_ref, dy, dx, s):
        # Output (i, j) of a 3x3/pad=1/stride=s conv reads padded coords
        # (s*i + dy, s*j + dx).
        if s == 1:
            return xp_ref[dy:dy + Ho, dx:dx + Wo, :]
        # TODO(synk): stride>1 path uses strided pl.ds loads; only stride=1 is
        #             exercised by the demo configs below.
        return xp_ref[pl.ds(dy, Ho, s), pl.ds(dx, Wo, s), :]

    def conv3x3(xp_ref, w_ref, s, cin):
        # im2col tile (M, 9*cin) from 9 shifted loads of the padded scratch,
        # then a single MXU matmul against the (9*cin, Cp) bf16 weight block.
        cols = []
        for dy in range(3):
            for dx in range(3):
                cols.append(tap(xp_ref, dy, dx, s).reshape(M, cin))
        patches = jnp.concatenate(cols, axis=1)                 # (M, 9*cin) f32
        return jnp.dot(patches.astype(jnp.bfloat16), w_ref[...],
                       preferred_element_type=jnp.float32)      # (M, Cp) f32

    def kernel(*refs):
        if has_shortcut_conv:
            (x_ref, w1_ref, b1_ref, w2_ref, b2_ref,
             wsc_ref, bsc_ref, o_ref, xp1_ref, xp2_ref) = refs
        else:
            (x_ref, w1_ref, b1_ref, w2_ref, b2_ref,
             o_ref, xp1_ref, xp2_ref) = refs

        # ---- conv1 (bn1 scale folded into w1) + bias + relu ----
        xp1_ref[...] = jnp.zeros(xp1_ref.shape, xp1_ref.dtype)   # halo = 0
        xp1_ref[1:H + 1, 1:W + 1, :] = x_ref[0]                  # interior
        acc1 = conv3x3(xp1_ref, w1_ref, stride, Cin)
        h1 = jnp.maximum(acc1 + b1_ref[...], 0.0)                # (M, Cp) f32

        # ---- conv2 (bn2 scale folded into w2) + bias; h1 never leaves VMEM --
        xp2_ref[...] = jnp.zeros(xp2_ref.shape, xp2_ref.dtype)
        xp2_ref[1:Ho + 1, 1:Wo + 1, :] = h1.reshape(Ho, Wo, Cp)
        out = conv3x3(xp2_ref, w2_ref, 1, Cp) + b2_ref[...]

        # ---- shortcut (fused): 1x1 conv + bn, or identity ----
        if has_shortcut_conv:
            if stride == 1:
                xs = x_ref[0]
            else:
                xs = x_ref[0, pl.ds(0, Ho, stride), pl.ds(0, Wo, stride), :]
            sc = jnp.dot(xs.reshape(M, Cin).astype(jnp.bfloat16), wsc_ref[...],
                         preferred_element_type=jnp.float32) + bsc_ref[...]
        else:
            sc = x_ref[0].reshape(M, Cp)                         # identity, f32

        out = jnp.maximum(out + sc, 0.0)
        o_ref[...] = out.reshape(1, Ho, Wo, Cp).astype(o_ref.dtype)

    return kernel


def basic_block_pallas(x_nhwc, w1, b1, w2, b2, wsc, bsc, stride):
    N, H, W, Cin = x_nhwc.shape
    Cp = w1.shape[-1]
    Ho = (H - 1) // stride + 1
    Wo = (W - 1) // stride + 1
    has_sc = wsc is not None

    kernel = _make_basic_block_kernel(H, W, Cin, Cp, Ho, Wo, stride, has_sc)

    def _resident(n):   # constant block index -> stays resident across grid
        return (0, 0)

    in_specs = [
        pl.BlockSpec((1, H, W, Cin), lambda n: (n, 0, 0, 0)),
        pl.BlockSpec((9 * Cin, Cp), _resident),   # w1 (bf16, bn1-scale folded)
        pl.BlockSpec((1, Cp), _resident),         # bn1 bias
        pl.BlockSpec((9 * Cp, Cp), _resident),    # w2 (bf16, bn2-scale folded)
        pl.BlockSpec((1, Cp), _resident),         # bn2 bias
    ]
    args = [x_nhwc, w1, b1, w2, b2]
    if has_sc:
        in_specs += [pl.BlockSpec((Cin, Cp), _resident),   # shortcut w (bf16)
                     pl.BlockSpec((1, Cp), _resident)]     # shortcut bias
        args += [wsc, bsc]

    return pl.pallas_call(
        kernel,
        out_shape=jax.ShapeDtypeStruct((N, Ho, Wo, Cp), x_nhwc.dtype),
        grid=(N,),
        in_specs=in_specs,
        out_specs=pl.BlockSpec((1, Ho, Wo, Cp), lambda n: (n, 0, 0, 0)),
        scratch_shapes=[
            pltpu.VMEM((H + 2, W + 2, Cin), jnp.float32),    # conv1 halo image
            pltpu.VMEM((Ho + 2, Wo + 2, Cp), jnp.float32),   # conv2 halo image
        ],
        compiler_params=pltpu.CompilerParams(
            dimension_semantics=("parallel",),
            vmem_limit_bytes=32 * 1024 * 1024,
        ),
    )(*args)


# ----------------------------------------------------------------------------
# BasicBlock parameters / public forward
# ----------------------------------------------------------------------------
def _fold_bn(gamma, beta, mean, var, eps=1e-5):
    scale = gamma / jnp.sqrt(var + eps)
    bias = beta - mean * scale
    return scale, bias


def init_basic_block_params(key, in_planes, planes, stride):
    ks = jax.random.split(key, 6)
    mask = jnp.ones((3, 3, in_planes, planes), jnp.float32)  # MaskedConv2d mask

    def bn_params(k, c):
        k1, k2, k3, k4 = jax.random.split(k, 4)
        gamma = 1.0 + 0.1 * jax.random.normal(k1, (c,), jnp.float32)
        beta = 0.1 * jax.random.normal(k2, (c,), jnp.float32)
        mean = 0.1 * jax.random.normal(k3, (c,), jnp.float32)
        var = 1.0 + 0.1 * jnp.abs(jax.random.normal(k4, (c,), jnp.float32))
        return (gamma, beta, mean, var)

    p = {}
    p["w1"] = 0.2 * jax.random.normal(ks[0], (3, 3, in_planes, planes), jnp.float32) * mask
    p["bn1"] = bn_params(ks[1], planes)
    p["w2"] = 0.2 * jax.random.normal(ks[2], (3, 3, planes, planes), jnp.float32)
    p["bn2"] = bn_params(ks[3], planes)
    if stride != 1 or in_planes != planes:
        p["w_sc"] = 0.2 * jax.random.normal(ks[4], (in_planes, planes), jnp.float32)
        p["bn_sc"] = bn_params(ks[5], planes)
    else:
        p["w_sc"] = None
        p["bn_sc"] = None
    return p


@functools.partial(jax.jit, static_argnums=(2,))
def basic_block_forward(x_nchw, params, stride):
    x = jnp.transpose(x_nchw, (0, 2, 3, 1))  # NCHW -> NHWC
    # TODO(synk): keep the surrounding model in NHWC to drop these transposes.
    Cin = x.shape[-1]
    Cp = params["w1"].shape[-1]

    s1, b1 = _fold_bn(*params["bn1"])
    s2, b2 = _fold_bn(*params["bn2"])
    # BN scale folded into the weights (per output channel); rows ordered
    # (dy, dx, cin) to match the in-kernel im2col order; pre-cast to bf16.
    w1 = (params["w1"] * s1).reshape(9 * Cin, Cp).astype(jnp.bfloat16)
    w2 = (params["w2"] * s2).reshape(9 * Cp, Cp).astype(jnp.bfloat16)

    if params["w_sc"] is not None:
        ssc, bsc = _fold_bn(*params["bn_sc"])
        wsc = (params["w_sc"] * ssc).astype(jnp.bfloat16)
        bsc = bsc.reshape(1, Cp)
    else:
        wsc = bsc = None

    out = basic_block_pallas(
        x, w1, b1.reshape(1, Cp), w2, b2.reshape(1, Cp), wsc, bsc, stride)
    return jnp.transpose(out, (0, 3, 1, 2))  # NHWC -> NCHW


# ----------------------------------------------------------------------------
# Pure-JAX reference (for sanity check)
# ----------------------------------------------------------------------------
def _conv_ref(x_nhwc, w_hwio, stride, pad):
    return jax.lax.conv_general_dilated(
        x_nhwc, w_hwio, window_strides=(stride, stride),
        padding=((pad, pad), (pad, pad)),
        dimension_numbers=("NHWC", "HWIO", "NHWC"),
        precision=jax.lax.Precision.HIGHEST)


def basic_block_reference(x_nchw, params, stride):
    x = jnp.transpose(x_nchw, (0, 2, 3, 1))

    def bn(y, bp):
        s, b = _fold_bn(*bp)
        return y * s + b

    out = jax.nn.relu(bn(_conv_ref(x, params["w1"], stride, 1), params["bn1"]))
    out = bn(_conv_ref(out, params["w2"], 1, 1), params["bn2"])
    if params["w_sc"] is not None:
        w_sc = params["w_sc"].reshape(1, 1, *params["w_sc"].shape)
        sc = bn(_conv_ref(x, w_sc, stride, 0), params["bn_sc"])
    else:
        sc = x
    out = jax.nn.relu(out + sc)
    return jnp.transpose(out, (0, 3, 1, 2))


def _close(a, b):
    # bf16 MXU inputs / f32 accumulation vs HIGHEST-precision f32 reference.
    return bool(jnp.all(jnp.abs(a - b) <= 0.1 + 0.05 * jnp.abs(b)))


# ----------------------------------------------------------------------------
if __name__ == "__main__":
    key = jax.random.PRNGKey(0)
    k_x, k_p1, k_p2 = jax.random.split(key, 3)

    # Config 1: in_planes != planes -> fused 1x1-conv + BN shortcut path.
    N, in_planes, H, W = 2, 4, 16, 16
    planes, stride = 8, 1
    x1 = jax.random.normal(k_x, (N, in_planes, H, W), jnp.float32)
    params1 = init_basic_block_params(k_p1, in_planes, planes, stride)

    out1 = jax.block_until_ready(basic_block_forward(x1, params1, stride))
    ref1 = basic_block_reference(x1, params1, stride)
    assert out1.shape == (N, planes, H // stride, W // stride)
    assert _close(out1, ref1)

    # Config 2: in_planes == planes, stride 1 -> identity shortcut path.
    x2 = jax.random.normal(k_x, (N, planes, H, W), jnp.float32)
    params2 = init_basic_block_params(k_p2, planes, planes, 1)

    out2 = jax.block_until_ready(basic_block_forward(x2, params2, 1))
    ref2 = basic_block_reference(x2, params2, 1)
    assert out2.shape == (N, planes, H, W)
    assert _close(out2, ref2)

    print("KERNEL_OK")
</pallas_src>

<mosaic_0001>
module attributes {stable_mosaic.version = 11 : i64} {
  func.func @kernel(%arg0: i32, %arg1: memref<1x16x16x4xf32, #tpu.memory_space<vmem>>, %arg2: memref<36x8xbf16, #tpu.memory_space<vmem>>, %arg3: memref<1x8xf32, #tpu.memory_space<vmem>>, %arg4: memref<72x8xbf16, #tpu.memory_space<vmem>>, %arg5: memref<1x8xf32, #tpu.memory_space<vmem>>, %arg6: memref<4x8xbf16, #tpu.memory_space<vmem>>, %arg7: memref<1x8xf32, #tpu.memory_space<vmem>>, %arg8: memref<1x16x16x8xf32, #tpu.memory_space<vmem>>, %arg9: memref<18x18x4xf32, #tpu.memory_space<vmem>>, %arg10: memref<18x18x8xf32, #tpu.memory_space<vmem>>) attributes {dimension_semantics = [#tpu.dimension_semantics<parallel>], iteration_bounds = array<i64: 2>, scalar_prefetch = 0 : i64, scratch_operands = 2 : i64, tpu.core_type = #tpu.core_type<tc>, window_params = [{transform_indices = @transform_0, window_bounds = array<i64: 1, 16, 16, 4>}, {pipeline_mode = #tpu.pipeline_mode<synchronous>, transform_indices = @transform_1, window_bounds = array<i64: 36, 8>}, {pipeline_mode = #tpu.pipeline_mode<synchronous>, transform_indices = @transform_2, window_bounds = array<i64: 1, 8>}, {pipeline_mode = #tpu.pipeline_mode<synchronous>, transform_indices = @transform_3, window_bounds = array<i64: 72, 8>}, {pipeline_mode = #tpu.pipeline_mode<synchronous>, transform_indices = @transform_4, window_bounds = array<i64: 1, 8>}, {pipeline_mode = #tpu.pipeline_mode<synchronous>, transform_indices = @transform_5, window_bounds = array<i64: 4, 8>}, {pipeline_mode = #tpu.pipeline_mode<synchronous>, transform_indices = @transform_6, window_bounds = array<i64: 1, 8>}, {transform_indices = @transform_7, window_bounds = array<i64: 1, 16, 16, 8>}]} {
    %cst = arith.constant 0.000000e+00 : f32
    %0 = vector.broadcast %cst : f32 to vector<18x18x4xf32>
    %c0 = arith.constant 0 : index
    %c0_0 = arith.constant 0 : index
    %c0_1 = arith.constant 0 : index
    %1 = vector.load %arg9[%c0, %c0_0, %c0_1] : memref<18x18x4xf32, #tpu.memory_space<vmem>>, vector<18x18x4xf32>
    tpu.vector_store %arg9[%c0, %c0_0, %c0_1], %0 {strides = array<i32>} : memref<18x18x4xf32, #tpu.memory_space<vmem>>, vector<18x18x4xf32>,
    %c0_2 = arith.constant 0 : index
    %c0_3 = arith.constant 0 : index
    %c0_4 = arith.constant 0 : index
    %c0_5 = arith.constant 0 : index
    %2 = vector.load %arg1[%c0_2, %c0_3, %c0_4, %c0_5] : memref<1x16x16x4xf32, #tpu.memory_space<vmem>>, vector<1x16x16x4xf32>
    %3 = vector.shape_cast %2 : vector<1x16x16x4xf32> to vector<16x16x4xf32>
    %c1 = arith.constant 1 : index
    %c1_6 = arith.constant 1 : index
    %c0_7 = arith.constant 0 : index
    %4 = vector.load %arg9[%c1, %c1_6, %c0_7] : memref<18x18x4xf32, #tpu.memory_space<vmem>>, vector<16x16x4xf32>
    tpu.vector_store %arg9[%c1, %c1_6, %c0_7], %3 {strides = array<i32>} : memref<18x18x4xf32, #tpu.memory_space<vmem>>, vector<16x16x4xf32>,
    %c0_8 = arith.constant 0 : index
    %c0_9 = arith.constant 0 : index
    %c0_10 = arith.constant 0 : index
    %5 = vector.load %arg9[%c0_8, %c0_9, %c0_10] : memref<18x18x4xf32, #tpu.memory_space<vmem>>, vector<16x16x4xf32>
    %6 = vector.shape_cast %5 : vector<16x16x4xf32> to vector<256x4xf32>
    %c0_11 = arith.constant 0 : index
    %c1_12 = arith.constant 1 : index
    %c0_13 = arith.constant 0 : index
    %7 = vector.load %arg9[%c0_11, %c1_12, %c0_13] : memref<18x18x4xf32, #tpu.memory_space<vmem>>, vector<16x16x4xf32>
    %8 = vector.shape_cast %7 : vector<16x16x4xf32> to vector<256x4xf32>
    %c0_14 = arith.constant 0 : index
    %c2 = arith.constant 2 : index
    %c0_15 = arith.constant 0 : index
    %9 = vector.load %arg9[%c0_14, %c2, %c0_15] : memref<18x18x4xf32, #tpu.memory_space<vmem>>, vector<16x16x4xf32>
    %10 = vector.shape_cast %9 : vector<16x16x4xf32> to vector<256x4xf32>
    %c1_16 = arith.constant 1 : index
    %c0_17 = arith.constant 0 : index
    %c0_18 = arith.constant 0 : index
    %11 = vector.load %arg9[%c1_16, %c0_17, %c0_18] : memref<18x18x4xf32, #tpu.memory_space<vmem>>, vector<16x16x4xf32>
    %12 = vector.shape_cast %11 : vector<16x16x4xf32> to vector<256x4xf32>
    %c1_19 = arith.constant 1 : index
    %c1_20 = arith.constant 1 : index
    %c0_21 = arith.constant 0 : index
    %13 = vector.load %arg9[%c1_19, %c1_20, %c0_21] : memref<18x18x4xf32, #tpu.memory_space<vmem>>, vector<16x16x4xf32>
    %14 = vector.shape_cast %13 : vector<16x16x4xf32> to vector<256x4xf32>
    %c1_22 = arith.constant 1 : index
    %c2_23 = arith.constant 2 : index
    %c0_24 = arith.constant 0 : index
    %15 = vector.load %arg9[%c1_22, %c2_23, %c0_24] : memref<18x18x4xf32, #tpu.memory_space<vmem>>, vector<16x16x4xf32>
    %16 = vector.shape_cast %15 : vector<16x16x4xf32> to vector<256x4xf32>
    %c2_25 = arith.constant 2 : index
    %c0_26 = arith.constant 0 : index
    %c0_27 = arith.constant 0 : index
    %17 = vector.load %arg9[%c2_25, %c0_26, %c0_27] : memref<18x18x4xf32, #tpu.memory_space<vmem>>, vector<16x16x4xf32>
    %18 = vector.shape_cast %17 : vector<16x16x4xf32> to vector<256x4xf32>
    %c2_28 = arith.constant 2 : index
    %c1_29 = arith.constant 1 : index
    %c0_30 = arith.constant 0 : index
    %19 = vector.load %arg9[%c2_28, %c1_29, %c0_30] : memref<18x18x4xf32, #tpu.memory_space<vmem>>, vector<16x16x4xf32>
    %20 = vector.shape_cast %19 : vector<16x16x4xf32> to vector<256x4xf32>
    %c2_31 = arith.constant 2 : index
    %c2_32 = arith.constant 2 : index
    %c0_33 = arith.constant 0 : index
    %21 = vector.load %arg9[%c2_31, %c2_32, %c0_33] : memref<18x18x4xf32, #tpu.memory_space<vmem>>, vector<16x16x4xf32>
    %22 = vector.shape_cast %21 : vector<16x16x4xf32> to vector<256x4xf32>
    %23 = tpu.concatenate %6, %8, %10, %12, %14, %16, %18, %20, %22 in 1 : vector<256x4xf32>, vector<256x4xf32>, vector<256x4xf32>, vector<256x4xf32>, vector<256x4xf32>, vector<256x4xf32>, vector<256x4xf32>, vector<256x4xf32>, vector<256x4xf32> -> vector<256x36xf32>
    %24 = arith.truncf %23 : vector<256x36xf32> to vector<256x36xbf16>
    %c0_34 = arith.constant 0 : index
    %c0_35 = arith.constant 0 : index
    %25 = vector.load %arg2[%c0_34, %c0_35] : memref<36x8xbf16, #tpu.memory_space<vmem>>, vector<36x8xbf16>
    %cst_36 = arith.constant dense<0.000000e+00> : vector<256x8xf32>
    %26 = tpu.matmul %24, %25, %cst_36 {dimension_numbers = #tpu.dot_dimension_numbers<[1], [0], [0], [1], [0, 0, 1, 1], [], []>} : vector<256x36xbf16>, vector<36x8xbf16>, vector<256x8xf32> -> vector<256x8xf32>
    %c0_37 = arith.constant 0 : index
    %c0_38 = arith.constant 0 : index
    %27 = vector.load %arg3[%c0_37, %c0_38] : memref<1x8xf32, #tpu.memory_space<vmem>>, vector<1x8xf32>
    %28 = vector.broadcast %27 : vector<1x8xf32> to vector<256x8xf32>
    %29 = arith.addf %26, %28 : vector<256x8xf32>
    %cst_39 = arith.constant 0.000000e+00 : f32
    %30 = vector.broadcast %cst_39 : f32 to vector<256x8xf32>
    %31 = arith.maximumf %29, %30 : vector<256x8xf32>
    %cst_40 = arith.constant 0.000000e+00 : f32
    %32 = vector.broadcast %cst_40 : f32 to vector<18x18x8xf32>
    %c0_41 = arith.constant 0 : index
    %c0_42 = arith.constant 0 : index
    %c0_43 = arith.constant 0 : index
    %33 = vector.load %arg10[%c0_41, %c0_42, %c0_43] : memref<18x18x8xf32, #tpu.memory_space<vmem>>, vector<18x18x8xf32>
    tpu.vector_store %arg10[%c0_41, %c0_42, %c0_43], %32 {strides = array<i32>} : memref<18x18x8xf32, #tpu.memory_space<vmem>>, vector<18x18x8xf32>,
    %34 = vector.shape_cast %31 : vector<256x8xf32> to vector<16x16x8xf32>
    %c1_44 = arith.constant 1 : index
    %c1_45 = arith.constant 1 : index
    %c0_46 = arith.constant 0 : index
    %35 = vector.load %arg10[%c1_44, %c1_45, %c0_46] : memref<18x18x8xf32, #tpu.memory_space<vmem>>, vector<16x16x8xf32>
    tpu.vector_store %arg10[%c1_44, %c1_45, %c0_46], %34 {strides = array<i32>} : memref<18x18x8xf32, #tpu.memory_space<vmem>>, vector<16x16x8xf32>,
    %c0_47 = arith.constant 0 : index
    %c0_48 = arith.constant 0 : index
    %c0_49 = arith.constant 0 : index
    %36 = vector.load %arg10[%c0_47, %c0_48, %c0_49] : memref<18x18x8xf32, #tpu.memory_space<vmem>>, vector<16x16x8xf32>
    %37 = vector.shape_cast %36 : vector<16x16x8xf32> to vector<256x8xf32>
    %c0_50 = arith.constant 0 : index
    %c1_51 = arith.constant 1 : index
    %c0_52 = arith.constant 0 : index
    %38 = vector.load %arg10[%c0_50, %c1_51, %c0_52] : memref<18x18x8xf32, #tpu.memory_space<vmem>>, vector<16x16x8xf32>
    %39 = vector.shape_cast %38 : vector<16x16x8xf32> to vector<256x8xf32>
    %c0_53 = arith.constant 0 : index
    %c2_54 = arith.constant 2 : index
    %c0_55 = arith.constant 0 : index
    %40 = vector.load %arg10[%c0_53, %c2_54, %c0_55] : memref<18x18x8xf32, #tpu.memory_space<vmem>>, vector<16x16x8xf32>
    %41 = vector.shape_cast %40 : vector<16x16x8xf32> to vector<256x8xf32>
    %c1_56 = arith.constant 1 : index
    %c0_57 = arith.constant 0 : index
    %c0_58 = arith.constant 0 : index
    %42 = vector.load %arg10[%c1_56, %c0_57, %c0_58] : memref<18x18x8xf32, #tpu.memory_space<vmem>>, vector<16x16x8xf32>
    %43 = vector.shape_cast %42 : vector<16x16x8xf32> to vector<256x8xf32>
    %c1_59 = arith.constant 1 : index
    %c1_60 = arith.constant 1 : index
    %c0_61 = arith.constant 0 : index
    %44 = vector.load %arg10[%c1_59, %c1_60, %c0_61] : memref<18x18x8xf32, #tpu.memory_space<vmem>>, vector<16x16x8xf32>
    %45 = vector.shape_cast %44 : vector<16x16x8xf32> to vector<256x8xf32>
    %c1_62 = arith.constant 1 : index
    %c2_63 = arith.constant 2 : index
    %c0_64 = arith.constant 0 : index
    %46 = vector.load %arg10[%c1_62, %c2_63, %c0_64] : memref<18x18x8xf32, #tpu.memory_space<vmem>>, vector<16x16x8xf32>
    %47 = vector.shape_cast %46 : vector<16x16x8xf32> to vector<256x8xf32>
    %c2_65 = arith.constant 2 : index
    %c0_66 = arith.constant 0 : index
    %c0_67 = arith.constant 0 : index
    %48 = vector.load %arg10[%c2_65, %c0_66, %c0_67] : memref<18x18x8xf32, #tpu.memory_space<vmem>>, vector<16x16x8xf32>
    %49 = vector.shape_cast %48 : vector<16x16x8xf32> to vector<256x8xf32>
    %c2_68 = arith.constant 2 : index
    %c1_69 = arith.constant 1 : index
    %c0_70 = arith.constant 0 : index
    %50 = vector.load %arg10[%c2_68, %c1_69, %c0_70] : memref<18x18x8xf32, #tpu.memory_space<vmem>>, vector<16x16x8xf32>
    %51 = vector.shape_cast %50 : vector<16x16x8xf32> to vector<256x8xf32>
    %c2_71 = arith.constant 2 : index
    %c2_72 = arith.constant 2 : index
    %c0_73 = arith.constant 0 : index
    %52 = vector.load %arg10[%c2_71, %c2_72, %c0_73] : memref<18x18x8xf32, #tpu.memory_space<vmem>>, vector<16x16x8xf32>
    %53 = vector.shape_cast %52 : vector<16x16x8xf32> to vector<256x8xf32>
    %54 = tpu.concatenate %37, %39, %41, %43, %45, %47, %49, %51, %53 in 1 : vector<256x8xf32>, vector<256x8xf32>, vector<256x8xf32>, vector<256x8xf32>, vector<256x8xf32>, vector<256x8xf32>, vector<256x8xf32>, vector<256x8xf32>, vector<256x8xf32> -> vector<256x72xf32>
    %55 = arith.truncf %54 : vector<256x72xf32> to vector<256x72xbf16>
    %c0_74 = arith.constant 0 : index
    %c0_75 = arith.constant 0 : index
    %56 = vector.load %arg4[%c0_74, %c0_75] : memref<72x8xbf16, #tpu.memory_space<vmem>>, vector<72x8xbf16>
    %cst_76 = arith.constant dense<0.000000e+00> : vector<256x8xf32>
    %57 = tpu.matmul %55, %56, %cst_76 {dimension_numbers = #tpu.dot_dimension_numbers<[1], [0], [0], [1], [0, 0, 1, 1], [], []>} : vector<256x72xbf16>, vector<72x8xbf16>, vector<256x8xf32> -> vector<256x8xf32>
    %c0_77 = arith.constant 0 : index
    %c0_78 = arith.constant 0 : index
    %58 = vector.load %arg5[%c0_77, %c0_78] : memref<1x8xf32, #tpu.memory_space<vmem>>, vector<1x8xf32>
    %59 = vector.broadcast %58 : vector<1x8xf32> to vector<256x8xf32>
    %60 = arith.addf %57, %59 : vector<256x8xf32>
    %c0_79 = arith.constant 0 : index
    %c0_80 = arith.constant 0 : index
    %c0_81 = arith.constant 0 : index
    %c0_82 = arith.constant 0 : index
    %61 = vector.load %arg1[%c0_79, %c0_80, %c0_81, %c0_82] : memref<1x16x16x4xf32, #tpu.memory_space<vmem>>, vector<1x16x16x4xf32>
    %62 = vector.shape_cast %61 : vector<1x16x16x4xf32> to vector<16x16x4xf32>
    %63 = vector.shape_cast %62 : vector<16x16x4xf32> to vector<256x4xf32>
    %64 = arith.truncf %63 : vector<256x4xf32> to vector<256x4xbf16>
    %c0_83 = arith.constant 0 : index
    %c0_84 = arith.constant 0 : index
    %65 = vector.load %arg6[%c0_83, %c0_84] : memref<4x8xbf16, #tpu.memory_space<vmem>>, vector<4x8xbf16>
    %cst_85 = arith.constant dense<0.000000e+00> : vector<256x8xf32>
    %66 = tpu.matmul %64, %65, %cst_85 {dimension_numbers = #tpu.dot_dimension_numbers<[1], [0], [0], [1], [0, 0, 1, 1], [], []>} : vector<256x4xbf16>, vector<4x8xbf16>, vector<256x8xf32> -> vector<256x8xf32>
    %c0_86 = arith.constant 0 : index
    %c0_87 = arith.constant 0 : index
    %67 = vector.load %arg7[%c0_86, %c0_87] : memref<1x8xf32, #tpu.memory_space<vmem>>, vector<1x8xf32>
    %68 = vector.broadcast %67 : vector<1x8xf32> to vector<256x8xf32>
    %69 = arith.addf %66, %68 : vector<256x8xf32>
    %70 = arith.addf %60, %69 : vector<256x8xf32>
    %cst_88 = arith.constant 0.000000e+00 : f32
    %71 = vector.broadcast %cst_88 : f32 to vector<256x8xf32>
    %72 = arith.maximumf %70, %71 : vector<256x8xf32>
    %73 = vector.shape_cast %72 : vector<256x8xf32> to vector<1x16x16x8xf32>
    %c0_89 = arith.constant 0 : index
    %c0_90 = arith.constant 0 : index
    %c0_91 = arith.constant 0 : index
    %c0_92 = arith.constant 0 : index
    %74 = vector.load %arg8[%c0_89, %c0_90, %c0_91, %c0_92] : memref<1x16x16x8xf32, #tpu.memory_space<vmem>>, vector<1x16x16x8xf32>
    tpu.vector_store %arg8[%c0_89, %c0_90, %c0_91, %c0_92], %73 {strides = array<i32>} : memref<1x16x16x8xf32, #tpu.memory_space<vmem>>, vector<1x16x16x8xf32>,
    return
  }
  func.func @transform_0(%arg0: i32) -> (i32, i32, i32, i32) {
    %c0_i32 = arith.constant 0 : i32
    %c0_i32_0 = arith.constant 0 : i32
    %c0_i32_1 = arith.constant 0 : i32
    %c0_i32_2 = arith.constant 0 : i32
    return %arg0, %c0_i32, %c0_i32_0, %c0_i32_1 : i32, i32, i32, i32
  }
  func.func @transform_1(%arg0: i32) -> (i32, i32) {
    %c0_i32 = arith.constant 0 : i32
    %c0_i32_0 = arith.constant 0 : i32
    %c0_i32_1 = arith.constant 0 : i32
    return %c0_i32, %c0_i32_0 : i32, i32
  }
  func.func @transform_2(%arg0: i32) -> (i32, i32) {
    %c0_i32 = arith.constant 0 : i32
    %c0_i32_0 = arith.constant 0 : i32
    %c0_i32_1 = arith.constant 0 : i32
    return %c0_i32, %c0_i32_0 : i32, i32
  }
  func.func @transform_3(%arg0: i32) -> (i32, i32) {
    %c0_i32 = arith.constant 0 : i32
    %c0_i32_0 = arith.constant 0 : i32
    %c0_i32_1 = arith.constant 0 : i32
    return %c0_i32, %c0_i32_0 : i32, i32
  }
  func.func @transform_4(%arg0: i32) -> (i32, i32) {
    %c0_i32 = arith.constant 0 : i32
    %c0_i32_0 = arith.constant 0 : i32
    %c0_i32_1 = arith.constant 0 : i32
    return %c0_i32, %c0_i32_0 : i32, i32
  }
  func.func @transform_5(%arg0: i32) -> (i32, i32) {
    %c0_i32 = arith.constant 0 : i32
    %c0_i32_0 = arith.constant 0 : i32
    %c0_i32_1 = arith.constant 0 : i32
    return %c0_i32, %c0_i32_0 : i32, i32
  }
  func.func @transform_6(%arg0: i32) -> (i32, i32) {
    %c0_i32 = arith.constant 0 : i32
    %c0_i32_0 = arith.constant 0 : i32
    %c0_i32_1 = arith.constant 0 : i32
    return %c0_i32, %c0_i32_0 : i32, i32
  }
  func.func @transform_7(%arg0: i32) -> (i32, i32, i32, i32) {
    %c0_i32 = arith.constant 0 : i32
    %c0_i32_0 = arith.constant 0 : i32
    %c0_i32_1 = arith.constant 0 : i32
    %c0_i32_2 = arith.constant 0 : i32
    return %arg0, %c0_i32, %c0_i32_0, %c0_i32_1 : i32, i32, i32, i32
  }
}

</mosaic_0001>

<bundles_post_ra>
// kernel: basic_block_forward.1
= control target key start
LH: loop header
LB: loop body
LE: loop exit
PB: predicated region body
PF: predicated region fallthrough
CT: control target
= control target key end

     0   :  { %s6358_s24 = smov 0   ;;  %s9066_s0 = inlined_call_operand.vmem [shape: f32[2,16,16,4], index: 0, kind: input, shape index: {}]   ;;  %s9067_s1 = inlined_call_operand.vmem [shape: bf16[36,8], index: 1, kind: input, shape index: {}]   ;;  %s9068_s2 = inlined_call_operand.vmem [shape: f32[1,8], index: 2, kind: input, shape index: {}]   ;;  %s9069_s3 = inlined_call_operand.vmem [shape: bf16[72,8], index: 3, kind: input, shape index: {}]   ;;  %s9070_s4 = inlined_call_operand.vmem [shape: f32[1,8], index: 4, kind: input, shape index: {}]   ;;  %s9071_s5 = inlined_call_operand.vmem [shape: bf16[4,8], index: 5, kind: input, shape index: {}]   ;;  %s9072_s6 = inlined_call_operand.vmem [shape: f32[1,8], index: 6, kind: input, shape index: {}]   ;;  %s9073_s7 = inlined_call_operand.vmem [shape: f32[2,16,16,8], index: 7, kind: output, shape index: {}]  }
   0x1 LB: > { %s4619_s25 = sadd.s32 4294967295, %s6303_s24   ;;  %p4623_p0 = scmp.ge.s32.totalorder %s6303_s24, 1  ;;  %s6303_s24 = sphi %s6358_s24, %s17_s24  }
   0x2   : > { %p237_p1 = scmp.lt.s32.totalorder %s6303_s24, 3 }
   0x4   : > { %p238_p2 = pnand %p4623_p0, %p237_p1 }
   0x6   : > { %241 = sbr.rel (%p238_p2) target bundleno = 1171 (0x493), region = 48 }
   0xd   : > { %vm280_vm0 = vcmask 31744   ;;  %vm283_vm1 = vcmask 25600   ;;  %p6368_p3 = scmp.lt.s32.totalorder %s4619_s25, 1  ;;  %v9074_v0 = vmov 0.0   ;;  %s6306_s8 = smov 4   ;;  %vm1746_vm2 = vcmask 64512  }
   0xe   : > { %281 = vst.msk [vmem:[#allocation2] sm:$0xff] %vm280_vm0, %v9074_v0  ;;  %282 = vst.msk [vmem:[#allocation2 + $0x8] sm:$0xff] %vm280_vm0, %v9074_v0  ;;  %s6307_s9 = smov 8   ;;  %s6308_s10 = smov 12   ;;  %vm2069_vm3 = vcmask 1041408   ;;  %vm2268_vm4 = vcmask 58368  }
   0xf   : > { %284 = vst.msk [vmem:[#allocation2 + $0x10] sm:$0x3] %vm283_vm1, %v9074_v0  ;;  %287 = vst.msk [vmem:[#allocation2 + $0x28] sm:$0x3] %vm283_vm1, %v9074_v0  ;;  %s9285_s25 = smov (!%p6368_p3, %s4619_s25), 1  ;;  %s6309_s11 = smov 16  }
  0x10   : > { %285 = vst.msk [vmem:[#allocation2 + $0x18] sm:$0xff] %vm280_vm0, %v9074_v0  ;;  %286 = vst.msk [vmem:[#allocation2 + $0x20] sm:$0xff] %vm280_vm0, %v9074_v0  ;;  %s4689_s27 = sshll.u32 %s9285_s25, 8  ;;  %s6310_s12 = smov 20   ;;  %vm1779_vm5 = vcmask 97280   ;;  %vm1812_vm6 = vcmask 130048  }
  0x11   : > { %288 = vst.msk [vmem:[#allocation2 + $0x30] sm:$0xff] %vm280_vm0, %v9074_v0  ;;  %289 = vst.msk [vmem:[#allocation2 + $0x38] sm:$0xff] %vm280_vm0, %v9074_v0  ;;  %s6492_s30 = scalar_lea.vmem %s9066_s0, %s4689_s27  ;;  %s6311_s19 = smov 24   ;;  %vm1845_vm7 = vcmask 162816   ;;  %vm1878_vm8 = vcmask 195584   ;;  %vm1911_vm9 = vcmask 228352  }
  0x12   : > { %290 = vst.msk [vmem:[#allocation2 + $0x40] sm:$0x3] %vm283_vm1, %v9074_v0  ;;  %293 = vst.msk [vmem:[#allocation2 + $0x58] sm:$0x3] %vm283_vm1, %v9074_v0  ;;  %v338_v1 = vld [vmem:[%s6492_s30 + $0x10] sm:$0xff]  ;;  %v339_v2 = vld [vmem:[%s6492_s30 + $0x18] sm:$0xff]  ;;  %s8927_s29 = scalar_lea.vmem %s9073_s7, %s4689_s27 }
  0x13   : > { %291 = vst.msk [vmem:[#allocation2 + $0x48] sm:$0xff] %vm280_vm0, %v9074_v0  ;;  %292 = vst.msk [vmem:[#allocation2 + $0x50] sm:$0xff] %vm280_vm0, %v9074_v0  ;;  %v336_v3 = vld [vmem:[%s6492_s30] sm:$0xff]  ;;  %v337_v4 = vld [vmem:[%s6492_s30 + $0x8] sm:$0xff]  ;;  %s6312_s20 = smov 28   ;;  %s6313_s21 = smov 32  }
  0x14   : > { %294 = vst.msk [vmem:[#allocation2 + $0x60] sm:$0xff] %vm280_vm0, %v9074_v0  ;;  %295 = vst.msk [vmem:[#allocation2 + $0x68] sm:$0xff] %vm280_vm0, %v9074_v0  ;;  %v340_v5 = vld [vmem:[%s6492_s30 + $0x20] sm:$0xff]  ;;  %v341_v6 = vld [vmem:[%s6492_s30 + $0x28] sm:$0xff]  ;;  %vm1944_vm10 = vcmask 261120   ;;  %vm2020_vm11 = vcmask 293888  }
  0x15   : > { %296 = vst.msk [vmem:[#allocation2 + $0x70] sm:$0x3] %vm283_vm1, %v9074_v0  ;;  %299 = vst.msk [vmem:[#allocation2 + $0x88] sm:$0x3] %vm283_vm1, %v9074_v0  ;;  %v433_v7 = vld [vmem:[#allocation2 + $0x1] sm:$0xff]  ;;  %v342_v9 = vld [vmem:[%s6492_s30 + $0x30] sm:$0xff] }
  0x16   : > { %297 = vst.msk [vmem:[#allocation2 + $0x78] sm:$0xff] %vm280_vm0, %v9074_v0  ;;  %298 = vst.msk [vmem:[#allocation2 + $0x80] sm:$0xff] %vm280_vm0, %v9074_v0  ;;  %v434_v8 = vld [vmem:[#allocation2 + $0x9] sm:$0xff]  ;;  %v343_v11 = vld [vmem:[%s6492_s30 + $0x38] sm:$0xff]  ;;  %s6314_s22 = smov 48   ;;  %s6315_s23 = smov 56  }
  0x17   : > { %300 = vst.msk [vmem:[#allocation2 + $0x90] sm:$0xff] %vm280_vm0, %v9074_v0  ;;  %301 = vst.msk [vmem:[#allocation2 + $0x98] sm:$0xff] %vm280_vm0, %v9074_v0  ;;  %v4993_v10 = vpack.i.bf16 %v434_v8, %v433_v7  ;;  %v344_v12 = vld [vmem:[%s6492_s30 + $0x40] sm:$0xff]  ;;  %v345_v13 = vld [vmem:[%s6492_s30 + $0x48] sm:$0xff]  ;;  %s6316_s26 = smov 64   ;;  %vm4035_vm12 = vcmask 1043456  }
  0x18   : > { %302 = vst.msk [vmem:[#allocation2 + $0xa0] sm:$0x3] %vm283_vm1, %v9074_v0  ;;  %305 = vst.msk [vmem:[#allocation2 + $0xb8] sm:$0x3] %vm283_vm1, %v9074_v0  ;;  %v346_v14 = vld [vmem:[%s6492_s30 + $0x50] sm:$0xff]  ;;  %v347_v15 = vld [vmem:[%s6492_s30 + $0x58] sm:$0xff] }
  0x19   : > { %303 = vst.msk [vmem:[#allocation2 + $0xa8] sm:$0xff] %vm280_vm0, %v9074_v0  ;;  %304 = vst.msk [vmem:[#allocation2 + $0xb0] sm:$0xff] %vm280_vm0, %v9074_v0  ;;  %v348_v16 = vld [vmem:[%s6492_s30 + $0x60] sm:$0xff]  ;;  %4994 = vrot.lane.b32.xlu0 %v4993_v10, %s6306_s8  ;;  %v349_v17 = vld [vmem:[%s6492_s30 + $0x68] sm:$0xff]  ;;  %vm3795_vm13 = vcmask 326656   ;;  %vm3828_vm14 = vcmask 392192  }
  0x1a   : > { %306 = vst.msk [vmem:[#allocation2 + $0xc0] sm:$0xff] %vm280_vm0, %v9074_v0  ;;  %307 = vst.msk [vmem:[#allocation2 + $0xc8] sm:$0xff] %vm280_vm0, %v9074_v0  ;;  %v350_v18 = vld [vmem:[%s6492_s30 + $0x70] sm:$0xff]  ;;  %v351_v19 = vld [vmem:[%s6492_s30 + $0x78] sm:$0xff]  ;;  %vm3861_vm15 = vcmask 457728  }
  0x1b   : > { %308 = vst.msk [vmem:[#allocation2 + $0xd0] sm:$0x3] %vm283_vm1, %v9074_v0  ;;  %311 = vst.msk [vmem:[#allocation2 + $0xe8] sm:$0x3] %vm283_vm1, %v9074_v0  ;;  %v352_v20 = vld [vmem:[%s6492_s30 + $0x80] sm:$0xff]  ;;  %v353_v21 = vld [vmem:[%s6492_s30 + $0x88] sm:$0xff] }
  0x1c   : > { %309 = vst.msk [vmem:[#allocation2 + $0xd8] sm:$0xff] %vm280_vm0, %v9074_v0  ;;  %310 = vst.msk [vmem:[#allocation2 + $0xe0] sm:$0xff] %vm280_vm0, %v9074_v0  ;;  %v354_v22 = vld [vmem:[%s6492_s30 + $0x90] sm:$0xff]  ;;  %v355_v23 = vld [vmem:[%s6492_s30 + $0x98] sm:$0xff] }
  0x1d   : > { %312 = vst.msk [vmem:[#allocation2 + $0xf0] sm:$0xff] %vm280_vm0, %v9074_v0  ;;  %313 = vst.msk [vmem:[#allocation2 + $0xf8] sm:$0xff] %vm280_vm0, %v9074_v0  ;;  %v356_v24 = vld [vmem:[%s6492_s30 + $0xa0] sm:$0xff]  ;;  %v357_v25 = vld [vmem:[%s6492_s30 + $0xa8] sm:$0xff] }
  0x1e   : > { %314 = vst.msk [vmem:[#allocation2 + $0x100] sm:$0x3] %vm283_vm1, %v9074_v0  ;;  %317 = vst.msk [vmem:[#allocation2 + $0x118] sm:$0x3] %vm283_vm1, %v9074_v0  ;;  %v358_v35 = vld [vmem:[%s6492_s30 + $0xb0] sm:$0xff]  ;;  %v359_v36 = vld [vmem:[%s6492_s30 + $0xb8] sm:$0xff] }
  0x1f   : > { %315 = vst.msk [vmem:[#allocation2 + $0x108] sm:$0xff] %vm280_vm0, %v9074_v0  ;;  %316 = vst.msk [vmem:[#allocation2 + $0x110] sm:$0xff] %vm280_vm0, %v9074_v0  ;;  %v360_v50 = vld [vmem:[%s6492_s30 + $0xc0] sm:$0xff]  ;;  %v361_v51 = vld [vmem:[%s6492_s30 + $0xc8] sm:$0xff] }
  0x20   : > { %318 = vst.msk [vmem:[#allocation2 + $0x120] sm:$0xff] %vm280_vm0, %v9074_v0  ;;  %319 = vst.msk [vmem:[#allocation2 + $0x128] sm:$0xff] %vm280_vm0, %v9074_v0  ;;  %v362_v52 = vld [vmem:[%s6492_s30 + $0xd0] sm:$0xff]  ;;  %v363_v53 = vld [vmem:[%s6492_s30 + $0xd8] sm:$0xff] }
  0x21   : > { %320 = vst.msk [vmem:[#allocation2 + $0x130] sm:$0x3] %vm283_vm1, %v9074_v0  ;;  %323 = vst.msk [vmem:[#allocation2 + $0x148] sm:$0x3] %vm283_vm1, %v9074_v0  ;;  %v364_v54 = vld [vmem:[%s6492_s30 + $0xe0] sm:$0xff]  ;;  %v365_v55 = vld [vmem:[%s6492_s30 + $0xe8] sm:$0xff] }
  0x22   : > { %321 = vst.msk [vmem:[#allocation2 + $0x138] sm:$0xff] %vm280_vm0, %v9074_v0  ;;  %322 = vst.msk [vmem:[#allocation2 + $0x140] sm:$0xff] %vm280_vm0, %v9074_v0 }
  0x23   : > { %324 = vst.msk [vmem:[#allocation2 + $0x150] sm:$0xff] %vm280_vm0, %v9074_v0  ;;  %325 = vst.msk [vmem:[#allocation2 + $0x158] sm:$0xff] %vm280_vm0, %v9074_v0 }
  0x24   : > { %326 = vst.msk [vmem:[#allocation2 + $0x160] sm:$0x3] %vm283_vm1, %v9074_v0  ;;  %329 = vst.msk [vmem:[#allocation2 + $0x178] sm:$0x3] %vm283_vm1, %v9074_v0 }
  0x25   : > { %327 = vst.msk [vmem:[#allocation2 + $0x168] sm:$0xff] %vm280_vm0, %v9074_v0  ;;  %328 = vst.msk [vmem:[#allocation2 + $0x170] sm:$0xff] %vm280_vm0, %v9074_v0 }
  0x26   : > { %330 = vst.msk [vmem:[#allocation2 + $0x180] sm:$0xff] %vm280_vm0, %v9074_v0  ;;  %331 = vst.msk [vmem:[#allocation2 + $0x188] sm:$0xff] %vm280_vm0, %v9074_v0 }
  0x27   : > { %332 = vst.msk [vmem:[#allocation2 + $0x190] sm:$0x3] %vm283_vm1, %v9074_v0  ;;  %335 = vst.msk [vmem:[#allocation2 + $0x1a8] sm:$0x3] %vm283_vm1, %v9074_v0  ;;  %vm3894_vm1 = vcmask 523264  }
  0x28   : > { %333 = vst.msk [vmem:[#allocation2 + $0x198] sm:$0xff] %vm280_vm0, %v9074_v0  ;;  %334 = vst.msk [vmem:[#allocation2 + $0x1a0] sm:$0xff] %vm280_vm0, %v9074_v0 }
  0x29   : > { %371 = vst.msk [vmem:[#allocation2 + $0x31] sm:$0xff] %vm280_vm0, %v338_v1  ;;  %372 = vst.msk [vmem:[#allocation2 + $0x39] sm:$0xff] %vm280_vm0, %v339_v2 }
  0x2a   : > { %369 = vst.msk [vmem:[#allocation2 + $0x19] sm:$0xff] %vm280_vm0, %v336_v3  ;;  %370 = vst.msk [vmem:[#allocation2 + $0x21] sm:$0xff] %vm280_vm0, %v337_v4 }
  0x2b   : > { %373 = vst.msk [vmem:[#allocation2 + $0x49] sm:$0xff] %vm280_vm0, %v340_v5  ;;  %374 = vst.msk [vmem:[#allocation2 + $0x51] sm:$0xff] %vm280_vm0, %v341_v6 }
  0x2c   : > { %375 = vst.msk [vmem:[#allocation2 + $0x61] sm:$0xff] %vm280_vm0, %v342_v9  ;;  %376 = vst.msk [vmem:[#allocation2 + $0x69] sm:$0xff] %vm280_vm0, %v343_v11 }
  0x2d   : > { %377 = vst.msk [vmem:[#allocation2 + $0x79] sm:$0xff] %vm280_vm0, %v344_v12  ;;  %378 = vst.msk [vmem:[#allocation2 + $0x81] sm:$0xff] %vm280_vm0, %v345_v13 }
  0x2e   : > { %379 = vst.msk [vmem:[#allocation2 + $0x91] sm:$0xff] %vm280_vm0, %v346_v14  ;;  %380 = vst.msk [vmem:[#allocation2 + $0x99] sm:$0xff] %vm280_vm0, %v347_v15  ;;  %v465_v15 = vld [vmem:[#allocation2 + $0x2] sm:$0xff] }
  0x2f   : > { %381 = vst.msk [vmem:[#allocation2 + $0xa9] sm:$0xff] %vm280_vm0, %v348_v16  ;;  %382 = vst.msk [vmem:[#allocation2 + $0xb1] sm:$0xff] %vm280_vm0, %v349_v17  ;;  %v466_v16 = vld [vmem:[#allocation2 + $0xa] sm:$0xff] }
  0x30   : > { %383 = vst.msk [vmem:[#allocation2 + $0xc1] sm:$0xff] %vm280_vm0, %v350_v18  ;;  %384 = vst.msk [vmem:[#allocation2 + $0xc9] sm:$0xff] %vm280_vm0, %v351_v19  ;;  %v437_v26 = vld [vmem:[#allocation2 + $0x31] sm:$0xff]  ;;  %v438_v27 = vld [vmem:[#allocation2 + $0x39] sm:$0xff]  ;;  %v5073_v18 = vpack.i.bf16 %v466_v16, %v465_v15 }
  0x31   : > { %385 = vst.msk [vmem:[#allocation2 + $0xd9] sm:$0xff] %vm280_vm0, %v352_v20  ;;  %386 = vst.msk [vmem:[#allocation2 + $0xe1] sm:$0xff] %vm280_vm0, %v353_v21  ;;  %v435_v28 = vld [vmem:[#allocation2 + $0x19] sm:$0xff]  ;;  %v6539_v29 = vpack.i.bf16 %v438_v27, %v437_v26  ;;  %v436_v30 = vld [vmem:[#allocation2 + $0x21] sm:$0xff] }
  0x32   : > { %387 = vst.msk [vmem:[#allocation2 + $0xf1] sm:$0xff] %vm280_vm0, %v354_v22  ;;  %388 = vst.msk [vmem:[#allocation2 + $0xf9] sm:$0xff] %vm280_vm0, %v355_v23  ;;  %v439_v31 = vld [vmem:[#allocation2 + $0x49] sm:$0xff]  ;;  %v440_v32 = vld [vmem:[#allocation2 + $0x51] sm:$0xff]  ;;  %v6541_v33 = vpack.i.bf16 %v436_v30, %v435_v28 }
  0x33   : > { %389 = vst.msk [vmem:[#allocation2 + $0x109] sm:$0xff] %vm280_vm0, %v356_v24  ;;  %390 = vst.msk [vmem:[#allocation2 + $0x111] sm:$0xff] %vm280_vm0, %v357_v25  ;;  %v441_v34 = vld [vmem:[#allocation2 + $0x61] sm:$0xff]  ;;  %5004 = vrot.lane.b32.xlu1 %v6539_v29, %s6306_s8  ;;  %v6547_v37 = vpack.i.bf16 %v440_v32, %v439_v31  ;;  %v442_v38 = vld [vmem:[#allocation2 + $0x69] sm:$0xff] }
  0x34   : > { %391 = vst.msk [vmem:[#allocation2 + $0x121] sm:$0xff] %vm280_vm0, %v358_v35  ;;  %392 = vst.msk [vmem:[#allocation2 + $0x129] sm:$0xff] %vm280_vm0, %v359_v36  ;;  %4999 = vrot.lane.b32.xlu0 %v6541_v33, %s6306_s8  ;;  %v6553_v39 = vpack.i.bf16 %v442_v38, %v441_v34  ;;  %v443_v40 = vld [vmem:[#allocation2 + $0x79] sm:$0xff]  ;;  %v444_v41 = vld [vmem:[#allocation2 + $0x81] sm:$0xff] }
  0x35   : > { %v445_v42 = vld [vmem:[#allocation2 + $0x91] sm:$0xff]  ;;  %v446_v43 = vld [vmem:[#allocation2 + $0x99] sm:$0xff]  ;;  %v6557_v45 = vpack.i.bf16 %v444_v41, %v443_v40  ;;  %393 = vst.msk [vmem:[#allocation2 + $0x139] sm:$0xff] %vm280_vm0, %v360_v50  ;;  %394 = vst.msk [vmem:[#allocation2 + $0x141] sm:$0xff] %vm280_vm0, %v361_v51 }
  0x36   : > { %v447_v44 = vld [vmem:[#allocation2 + $0xa9] sm:$0xff]  ;;  %v448_v46 = vld [vmem:[#allocation2 + $0xb1] sm:$0xff]  ;;  %v6561_v49 = vpack.i.bf16 %v446_v43, %v445_v42  ;;  %395 = vst.msk [vmem:[#allocation2 + $0x151] sm:$0xff] %vm280_vm0, %v362_v52  ;;  %396 = vst.msk [vmem:[#allocation2 + $0x159] sm:$0xff] %vm280_vm0, %v363_v53 }
  0x37   : > { %5009 = vrot.lane.b32.xlu1 %v6547_v37, %s6306_s8  ;;  %v449_v47 = vld [vmem:[#allocation2 + $0xc1] sm:$0xff]  ;;  %v450_v48 = vld [vmem:[#allocation2 + $0xc9] sm:$0xff]  ;;  %397 = vst.msk [vmem:[#allocation2 + $0x169] sm:$0xff] %vm280_vm0, %v364_v54  ;;  %398 = vst.msk [vmem:[#allocation2 + $0x171] sm:$0xff] %vm280_vm0, %v365_v55  ;;  %v6577_v56 = vpack.i.bf16 %v448_v46, %v447_v44 }
  0x38   : > { %5014 = vrot.lane.b32.xlu0 %v6553_v39, %s6306_s8  ;;  %v6581_v57 = vpack.i.bf16 %v450_v48, %v449_v47  ;;  %v451_v58 = vld [vmem:[#allocation2 + $0xd9] sm:$0xff]  ;;  %v452_v59 = vld [vmem:[#allocation2 + $0xe1] sm:$0xff]  ;;  %2266 = vst.msk [vmem:[#allocation3] sm:$0xff] %vm1746_vm2, %v9074_v0  ;;  %2267 = vst.msk [vmem:[#allocation3 + $0x8] sm:$0xff] %vm1746_vm2, %v9074_v0 }
  0x39   : > { %v453_v60 = vld [vmem:[#allocation2 + $0xf1] sm:$0xff]  ;;  %v454_v61 = vld [vmem:[#allocation2 + $0xf9] sm:$0xff]  ;;  %v6585_v62 = vpack.i.bf16 %v452_v59, %v451_v58  ;;  %2270 = vst.msk [vmem:[#allocation3 + $0x18] sm:$0xff] %vm1746_vm2, %v9074_v0  ;;  %2271 = vst.msk [vmem:[#allocation3 + $0x20] sm:$0xff] %vm1746_vm2, %v9074_v0 }
  0x3a   : > { %v6589_v63 = vpack.i.bf16 %v454_v61, %v453_v60  ;;  %v455_v1 = vld [vmem:[#allocation2 + $0x109] sm:$0xff]  ;;  %v456_v2 = vld [vmem:[#allocation2 + $0x111] sm:$0xff]  ;;  %2273 = vst.msk [vmem:[#allocation3 + $0x30] sm:$0xff] %vm1746_vm2, %v9074_v0  ;;  %2274 = vst.msk [vmem:[#allocation3 + $0x38] sm:$0xff] %vm1746_vm2, %v9074_v0 }
  0x3b   : > { %5019 = vrot.lane.b32.xlu1 %v6557_v45, %s6306_s8  ;;  %v457_v3 = vld [vmem:[#allocation2 + $0x121] sm:$0xff]  ;;  %v458_v4 = vld [vmem:[#allocation2 + $0x129] sm:$0xff]  ;;  %v6593_v5 = vpack.i.bf16 %v456_v2, %v455_v1  ;;  %2276 = vst.msk [vmem:[#allocation3 + $0x48] sm:$0xff] %vm1746_vm2, %v9074_v0  ;;  %2277 = vst.msk [vmem:[#allocation3 + $0x50] sm:$0xff] %vm1746_vm2, %v9074_v0 }
  0x3c   : > { %5024 = vrot.lane.b32.xlu0 %v6561_v49, %s6306_s8  ;;  %v6597_v6 = vpack.i.bf16 %v458_v4, %v457_v3  ;;  %v459_v7 = vld [vmem:[#allocation2 + $0x139] sm:$0xff]  ;;  %v460_v8 = vld [vmem:[#allocation2 + $0x141] sm:$0xff]  ;;  %2279 = vst.msk [vmem:[#allocation3 + $0x60] sm:$0xff] %vm1746_vm2, %v9074_v0  ;;  %2280 = vst.msk [vmem:[#allocation3 + $0x68] sm:$0xff] %vm1746_vm2, %v9074_v0 }
  0x3d   : > { %v461_v9 = vld [vmem:[#allocation2 + $0x151] sm:$0xff]  ;;  %v462_v10 = vld [vmem:[#allocation2 + $0x159] sm:$0xff]  ;;  %2282 = vst.msk [vmem:[#allocation3 + $0x78] sm:$0xff] %vm1746_vm2, %v9074_v0  ;;  %2283 = vst.msk [vmem:[#allocation3 + $0x80] sm:$0xff] %vm1746_vm2, %v9074_v0  ;;  %v6673_v11 = vpack.i.bf16 %v460_v8, %v459_v7 }
  0x3e   : > { %2285 = vst.msk [vmem:[#allocation3 + $0x90] sm:$0xff] %vm1746_vm2, %v9074_v0  ;;  %2286 = vst.msk [vmem:[#allocation3 + $0x98] sm:$0xff] %vm1746_vm2, %v9074_v0  ;;  %v6677_v12 = vpack.i.bf16 %v462_v10, %v461_v9  ;;  %v463_v13 = vld [vmem:[#allocation2 + $0x169] sm:$0xff]  ;;  %v464_v14 = vld [vmem:[#allocation2 + $0x171] sm:$0xff] }
  0x3f   : > { %5029 = vrot.lane.b32.xlu1 %v6577_v56, %s6306_s8  ;;  %2288 = vst.msk [vmem:[#allocation3 + $0xa8] sm:$0xff] %vm1746_vm2, %v9074_v0  ;;  %2289 = vst.msk [vmem:[#allocation3 + $0xb0] sm:$0xff] %vm1746_vm2, %v9074_v0  ;;  %v6681_v17 = vpack.i.bf16 %v464_v14, %v463_v13  ;;  %v467_v19 = vld [vmem:[#allocation2 + $0x1a] sm:$0xff]  ;;  %v468_v20 = vld [vmem:[#allocation2 + $0x22] sm:$0xff] }
  0x40   : > { %5034 = vrot.lane.b32.xlu0 %v6581_v57, %s6306_s8  ;;  %2291 = vst.msk [vmem:[#allocation3 + $0xc0] sm:$0xff] %vm1746_vm2, %v9074_v0  ;;  %2292 = vst.msk [vmem:[#allocation3 + $0xc8] sm:$0xff] %vm1746_vm2, %v9074_v0  ;;  %v469_v21 = vld [vmem:[#allocation2 + $0x32] sm:$0xff]  ;;  %v470_v22 = vld [vmem:[#allocation2 + $0x3a] sm:$0xff]  ;;  %v6687_v23 = vpack.i.bf16 %v468_v20, %v467_v19 }
  0x41   : > { %2294 = vst.msk [vmem:[#allocation3 + $0xd8] sm:$0xff] %vm1746_vm2, %v9074_v0  ;;  %2295 = vst.msk [vmem:[#allocation3 + $0xe0] sm:$0xff] %vm1746_vm2, %v9074_v0  ;;  %v6690_v24 = vpack.i.bf16 %v470_v22, %v469_v21  ;;  %v471_v25 = vld [vmem:[#allocation2 + $0x4a] sm:$0xff]  ;;  %v472_v26 = vld [vmem:[#allocation2 + $0x52] sm:$0xff] }
  0x42   : > { %2297 = vst.msk [vmem:[#allocation3 + $0xf0] sm:$0xff] %vm1746_vm2, %v9074_v0  ;;  %2298 = vst.msk [vmem:[#allocation3 + $0xf8] sm:$0xff] %vm1746_vm2, %v9074_v0  ;;  %v473_v27 = vld [vmem:[#allocation2 + $0x62] sm:$0xff]  ;;  %v474_v28 = vld [vmem:[#allocation2 + $0x6a] sm:$0xff]  ;;  %v6698_v32 = vpack.i.bf16 %v472_v26, %v471_v25 }
  0x43   : > { %5039 = vrot.lane.b32.xlu1 %v6585_v62, %s6306_s8  ;;  %2300 = vst.msk [vmem:[#allocation3 + $0x108] sm:$0xff] %vm1746_vm2, %v9074_v0  ;;  %2301 = vst.msk [vmem:[#allocation3 + $0x110] sm:$0xff] %vm1746_vm2, %v9074_v0  ;;  %v366_v30 = vld [vmem:[%s6492_s30 + $0xf0] sm:$0xff]  ;;  %v367_v31 = vld [vmem:[%s6492_s30 + $0xf8] sm:$0xff]  ;;  %v6702_v34 = vpack.i.bf16 %v474_v28, %v473_v27 }
  0x44   : > { %5044 = vrot.lane.b32.xlu0 %v6589_v63, %s6306_s8  ;;  %2303 = vst.msk [vmem:[#allocation3 + $0x120] sm:$0xff] %vm1746_vm2, %v9074_v0  ;;  %2304 = vst.msk [vmem:[#allocation3 + $0x128] sm:$0xff] %vm1746_vm2, %v9074_v0  ;;  %v475_v35 = vld [vmem:[#allocation2 + $0x7a] sm:$0xff]  ;;  %v476_v36 = vld [vmem:[#allocation2 + $0x82] sm:$0xff] }
  0x45   : > { %2306 = vst.msk [vmem:[#allocation3 + $0x138] sm:$0xff] %vm1746_vm2, %v9074_v0  ;;  %2307 = vst.msk [vmem:[#allocation3 + $0x140] sm:$0xff] %vm1746_vm2, %v9074_v0  ;;  %v477_v38 = vld [vmem:[#allocation2 + $0x92] sm:$0xff]  ;;  %v478_v40 = vld [vmem:[#allocation2 + $0x9a] sm:$0xff]  ;;  %v6706_v41 = vpack.i.bf16 %v476_v36, %v475_v35 }
  0x46   : > { %2309 = vst.msk [vmem:[#allocation3 + $0x150] sm:$0xff] %vm1746_vm2, %v9074_v0  ;;  %2310 = vst.msk [vmem:[#allocation3 + $0x158] sm:$0xff] %vm1746_vm2, %v9074_v0  ;;  %v6710_v42 = vpack.i.bf16 %v478_v40, %v477_v38  ;;  %v479_v43 = vld [vmem:[#allocation2 + $0xaa] sm:$0xff]  ;;  %v480_v44 = vld [vmem:[#allocation2 + $0xb2] sm:$0xff] }
  0x47   : > { %2312 = vst.msk [vmem:[#allocation3 + $0x168] sm:$0xff] %vm1746_vm2, %v9074_v0  ;;  %2313 = vst.msk [vmem:[#allocation3 + $0x170] sm:$0xff] %vm1746_vm2, %v9074_v0  ;;  %5049 = vrot.lane.b32.xlu1 %v6593_v5, %s6306_s8  ;;  %v481_v46 = vld [vmem:[#allocation2 + $0xc2] sm:$0xff]  ;;  %v482_v47 = vld [vmem:[#allocation2 + $0xca] sm:$0xff]  ;;  %v6714_v48 = vpack.i.bf16 %v480_v44, %v479_v43 }
  0x48   : > { %2315 = vst.msk [vmem:[#allocation3 + $0x180] sm:$0xff] %vm1746_vm2, %v9074_v0  ;;  %2316 = vst.msk [vmem:[#allocation3 + $0x188] sm:$0xff] %vm1746_vm2, %v9074_v0  ;;  %5054 = vrot.lane.b32.xlu0 %v6597_v6, %s6306_s8  ;;  %v6718_v50 = vpack.i.bf16 %v482_v47, %v481_v46  ;;  %v483_v51 = vld [vmem:[#allocation2 + $0xda] sm:$0xff]  ;;  %v484_v52 = vld [vmem:[#allocation2 + $0xe2] sm:$0xff] }
  0x49   : > { %2318 = vst.msk [vmem:[#allocation3 + $0x198] sm:$0xff] %vm1746_vm2, %v9074_v0  ;;  %2319 = vst.msk [vmem:[#allocation3 + $0x1a0] sm:$0xff] %vm1746_vm2, %v9074_v0  ;;  %v485_v53 = vld [vmem:[#allocation2 + $0xf2] sm:$0xff]  ;;  %v486_v54 = vld [vmem:[#allocation2 + $0xfa] sm:$0xff]  ;;  %v6722_v55 = vpack.i.bf16 %v484_v52, %v483_v51 }
  0x4a   : > { %399 = vst.msk [vmem:[#allocation2 + $0x181] sm:$0xff] %vm280_vm0, %v366_v30  ;;  %400 = vst.msk [vmem:[#allocation2 + $0x189] sm:$0xff] %vm280_vm0, %v367_v31  ;;  %v6726_v58 = vpack.i.bf16 %v486_v54, %v485_v53  ;;  %v487_v59 = vld [vmem:[#allocation2 + $0x10a] sm:$0xff]  ;;  %v488_v60 = vld [vmem:[#allocation2 + $0x112] sm:$0xff] }
  0x4b   : > { %5059 = vrot.lane.b32.xlu1 %v6673_v11, %s6306_s8  ;;  %v489_v61 = vld [vmem:[#allocation2 + $0x122] sm:$0xff]  ;;  %v490_v1 = vld [vmem:[#allocation2 + $0x12a] sm:$0xff]  ;;  %v6730_v2 = vpack.i.bf16 %v488_v60, %v487_v59  ;;  %v491_v4 = vld [vmem:[#allocation2 + $0x13a] sm:$0xff] }
  0x4c   : > { %5064 = vrot.lane.b32.xlu0 %v6677_v12, %s6306_s8  ;;  %v6734_v3 = vpack.i.bf16 %v490_v1, %v489_v61  ;;  %v492_v7 = vld [vmem:[#allocation2 + $0x142] sm:$0xff]  ;;  %v493_v8 = vld [vmem:[#allocation2 + $0x152] sm:$0xff]  ;;  %v494_v9 = vld [vmem:[#allocation2 + $0x15a] sm:$0xff] }
  0x4d   : > { %v6738_v10 = vpack.i.bf16 %v492_v7, %v491_v4  ;;  %v6742_v13 = vpack.i.bf16 %v494_v9, %v493_v8  ;;  %v495_v14 = vld [vmem:[#allocation2 + $0x16a] sm:$0xff]  ;;  %v496_v15 = vld [vmem:[#allocation2 + $0x172] sm:$0xff]  ;;  %v6775_v30 = vld [vmem:[#allocation2 + $0x60] sm:$0xff] }
  0x4e   : > { %v6744_v16 = vld [vmem:[#allocation2 + $0x18] sm:$0xff]  ;;  %v6750_v19 = vpack.i.bf16 %v496_v15, %v495_v14  ;;  %v6756_v21 = vld [vmem:[#allocation2 + $0x30] sm:$0xff]  ;;  %v6760_v25 = vld [vmem:[#allocation2 + $0x48] sm:$0xff] }
  0x4f   : > { %5069 = vrot.lane.b32.xlu1 %v6681_v17, %s6306_s8  ;;  %v6758_v22 = vld [vmem:[#allocation2 + $0x38] sm:$0xff]  ;;  %v6762_v26 = vld [vmem:[#allocation2 + $0x50] sm:$0xff]  ;;  %v6777_v31 = vld [vmem:[#allocation2 + $0x68] sm:$0xff]  ;;  %s6317_s8 = smov 40  }
  0x50   : > { %5074 = vrot.lane.b32.xlu0 %v5073_v18, %s6307_s9  ;;  %v6746_v18 = vld [vmem:[#allocation2 + $0x20] sm:$0xff]  ;;  %v6768_v27 = vpack.i.bf16 %v6758_v22, %v6756_v21  ;;  %v6773_v28 = vpack.i.bf16 %v6762_v26, %v6760_v25  ;;  %v6779_v35 = vld [vmem:[#allocation2 + $0x78] sm:$0xff]  ;;  %v6787_v38 = vpack.i.bf16 %v6777_v31, %v6775_v30  ;;  %v6795_v43 = vld [vmem:[#allocation2 + $0x90] sm:$0xff] }
  0x51   : > { %v5153_v20 = vpack.i.bf16 %v6746_v18, %v6744_v16  ;;  %v6781_v36 = vld [vmem:[#allocation2 + $0x80] sm:$0xff]  ;;  %v6797_v44 = vld [vmem:[#allocation2 + $0x98] sm:$0xff]  ;;  %v6799_v46 = vld [vmem:[#allocation2 + $0xa8] sm:$0xff] }
  0x52   : > { %v6793_v40 = vpack.i.bf16 %v6781_v36, %v6779_v35  ;;  %v6801_v47 = vld [vmem:[#allocation2 + $0xb0] sm:$0xff]  ;;  %v6807_v51 = vpack.i.bf16 %v6797_v44, %v6795_v43  ;;  %v6815_v53 = vld [vmem:[#allocation2 + $0xc0] sm:$0xff]  ;;  %v6817_v54 = vld [vmem:[#allocation2 + $0xc8] sm:$0xff] }
  0x53   : > { %5079 = vrot.lane.b32.xlu1 %v6687_v23, %s6307_s9  ;;  %v6813_v52 = vpack.i.bf16 %v6801_v47, %v6799_v46  ;;  %v6819_v59 = vld [vmem:[#allocation2 + $0xd8] sm:$0xff]  ;;  %v6821_v60 = vld [vmem:[#allocation2 + $0xe0] sm:$0xff]  ;;  %v5188_v61 = vpack.i.bf16 %v6817_v54, %v6815_v53  ;;  %v6831_v4 = vld [vmem:[#allocation2 + $0xf0] sm:$0xff] }
  0x54   : > { %5084 = vrot.lane.b32.xlu0 %v6690_v24, %s6307_s9  ;;  %9138 = vst [vmem:[#allocation4_spill] sm:$0xff] %v6819_v59  ;;  %9139 = vst [vmem:[#allocation5_spill] sm:$0xff] %v6821_v60  ;;  %v5193_v1 = vpack.i.bf16 %v6821_v60, %v6819_v59  ;;  %v6833_v7 = vld [vmem:[#allocation2 + $0xf8] sm:$0xff]  ;;  %v6835_v8 = vld [vmem:[#allocation2 + $0x108] sm:$0xff] }
  0x55   : > { %9140 = vst [vmem:[#allocation6_spill] sm:$0xff] %v6831_v4  ;;  %9141 = vst [vmem:[#allocation7_spill] sm:$0xff] %v6833_v7  ;;  %v6837_v9 = vld [vmem:[#allocation2 + $0x110] sm:$0xff]  ;;  %v5198_v14 = vpack.i.bf16 %v6833_v7, %v6831_v4  ;;  %v6847_v0 = vld [vmem:[#allocation2 + $0x128] sm:$0xff] }
  0x56   : > { %9142 = vst [vmem:[#allocation8_spill] sm:$0xff] %v6835_v8  ;;  %9143 = vst [vmem:[#allocation9_spill] sm:$0xff] %v6837_v9  ;;  %v5203_v15 = vpack.i.bf16 %v6837_v9, %v6835_v8  ;;  %v6849_v59 = vld [vmem:[#allocation2 + $0x138] sm:$0xff]  ;;  %v6851_v60 = vld [vmem:[#allocation2 + $0x140] sm:$0xff] }
  0x57   : > { %5089 = vrot.lane.b32.xlu1 %v6698_v32, %s6307_s9  ;;  %9145 = vst [vmem:[#allocation11_spill] sm:$0xff] %v6849_v59  ;;  %9146 = vst [vmem:[#allocation12_spill] sm:$0xff] %v6851_v60  ;;  %v6859_v4 = vld [vmem:[#allocation2 + $0x150] sm:$0xff]  ;;  %v6861_v8 = vld [vmem:[#allocation2 + $0x158] sm:$0xff] }
  0x58   : > { %5094 = vrot.lane.b32.xlu0 %v6702_v34, %s6307_s9  ;;  %9147 = vst [vmem:[#allocation13_spill] sm:$0xff] %v6859_v4  ;;  %9148 = vst [vmem:[#allocation14_spill] sm:$0xff] %v6861_v8  ;;  %v6863_v9 = vld [vmem:[#allocation2 + $0x168] sm:$0xff]  ;;  %v6865_v7 = vld [vmem:[#allocation2 + $0x170] sm:$0xff] }
  0x59   : > { %9149 = vst [vmem:[#allocation15_spill] sm:$0xff] %v6863_v9  ;;  %9150 = vst [vmem:[#allocation16_spill] sm:$0xff] %v6865_v7 }
  0x5b   : > { %5099 = vrot.lane.b32.xlu1 %v6706_v41, %s6307_s9 }
  0x5c   : > { %5104 = vrot.lane.b32.xlu0 %v6710_v42, %s6307_s9 }
  0x5f   : > { %5109 = vrot.lane.b32.xlu1 %v6714_v48, %s6307_s9 }
  0x60   : > { %5114 = vrot.lane.b32.xlu0 %v6718_v50, %s6307_s9 }
  0x63   : > { %5119 = vrot.lane.b32.xlu1 %v6722_v55, %s6307_s9 }
  0x64   : > { %5124 = vrot.lane.b32.xlu0 %v6726_v58, %s6307_s9 }
  0x67   : > { %5129 = vrot.lane.b32.xlu1 %v6730_v2, %s6307_s9 }
  0x68   : > { %5134 = vrot.lane.b32.xlu0 %v6734_v3, %s6307_s9 }
  0x6b   : > { %5139 = vrot.lane.b32.xlu1 %v6738_v10, %s6307_s9 }
  0x6c   : > { %5144 = vrot.lane.b32.xlu0 %v6742_v13, %s6307_s9 }
  0x6f   : > { %5149 = vrot.lane.b32.xlu1 %v6750_v19, %s6307_s9 }
  0x70   : > { %5154 = vrot.lane.b32.xlu0 %v5153_v20, %s6308_s10  ;;  %v6845_v20 = vld [vmem:[#allocation2 + $0x120] sm:$0xff] }
  0x71   : > { %9144 = vst [vmem:[#allocation10_spill] sm:$0xff] %v6845_v20 }
  0x73   : > { %5159 = vrot.lane.b32.xlu1 %v6768_v27, %s6308_s10 }
  0x74   : > { %5164 = vrot.lane.b32.xlu0 %v6773_v28, %s6308_s10 }
  0x77   : > { %5169 = vrot.lane.b32.xlu1 %v6787_v38, %s6308_s10 }
  0x78   : > { %5174 = vrot.lane.b32.xlu0 %v6793_v40, %s6308_s10 }
  0x7b   : > { %5179 = vrot.lane.b32.xlu1 %v6807_v51, %s6308_s10 }
  0x7c   : > { %5184 = vrot.lane.b32.xlu0 %v6813_v52, %s6308_s10 }
  0x7f   : > { %5189 = vrot.lane.b32.xlu1 %v5188_v61, %s6308_s10  ;;  %v5208_v61 = vpack.i.bf16 %v6847_v0, %v6845_v20  ;;  %v527_v20 = vld [vmem:[#allocation2 + $0x180] sm:$0xff] }
  0x80   : > { %5194 = vrot.lane.b32.xlu0 %v5193_v1, %s6308_s10  ;;  %v5213_v1 = vpack.i.bf16 %v6851_v60, %v6849_v59  ;;  %v528_v59 = vld [vmem:[#allocation2 + $0x188] sm:$0xff] }
  0x81   : > { %v5228_v60 = vpack.i.bf16 %v528_v59, %v527_v20  ;;  %v592_v20 = vld [vmem:[#allocation2 + $0x18a] sm:$0xff] }
  0x83   : > { %5199 = vrot.lane.b32.xlu1 %v5198_v14, %s6308_s10  ;;  %v5218_v14 = vpack.i.bf16 %v6861_v8, %v6859_v4 }
  0x84   : > { %5204 = vrot.lane.b32.xlu0 %v5203_v15, %s6308_s10  ;;  %v5223_v15 = vpack.i.bf16 %v6865_v7, %v6863_v9  ;;  %v7134_v7 = vld [vmem:[#allocation2 + $0x198] sm:$0xff] }
  0x87   : > { %5209 = vrot.lane.b32.xlu1 %v5208_v61, %s6308_s10  ;;  %v6274_v61 = vld [vmem:[%s9067_s1 + $0x8] sm:$0xff]  }
  0x88   : > { %5214 = vrot.lane.b32.xlu0 %v5213_v1, %s6308_s10 }
  0x8b   : > { %5219 = vrot.lane.b32.xlu1 %v5218_v14, %s6308_s10  ;;  %v627_v14 = vld [vmem:[#allocation2 + $0x39] sm:$0xff] }
  0x8c   : > { %5224 = vrot.lane.b32.xlu0 %v5223_v15, %s6308_s10 }
  0x8f   : > { %5229 = vrot.lane.b32.xlu1 %v5228_v60, %s6308_s10 }
  0x90   : > { %5234 = vrot.lane.b32.xlu0 %v6541_v33, %s6309_s11 }
  0x93   : > { %5239 = vrot.lane.b32.xlu1 %v6539_v29, %s6309_s11  ;;  %v6894_v29 = vpop.permute.xlu0 %4994 }
  0x94   : > { %5244 = vrot.lane.b32.xlu0 %v6547_v37, %s6309_s11 }
  0x97   : > { %5249 = vrot.lane.b32.xlu1 %v6553_v39, %s6309_s11  ;;  %v559_v39 = vld [vmem:[#allocation2 + $0x181] sm:$0xff] }
  0x98   : > { %5254 = vrot.lane.b32.xlu0 %v6557_v45, %s6309_s11  ;;  %v560_v45 = vld [vmem:[#allocation2 + $0x189] sm:$0xff] }
  0x9b   : > { %5259 = vrot.lane.b32.xlu1 %v6561_v49, %s6309_s11 }
  0x9c   : > { %5264 = vrot.lane.b32.xlu0 %v6577_v56, %s6309_s11 }
  0x9f   : > { %5269 = vrot.lane.b32.xlu1 %v6581_v57, %s6309_s11  ;;  %v5308_v57 = vpack.i.bf16 %v560_v45, %v559_v39  ;;  %v6275_v39 = vld [vmem:[%s9067_s1 + $0x10] ss:$0 sps:$4 sm:$0x33]   ;;  %v629_v45 = vld [vmem:[#allocation2 + $0x51] sm:$0xff] }
  0xa0   : > { %5274 = vrot.lane.b32.xlu0 %v6585_v62, %s6309_s11 }
  0xa3   : > { %5279 = vrot.lane.b32.xlu1 %v6589_v63, %s6309_s11 }
  0xa4   : > { %5284 = vrot.lane.b32.xlu0 %v6593_v5, %s6309_s11 }
  0xa5   : > { %v6900_v33 = vpop.permute.xlu1 %5004 }
  0xa6   : > { %v6902_v37 = vpop.permute.xlu0 %4999  ;;  %v5006_v9 = vunpack.i.l.bf16 %v6900_v33 }
  0xa7   : > { %5289 = vrot.lane.b32.xlu1 %v6597_v6, %s6309_s11  ;;  %v5001_v4 = vunpack.i.l.bf16 %v6902_v37 }
  0xa8   : > { %5294 = vrot.lane.b32.xlu0 %v6673_v11, %s6309_s11 }
  0xa9   : > { %v6908_v49 = vpop.permute.xlu1 %5009 }
  0xaa   : > { %v6910_v56 = vpop.permute.xlu0 %5014 }
  0xab   : > { %5299 = vrot.lane.b32.xlu1 %v6677_v12, %s6309_s11 }
  0xac   : > { %5304 = vrot.lane.b32.xlu0 %v6681_v17, %s6309_s11 }
  0xad   : > { %v6916_v62 = vpop.permute.xlu1 %5019 }
  0xae   : > { %v6918_v63 = vpop.permute.xlu0 %5024 }
  0xaf   : > { %5309 = vrot.lane.b32.xlu1 %v5308_v57, %s6309_s11  ;;  %v2071_v57 = vsel %vm2069_vm3, %v6275_v39, 0 }
  0xb0   : > { %5314 = vrot.lane.b32.xlu0 %v6687_v23, %s6310_s12 }
  0xb1   : > { %v6923_v5 = vpop.permute.xlu1 %5029 }
  0xb2   : > { %v6925_v6 = vpop.permute.xlu0 %5034 }
  0xb3   : > { %5319 = vrot.lane.b32.xlu1 %v6690_v24, %s6310_s12 }
  0xb4   : > { %5324 = vrot.lane.b32.xlu0 %v6698_v32, %s6310_s12 }
  0xb5   : > { %v6931_v11 = vpop.permute.xlu1 %5039 }
  0xb6   : > { %v6933_v12 = vpop.permute.xlu0 %5044 }
  0xb7   : > { %5329 = vrot.lane.b32.xlu1 %v6702_v34, %s6310_s12 }
  0xb8   : > { %5334 = vrot.lane.b32.xlu0 %v6706_v41, %s6310_s12 }
  0xb9   : > { %v6939_v17 = vpop.permute.xlu1 %5049 }
  0xba   : > { %v6941_v23 = vpop.permute.xlu0 %5054 }
  0xbb   : > { %5339 = vrot.lane.b32.xlu1 %v6710_v42, %s6310_s12 }
  0xbc   : > { %5344 = vrot.lane.b32.xlu0 %v6714_v48, %s6310_s12 }
  0xbd   : > { %v6947_v59 = vpop.permute.xlu1 %5059 }
  0xbe   : > { %v6949_v60 = vpop.permute.xlu0 %5064 }
  0xbf   : > { %5349 = vrot.lane.b32.xlu1 %v6718_v50, %s6310_s12  ;;  %v6273_v50 = vld [vmem:[%s9067_s1] sm:$0xff]  }
  0xc0   : > { %5354 = vrot.lane.b32.xlu0 %v6722_v55, %s6310_s12  ;;  %v591_v55 = vld [vmem:[#allocation2 + $0x182] sm:$0xff]  ;;  %4748 = vmatprep.subr.bf16.mxu0 %v6273_v50 }
  0xc1   : > { %v6955_v34 = vpop.permute.xlu1 %5069  ;;  %4749 = vmatpush3.bf16.msra.mxu0 %v6273_v50  ;;  %v6983_v1 = vpack.i.bf16 %v592_v20, %v591_v55 }
  0xc2   : > { %v6957_v41 = vpop.permute.xlu0 %5074  ;;  %4750 = vmatprep.subr.bf16.mxu0 %v6274_v61 }
  0xc3   : > { %5359 = vrot.lane.b32.xlu1 %v6726_v58, %s6310_s12  ;;  %9154 = vst [vmem:[#allocation20_spill] sm:$0xff] %v6983_v1 }
  0xc4   : > { %5364 = vrot.lane.b32.xlu0 %v6730_v2, %s6310_s12 }
  0xc5   : > { %v6963_v42 = vpop.permute.xlu1 %5079  ;;  %4751 = vmatpush3.bf16.msra.mxu0 %v6274_v61 }
  0xc6   : > { %v6965_v48 = vpop.permute.xlu0 %5084  ;;  %4968 = vmatprep.subr.msk.bf16.mxu0 %vm2069_vm3, %v6275_v39  ;;  %v631_v39 = vld [vmem:[#allocation2 + $0x69] sm:$0xff] }
  0xc7   : > { %9151 = vst [vmem:[#allocation17_spill] sm:$0xff] %v6965_v48  ;;  %5369 = vrot.lane.b32.xlu1 %v6734_v3, %s6310_s12  ;;  %v7132_v48 = vld [vmem:[#allocation2 + $0x188] sm:$0xff] }
  0xc8   : > { %5374 = vrot.lane.b32.xlu0 %v6738_v10, %s6310_s12  ;;  %v626_v10 = vld [vmem:[#allocation2 + $0x31] sm:$0xff] }
  0xc9   : > { %v6974_v58 = vpop.permute.xlu1 %5089  ;;  %4753 = vmatpush3.bf16.msra.mxu0 %v2071_v57 }
  0xca   : > { %9152 = vst [vmem:[#allocation18_spill] sm:$0xff] %v6974_v58  ;;  %v6976_v2 = vpop.permute.xlu0 %5094  ;;  %v7125_v58 = vld [vmem:[#allocation2 + $0x172] sm:$0xff] }
  0xcb   : > { %9153 = vst [vmem:[#allocation19_spill] sm:$0xff] %v6976_v2  ;;  %5379 = vrot.lane.b32.xlu1 %v6742_v13, %s6310_s12  ;;  %v5403_v13 = vpack.i.bf16 %v627_v14, %v626_v10  ;;  %v630_v14 = vld [vmem:[#allocation2 + $0x61] sm:$0xff]  ;;  %v7117_v2 = vld [vmem:[#allocation2 + $0x152] sm:$0xff] }
  0xcc   : > { %5384 = vrot.lane.b32.xlu0 %v6750_v19, %s6310_s12  ;;  %v628_v19 = vld [vmem:[#allocation2 + $0x49] sm:$0xff] }
  0xcd   : > { %v6987_v3 = vpop.permute.xlu1 %5099  ;;  %v5408_v20 = vpack.i.bf16 %v629_v45, %v628_v19  ;;  %v633_v19 = vld [vmem:[#allocation2 + $0x81] sm:$0xff] }
  0xce   : > { %9155 = vst [vmem:[#allocation21_spill] sm:$0xff] %v6987_v3  ;;  %v6989_v15 = vpop.permute.xlu0 %5104  ;;  %v7115_v3 = vld [vmem:[#allocation2 + $0x171] sm:$0xff] }
  0xcf   : > { %9156 = vst [vmem:[#allocation22_spill] sm:$0xff] %v6989_v15  ;;  %5389 = vrot.lane.b32.xlu1 %v6983_v1, %s6310_s12  ;;  %v665_v1 = vld [vmem:[#allocation2 + $0x82] sm:$0xff] }
  0xd0   : > { %5394 = vrot.lane.b32.xlu0 %v6768_v27, %s6311_s19  ;;  %v7113_v15 = vld [vmem:[#allocation2 + $0x169] sm:$0xff] }
  0xd1   : > { %v7000_v50 = vpop.permute.xlu1 %5109 }
  0xd2   : > { %9157 = vst [vmem:[#allocation23_spill] sm:$0xff] %v7000_v50  ;;  %v7002_v55 = vpop.permute.xlu0 %5114  ;;  %v7101_v50 = vld [vmem:[#allocation2 + $0x168] sm:$0xff] }
  0xd3   : > { %9158 = vst [vmem:[#allocation24_spill] sm:$0xff] %v7002_v55  ;;  %5399 = vrot.lane.b32.xlu1 %v6773_v28, %s6311_s19  ;;  %v5433_v28 = vpack.i.bf16 %v631_v39, %v630_v14  ;;  %v619_v55 = vld [vmem:[#allocation2 + $0x158] sm:$0xff] }
  0xd4   : > { %5404 = vrot.lane.b32.xlu0 %v5403_v13, %s6312_s20  ;;  %v632_v13 = vld [vmem:[#allocation2 + $0x79] sm:$0xff] }
  0xd5   : > { %v7007_v27 = vpop.permute.xlu1 %5119 }
  0xd6   : > { %9159 = vst [vmem:[#allocation25_spill] sm:$0xff] %v7007_v27  ;;  %v7009_v61 = vpop.permute.xlu0 %5124 }
  0xd7   : > { %9160 = vst [vmem:[#allocation26_spill] sm:$0xff] %v7009_v61  ;;  %5409 = vrot.lane.b32.xlu1 %v5408_v20, %s6312_s20  ;;  %v662_v20 = vld [vmem:[#allocation2 + $0x62] sm:$0xff]  ;;  %v663_v61 = vld [vmem:[#allocation2 + $0x6a] sm:$0xff] }
  0xd8   : > { %5414 = vrot.lane.b32.xlu0 %v6690_v24, %s6313_s21 }
  0xd9   : > { %v7014_v10 = vpop.permute.xlu1 %5129 }
  0xda   : > { %9161 = vst [vmem:[#allocation27_spill] sm:$0xff] %v7014_v10  ;;  %v7016_v57 = vpop.permute.xlu0 %5134  ;;  %v5438_v10 = vpack.i.bf16 %v633_v19, %v632_v13  ;;  %v637_v13 = vld [vmem:[#allocation2 + $0xb1] sm:$0xff] }
  0xdb   : > { %9162 = vst [vmem:[#allocation28_spill] sm:$0xff] %v7016_v57  ;;  %5419 = vrot.lane.b32.xlu1 %v6698_v32, %s6313_s21  ;;  %v5443_v57 = vpack.i.bf16 %v663_v61, %v662_v20  ;;  %v664_v32 = vld [vmem:[#allocation2 + $0x7a] sm:$0xff] }
  0xdc   : > { %5424 = vrot.lane.b32.xlu0 %v6787_v38, %s6311_s19  ;;  %v5448_v14 = vpack.i.bf16 %v665_v1, %v664_v32  ;;  %v667_v1 = vld [vmem:[#allocation2 + $0x9a] sm:$0xff] }
  0xdd   : > { %v7022_v45 = vpop.permute.xlu1 %5139 }
  0xde   : > { %9163 = vst [vmem:[#allocation29_spill] sm:$0xff] %v7022_v45  ;;  %v7024_v24 = vpop.permute.xlu0 %5144  ;;  %v635_v45 = vld [vmem:[#allocation2 + $0x99] sm:$0xff] }
  0xdf   : > { %9164 = vst [vmem:[#allocation30_spill] sm:$0xff] %v7024_v24  ;;  %5429 = vrot.lane.b32.xlu1 %v6793_v40, %s6311_s19  ;;  %v634_v24 = vld [vmem:[#allocation2 + $0x91] sm:$0xff] }
  0xe0   : > { %5434 = vrot.lane.b32.xlu0 %v5433_v28, %s6312_s20  ;;  %v5463_v61 = vpack.i.bf16 %v635_v45, %v634_v24  ;;  %v636_v28 = vld [vmem:[#allocation2 + $0xa9] sm:$0xff] }
  0xe1   : > { %v7029_v27 = vpop.permute.xlu1 %5149  ;;  %v607_v45 = vld [vmem:[#allocation2 + $0xc8] sm:$0xff] }
  0xe2   : > { %9165 = vst [vmem:[#allocation31_spill] sm:$0xff] %v7029_v27  ;;  %v7031_v38 = vpop.permute.xlu0 %5154 }
  0xe3   : > { %9166 = vst [vmem:[#allocation32_spill] sm:$0xff] %v7031_v38  ;;  %5439 = vrot.lane.b32.xlu1 %v5438_v10, %s6312_s20  ;;  %v666_v10 = vld [vmem:[#allocation2 + $0x92] sm:$0xff] }
  0xe4   : > { %5444 = vrot.lane.b32.xlu0 %v5443_v57, %s6313_s21  ;;  %v5468_v57 = vpack.i.bf16 %v637_v13, %v636_v28  ;;  %v5473_v32 = vpack.i.bf16 %v667_v1, %v666_v10  ;;  %v608_v38 = vld [vmem:[#allocation2 + $0xd8] sm:$0xff]  ;;  %v639_v13 = vld [vmem:[#allocation2 + $0xc9] sm:$0xff] }
  0xe5   : > { %v7035_v39 = vpop.permute.xlu1 %5159 }
  0xe6   : > { %9167 = vst [vmem:[#allocation33_spill] sm:$0xff] %v7035_v39  ;;  %v7037_v40 = vpop.permute.xlu0 %5164 }
  0xe7   : > { %9168 = vst [vmem:[#allocation34_spill] sm:$0xff] %v7037_v40  ;;  %5449 = vrot.lane.b32.xlu1 %v5448_v14, %s6313_s21  ;;  %v668_v14 = vld [vmem:[#allocation2 + $0xaa] sm:$0xff]  ;;  %v669_v40 = vld [vmem:[#allocation2 + $0xb2] sm:$0xff] }
  0xe8   : > { %5454 = vrot.lane.b32.xlu0 %v6807_v51, %s6311_s19  ;;  %v606_v51 = vld [vmem:[#allocation2 + $0xc0] sm:$0xff] }
  0xe9   : > { %v7042_v19 = vpop.permute.xlu1 %5169 }
  0xea   : > { %9169 = vst [vmem:[#allocation35_spill] sm:$0xff] %v7042_v19  ;;  %v7044_v20 = vpop.permute.xlu0 %5174  ;;  %v5478_v19 = vpack.i.bf16 %v669_v40, %v668_v14  ;;  %v671_v14 = vld [vmem:[#allocation2 + $0xca] sm:$0xff] }
  0xeb   : > { %9170 = vst [vmem:[#allocation36_spill] sm:$0xff] %v7044_v20  ;;  %5459 = vrot.lane.b32.xlu1 %v6813_v52, %s6311_s19  ;;  %v5483_v20 = vpack.i.bf16 %v607_v45, %v606_v51  ;;  %v609_v52 = vld [vmem:[#allocation2 + $0xe0] sm:$0xff] }
  0xec   : > { %5464 = vrot.lane.b32.xlu0 %v5463_v61, %s6312_s20  ;;  %v638_v61 = vld [vmem:[#allocation2 + $0xc1] sm:$0xff]  ;;  %v5488_v1 = vpack.i.bf16 %v609_v52, %v608_v38  ;;  %v611_v52 = vld [vmem:[#allocation2 + $0xf8] sm:$0xff] }
  0xed   : > { %v7049_v39 = vpop.permute.xlu1 %5179 }
  0xee   : > { %9171 = vst [vmem:[#allocation37_spill] sm:$0xff] %v7049_v39  ;;  %v7051_v24 = vpop.permute.xlu0 %5184  ;;  %v640_v39 = vld [vmem:[#allocation2 + $0xd9] sm:$0xff] }
  0xef   : > { %9172 = vst [vmem:[#allocation38_spill] sm:$0xff] %v7051_v24  ;;  %5469 = vrot.lane.b32.xlu1 %v5468_v57, %s6312_s20  ;;  %v5493_v24 = vpack.i.bf16 %v639_v13, %v638_v61  ;;  %v641_v57 = vld [vmem:[#allocation2 + $0xe1] sm:$0xff] }
  0xf0   : > { %5474 = vrot.lane.b32.xlu0 %v5473_v32, %s6313_s21  ;;  %v670_v32 = vld [vmem:[#allocation2 + $0xc2] sm:$0xff]  ;;  %v5498_v45 = vpack.i.bf16 %v641_v57, %v640_v39  ;;  %v643_v57 = vld [vmem:[#allocation2 + $0xf9] sm:$0xff] }
  0xf1   : > { %v7055_v28 = vpop.permute.xlu1 %5189 }
  0xf2   : > { %9173 = vst [vmem:[#allocation39_spill] sm:$0xff] %v7055_v28  ;;  %v7057_v10 = vpop.permute.xlu0 %5194  ;;  %v672_v28 = vld [vmem:[#allocation2 + $0xda] sm:$0xff] }
  0xf3   : > { %9174 = vst [vmem:[#allocation40_spill] sm:$0xff] %v7057_v10  ;;  %5479 = vrot.lane.b32.xlu1 %v5478_v19, %s6313_s21  ;;  %v5503_v10 = vpack.i.bf16 %v671_v14, %v670_v32  ;;  %v673_v19 = vld [vmem:[#allocation2 + $0xe2] sm:$0xff] }
  0xf4   : > { %5484 = vrot.lane.b32.xlu0 %v5483_v20, %s6311_s19  ;;  %v610_v20 = vld [vmem:[#allocation2 + $0xf0] sm:$0xff]  ;;  %v5508_v13 = vpack.i.bf16 %v673_v19, %v672_v28  ;;  %v675_v19 = vld [vmem:[#allocation2 + $0xfa] sm:$0xff] }
  0xf5   : > { %v7061_v40 = vpop.permute.xlu1 %5199 }
  0xf6   : > { %9175 = vst [vmem:[#allocation41_spill] sm:$0xff] %v7061_v40  ;;  %v7063_v51 = vpop.permute.xlu0 %5204  ;;  %v612_v40 = vld [vmem:[#allocation2 + $0x108] sm:$0xff] }
  0xf7   : > { %9176 = vst [vmem:[#allocation42_spill] sm:$0xff] %v7063_v51  ;;  %5489 = vrot.lane.b32.xlu1 %v5488_v1, %s6311_s19  ;;  %v5513_v51 = vpack.i.bf16 %v611_v52, %v610_v20  ;;  %v613_v1 = vld [vmem:[#allocation2 + $0x110] sm:$0xff] }
  0xf8   : > { %5494 = vrot.lane.b32.xlu0 %v5493_v24, %s6312_s20  ;;  %v642_v24 = vld [vmem:[#allocation2 + $0xf1] sm:$0xff]  ;;  %v5518_v14 = vpack.i.bf16 %v613_v1, %v612_v40  ;;  %v615_v1 = vld [vmem:[#allocation2 + $0x128] sm:$0xff] }
  0xf9   : > { %v7067_v38 = vpop.permute.xlu1 %5209 }
  0xfa   : > { %9177 = vst [vmem:[#allocation43_spill] sm:$0xff] %v7067_v38  ;;  %v7069_v61 = vpop.permute.xlu0 %5214  ;;  %v5523_v38 = vpack.i.bf16 %v643_v57, %v642_v24 }
  0xfb   : > { %9178 = vst [vmem:[#allocation44_spill] sm:$0xff] %v7069_v61  ;;  %5499 = vrot.lane.b32.xlu1 %v5498_v45, %s6312_s20  ;;  %v644_v61 = vld [vmem:[#allocation2 + $0x109] sm:$0xff]  ;;  %v645_v45 = vld [vmem:[#allocation2 + $0x111] sm:$0xff] }
  0xfc   : > { %5504 = vrot.lane.b32.xlu0 %v5503_v10, %s6313_s21  ;;  %v674_v10 = vld [vmem:[#allocation2 + $0xf2] sm:$0xff]  ;;  %v5528_v52 = vpack.i.bf16 %v645_v45, %v644_v61  ;;  %v647_v45 = vld [vmem:[#allocation2 + $0x129] sm:$0xff] }
  0xfd   : > { %v7073_v39 = vpop.permute.xlu1 %5219 }
  0xfe   : > { %9179 = vst [vmem:[#allocation45_spill] sm:$0xff] %v7073_v39  ;;  %v7075_v32 = vpop.permute.xlu0 %5224  ;;  %v676_v39 = vld [vmem:[#allocation2 + $0x10a] sm:$0xff] }
  0xff   : > { %9180 = vst [vmem:[#allocation46_spill] sm:$0xff] %v7075_v32  ;;  %5509 = vrot.lane.b32.xlu1 %v5508_v13, %s6313_s21  ;;  %v5533_v32 = vpack.i.bf16 %v675_v19, %v674_v10  ;;  %v677_v13 = vld [vmem:[#allocation2 + $0x112] sm:$0xff] }
 0x100   : > { %5514 = vrot.lane.b32.xlu0 %v5513_v51, %s6311_s19  ;;  %v614_v51 = vld [vmem:[#allocation2 + $0x120] sm:$0xff]  ;;  %v5538_v57 = vpack.i.bf16 %v677_v13, %v676_v39 }
 0x101   : > { %v7079_v28 = vpop.permute.xlu1 %5229  ;;  %v678_v39 = vld [vmem:[#allocation2 + $0x122] sm:$0xff] }
 0x102   : > { %9181 = vst [vmem:[#allocation47_spill] sm:$0xff] %v7079_v28  ;;  %v7081_v20 = vpop.permute.xlu0 %5234  ;;  %v616_v28 = vld [vmem:[#allocation2 + $0x138] sm:$0xff] }
 0x103   : > { %9182 = vst [vmem:[#allocation48_spill] sm:$0xff] %v7081_v20  ;;  %5519 = vrot.lane.b32.xlu1 %v5518_v14, %s6311_s19  ;;  %v5543_v20 = vpack.i.bf16 %v615_v1, %v614_v51  ;;  %v617_v14 = vld [vmem:[#allocation2 + $0x140] sm:$0xff] }
 0x104   : > { %5524 = vrot.lane.b32.xlu0 %v5523_v38, %s6312_s20  ;;  %v646_v38 = vld [vmem:[#allocation2 + $0x121] sm:$0xff]  ;;  %v5548_v19 = vpack.i.bf16 %v617_v14, %v616_v28  ;;  %v7106_v14 = vld [vmem:[#allocation2 + $0x151] sm:$0xff] }
 0x105   : > { %v7085_v40 = vpop.permute.xlu1 %5239  ;;  %v680_v51 = vld [vmem:[#allocation2 + $0x13a] sm:$0xff]  ;;  %v681_v1 = vld [vmem:[#allocation2 + $0x142] sm:$0xff] }
 0x106   : > { %9183 = vst [vmem:[#allocation49_spill] sm:$0xff] %v7085_v40  ;;  %v7087_v24 = vpop.permute.xlu0 %5244  ;;  %v648_v40 = vld [vmem:[#allocation2 + $0x139] sm:$0xff] }
 0x107   : > { %9184 = vst [vmem:[#allocation50_spill] sm:$0xff] %v7087_v24  ;;  %5529 = vrot.lane.b32.xlu1 %v5528_v52, %s6312_s20  ;;  %v5553_v24 = vpack.i.bf16 %v647_v45, %v646_v38  ;;  %v649_v52 = vld [vmem:[#allocation2 + $0x141] sm:$0xff]  ;;  %v7108_v38 = vld [vmem:[#allocation2 + $0x159] sm:$0xff]  ;;  %v4997_v45 = vunpack.i.h.bf16 %v6894_v29 }
 0x108   : > { %5534 = vrot.lane.b32.xlu0 %v5533_v32, %s6313_s21  ;;  %v679_v32 = vld [vmem:[#allocation2 + $0x12a] sm:$0xff]  ;;  %v5558_v28 = vpack.i.bf16 %v649_v52, %v648_v40 }
 0x109   : > { %v7091_v61 = vpop.permute.xlu1 %5249  ;;  %v7123_v52 = vld [vmem:[#allocation2 + $0x16a] sm:$0xff] }
 0x10a   : > { %9185 = vst [vmem:[#allocation51_spill] sm:$0xff] %v7091_v61  ;;  %v7093_v10 = vpop.permute.xlu0 %5254  ;;  %v618_v61 = vld [vmem:[#allocation2 + $0x150] sm:$0xff] }
 0x10b   : > { %9186 = vst [vmem:[#allocation52_spill] sm:$0xff] %v7093_v10  ;;  %5539 = vrot.lane.b32.xlu1 %v5538_v57, %s6313_s21  ;;  %v402_v10 = vld [vmem:[#allocation2 + $0x8] sm:$0xff]  ;;  %v401_v57 = vld [vmem:[#allocation2] sm:$0xff] }
 0x10c   : > { %5544 = vrot.lane.b32.xlu0 %v5543_v20, %s6311_s19  ;;  %v7104_v20 = vld [vmem:[#allocation2 + $0x170] sm:$0xff] }
 0x10d   : > { %v7097_v13 = vpop.permute.xlu1 %5259  ;;  %v5578_v8 = vpack.i.bf16 %v7104_v20, %v7101_v50  ;;  %v5588_v50 = vpack.i.bf16 %v7115_v3, %v7113_v15  ;;  %v5002_v20 = vunpack.i.h.bf16 %v6902_v37  ;;  %v5011_v3 = vunpack.i.l.bf16 %v6908_v49 }
 0x10e   : > { %9187 = vst [vmem:[#allocation53_spill] sm:$0xff] %v7097_v13  ;;  %v7099_v27 = vpop.permute.xlu0 %5264  ;;  %v4996_v13 = vunpack.i.l.bf16 %v6894_v29  ;;  %v5021_v37 = vunpack.i.l.bf16 %v6916_v62 }
 0x10f   : > { %9188 = vst [vmem:[#allocation54_spill] sm:$0xff] %v7099_v27  ;;  %5549 = vrot.lane.b32.xlu1 %v5548_v19, %s6311_s19  ;;  %v5563_v27 = vpack.i.bf16 %v679_v32, %v678_v39  ;;  %v7121_v19 = vld [vmem:[#allocation2 + $0x15a] sm:$0xff]  ;;  %v5573_v39 = vpack.i.bf16 %v619_v55, %v618_v61  ;;  %v7147_v61 = vld [vmem:[#allocation2 + $0x189] sm:$0xff] }
 0x110   : > { %5554 = vrot.lane.b32.xlu0 %v5553_v24, %s6312_s20  ;;  %v5568_v24 = vpack.i.bf16 %v681_v1, %v680_v51  ;;  %v7130_v32 = vld [vmem:[#allocation2 + $0x180] sm:$0xff]  ;;  %v7150_v1 = vsel %vm280_vm0, %v402_v10, %v4997_v45 }
 0x111   : > { %v7119_v40 = vpop.permute.xlu1 %5269  ;;  %v7143_v51 = vld [vmem:[#allocation2 + $0x1a0] sm:$0xff] }
 0x112   : > { %9189 = vst [vmem:[#allocation55_spill] sm:$0xff] %v7119_v40  ;;  %v7128_v29 = vpop.permute.xlu0 %5274  ;;  %v5007_v40 = vunpack.i.h.bf16 %v6900_v33  ;;  %v7145_v55 = vld [vmem:[#allocation2 + $0x181] sm:$0xff]  ;;  %v7153_v33 = vsel %vm280_vm0, %v401_v57, %v4996_v13  ;;  %v7179_v45 = vld [vmem:[#allocation2 + $0x199] sm:$0xff]  ;;  %v5022_v57 = vunpack.i.h.bf16 %v6916_v62  ;;  %v5032_v62 = vunpack.i.h.bf16 %v6923_v5 }
 0x113   : > { %9190 = vst [vmem:[#allocation56_spill] sm:$0xff] %v7128_v29  ;;  %5559 = vrot.lane.b32.xlu1 %v5558_v28, %s6312_s20  ;;  %v5583_v29 = vpack.i.bf16 %v7108_v38, %v7106_v14  ;;  %v5012_v14 = vunpack.i.h.bf16 %v6908_v49  ;;  %v7181_v10 = vld [vmem:[#allocation2 + $0x1a1] sm:$0xff]  ;;  %v5016_v49 = vunpack.i.l.bf16 %v6910_v56  ;;  %v5027_v28 = vunpack.i.h.bf16 %v6918_v63 }
 0x114   : > { %5564 = vrot.lane.b32.xlu0 %v5563_v27, %s6313_s21  ;;  %v7170_v27 = vsel %vm280_vm0, %v6756_v21, %v5006_v9  ;;  %v7185_v13 = vsel %vm280_vm0, %v6758_v22, %v5007_v40  ;;  %v7189_v21 = vsel %vm280_vm0, %v6744_v16, %v5001_v4  ;;  %v5017_v9 = vunpack.i.h.bf16 %v6910_v56  ;;  %v7199_v22 = vld [vmem:[#allocation2 + $0x19a] sm:$0xff]  ;;  %v7201_v16 = vld [vmem:[#allocation2 + $0x1a2] sm:$0xff] }
 0x115   : > { %v7162_v38 = vpop.permute.xlu1 %5279  ;;  %v7205_v4 = vsel %vm280_vm0, %v6746_v18, %v5002_v20  ;;  %v7209_v56 = vsel %vm280_vm0, %v6762_v26, %v5012_v14  ;;  %v5037_v18 = vunpack.i.h.bf16 %v6925_v6  ;;  %v5036_v20 = vunpack.i.l.bf16 %v6925_v6 }
 0x116   : > { %9191 = vst [vmem:[#allocation57_spill] sm:$0xff] %v7162_v38  ;;  %v7173_v15 = vpop.permute.xlu0 %5284  ;;  %v7227_v26 = vsel %vm280_vm0, %v6777_v31, %v5017_v9  ;;  %v7231_v14 = vsel %vm280_vm0, %v6775_v30, %v5016_v49  ;;  %v7243_v6 = vsel %vm280_vm0, %v6779_v35, %v5021_v37  ;;  %v7247_v31 = vsel %vm280_vm0, %v6797_v44, %v5027_v28  ;;  %v9194_v28 = vld [vmem:[#allocation5_spill] sm:$0xff] }
 0x117   : > { %9192 = vst [vmem:[#allocation58_spill] sm:$0xff] %v7173_v15  ;;  %5569 = vrot.lane.b32.xlu1 %v5568_v24, %s6313_s21  ;;  %v5026_v15 = vunpack.i.l.bf16 %v6918_v63  ;;  %v7218_v24 = vsel %vm280_vm0, %v6760_v25, %v5011_v3  ;;  %v5042_v63 = vunpack.i.h.bf16 %v6931_v11  ;;  %v5047_v3 = vunpack.i.h.bf16 %v6933_v12  ;;  %v9216_v25 = vld [vmem:[#allocation22_spill] sm:$0xff] }
 0x118   : > { %5574 = vrot.lane.b32.xlu0 %v5573_v39, %s6311_s19  ;;  %v5031_v39 = vunpack.i.l.bf16 %v6923_v5  ;;  %v7239_v5 = vsel %vm280_vm0, %v6781_v36, %v5022_v57  ;;  %v5041_v36 = vunpack.i.l.bf16 %v6931_v11  ;;  %v5046_v35 = vunpack.i.l.bf16 %v6933_v12 }
 0x119   : > { %v7212_v40 = vpop.permute.xlu1 %5289  ;;  %v7251_v30 = vsel %vm280_vm0, %v6795_v43, %v5026_v15  ;;  %v7269_v43 = vsel %vm280_vm0, %v6817_v54, %v5037_v18  ;;  %v5052_v11 = vunpack.i.h.bf16 %v6939_v17  ;;  %v7280_v12 = vsel %vm280_vm0, %v9194_v28, %v5042_v63 }
 0x11a   : > { %9193 = vst [vmem:[#allocation59_spill] sm:$0xff] %v7212_v40  ;;  %v7223_v38 = vpop.permute.xlu0 %5294  ;;  %v7265_v44 = vsel %vm280_vm0, %v6799_v46, %v5031_v39  ;;  %v5051_v15 = vunpack.i.l.bf16 %v6939_v17  ;;  %v5057_v46 = vunpack.i.h.bf16 %v6941_v23  ;;  %v5056_v57 = vunpack.i.l.bf16 %v6941_v23  ;;  %v9196_v17 = vld [vmem:[#allocation4_spill] sm:$0xff]  ;;  %v9197_v23 = vld [vmem:[#allocation7_spill] sm:$0xff]  ;;  %v9198_v39 = vld [vmem:[#allocation6_spill] sm:$0xff] }
 0x11b   : > { %5579 = vrot.lane.b32.xlu1 %v5578_v8, %s6311_s19  ;;  %v7256_v8 = vsel %vm280_vm0, %v6801_v47, %v5032_v62  ;;  %v7273_v47 = vsel %vm280_vm0, %v6815_v53, %v5036_v20  ;;  %v5062_v54 = vunpack.i.h.bf16 %v6947_v59  ;;  %v5061_v53 = vunpack.i.l.bf16 %v6947_v59  ;;  %v9199_v20 = vld [vmem:[#allocation9_spill] sm:$0xff] }
 0x11c   : > { %5584 = vrot.lane.b32.xlu0 %v5583_v29, %s6312_s20  ;;  %v5067_v9 = vunpack.i.h.bf16 %v6949_v60  ;;  %v5066_v49 = vunpack.i.l.bf16 %v6949_v60  ;;  %v9195_v62 = vpack.i.bf16 %v7121_v19, %v7117_v2  ;;  %v7296_v63 = vsel %vm280_vm0, %v9196_v17, %v5041_v36 }
 0x11d   : > { %v7261_v37 = vpop.permute.xlu1 %5299  ;;  %v7304_v59 = vsel %vm280_vm0, %v9198_v39, %v5046_v35  ;;  %v5072_v18 = vunpack.i.h.bf16 %v6955_v34  ;;  %v7311_v2 = vsel %vm280_vm0, %v9199_v20, %v5052_v11  ;;  %v5071_v19 = vunpack.i.l.bf16 %v6955_v34  ;;  %v9204_v39 = vld [vmem:[#allocation12_spill] sm:$0xff] }
 0x11e   : > { %v7276_v29 = vpop.permute.xlu0 %5304  ;;  %v5077_v36 = vunpack.i.h.bf16 %v6957_v41  ;;  %v5076_v28 = vunpack.i.l.bf16 %v6957_v41  ;;  %v7324_v17 = vsel %vm280_vm0, %v6847_v0, %v5057_v46  ;;  %v5081_v34 = vunpack.i.l.bf16 %v6963_v42  ;;  %v9206_v0 = vld [vmem:[#allocation14_spill] sm:$0xff] }
 0x11f   : > { %5589 = vrot.lane.b32.xlu1 %v5588_v50, %s6312_s20  ;;  %v7300_v50 = vsel %vm280_vm0, %v9197_v23, %v5047_v3  ;;  %v9202_v23 = vld [vmem:[#allocation10_spill] sm:$0xff]  ;;  %v9203_v41 = vpack.i.bf16 %v7125_v58, %v7123_v52  ;;  %v7337_v20 = vsel %vm280_vm0, %v9204_v39, %v5062_v54  ;;  %v7345_v46 = vsel %vm280_vm0, %v9206_v0, %v5067_v9  ;;  %v9209_v52 = vld [vmem:[#allocation16_spill] sm:$0xff]  ;;  %v9211_v0 = vld [vmem:[#allocation15_spill] sm:$0xff] }
 0x120   : > { %5594 = vrot.lane.b32.xlu0 %v9195_v62, %s6313_s21  ;;  %v9200_v62 = vld [vmem:[#allocation8_spill] sm:$0xff]  ;;  %v7328_v11 = vsel %vm280_vm0, %v9202_v23, %v5056_v57  ;;  %v9207_v57 = vld [vmem:[#allocation13_spill] sm:$0xff]  ;;  %v9208_v58 = vpack.i.bf16 %v7132_v48, %v7130_v32  ;;  %v7357_v54 = vsel %vm280_vm0, %v9209_v52, %v5072_v18  ;;  %v7370_v48 = vsel %vm1746_vm2, %v7150_v1, %v5077_v36  ;;  %v9212_v18 = vld [vmem:[#allocation18_spill] sm:$0xff] }
 0x121   : > { %v7307_v60 = vpop.permute.xlu1 %5309  ;;  %v7320_v35 = vsel %vm280_vm0, %v9200_v62, %v5051_v15  ;;  %v9205_v15 = vld [vmem:[#allocation11_spill] sm:$0xff]  ;;  %v7349_v23 = vsel %vm280_vm0, %v9207_v57, %v5066_v49  ;;  %v7366_v49 = vsel %vm280_vm0, %v9211_v0, %v5071_v19  ;;  %v7374_v32 = vsel %vm1746_vm2, %v7153_v33, %v5076_v28  ;;  %v9215_v36 = vld [vmem:[#allocation21_spill] sm:$0xff] }
 0x122   : > { %v7316_v3 = vpop.permute.xlu0 %5314  ;;  %9201 = vst [vmem:[#allocation5_spill] sm:$0xff] %v7320_v35  ;;  %v7341_v62 = vsel %vm280_vm0, %v9205_v15, %v5061_v53  ;;  %v5082_v53 = vunpack.i.h.bf16 %v6963_v42  ;;  %v5092_v42 = vunpack.i.h.bf16 %v9212_v18  ;;  %v5091_v52 = vunpack.i.l.bf16 %v9212_v18  ;;  %v9213_v19 = vld [vmem:[#allocation19_spill] sm:$0xff] }
 0x123   : > { %5599 = vrot.lane.b32.xlu1 %v9203_v41, %s6313_s21  ;;  %v9210_v41 = vld [vmem:[#allocation17_spill] sm:$0xff]  ;;  %v9214_v1 = vpack.i.bf16 %v7143_v51, %v7134_v7  ;;  %v5097_v33 = vunpack.i.h.bf16 %v9213_v19  ;;  %v5102_v28 = vunpack.i.h.bf16 %v9215_v36  ;;  %v5101_v0 = vunpack.i.l.bf16 %v9215_v36 }
 0x124   : > { %5604 = vrot.lane.b32.xlu0 %v9208_v58, %s6311_s19  ;;  %v5087_v39 = vunpack.i.h.bf16 %v9210_v41  ;;  %v5086_v9 = vunpack.i.l.bf16 %v9210_v41  ;;  %v7381_v58 = vsel %vm1746_vm2, %v7189_v21, %v5081_v34  ;;  %v5096_v41 = vunpack.i.l.bf16 %v9213_v19 }
 0x125   : > { %v7362_v15 = vpop.permute.xlu1 %5319  ;;  %v5106_v40 = vunpack.i.l.bf16 %v9216_v25  ;;  %v9217_v21 = vpack.i.bf16 %v7147_v61, %v7145_v55  ;;  %v9218_v34 = vmov 0.0   ;;  %v7435_v7 = vsel %vm1746_vm2, %v7205_v4, %v5082_v53  ;;  %v9220_v53 = vld [vmem:[#allocation24_spill] sm:$0xff] }
 0x126   : > { %v7377_v57 = vpop.permute.xlu0 %5324  ;;  %2269 = vst.msk [vmem:[#allocation3 + $0x10] sm:$0x3] %vm2268_vm4, %v9218_v34  ;;  %2272 = vst.msk [vmem:[#allocation3 + $0x28] sm:$0x3] %vm2268_vm4, %v9218_v34  ;;  %v7439_v51 = vsel %vm1746_vm2, %v7185_v13, %v5087_v39  ;;  %v7443_v55 = vsel %vm1746_vm2, %v7170_v27, %v5086_v9  ;;  %v5107_v61 = vunpack.i.h.bf16 %v9216_v25  ;;  %v7450_v19 = vsel %vm1746_vm2, %v7209_v56, %v5092_v42  ;;  %v9221_v56 = vld [vmem:[#allocation25_spill] sm:$0xff] }
 0x127   : > { %5609 = vrot.lane.b32.xlu1 %v9214_v1, %s6311_s19  ;;  %2275 = vst.msk [vmem:[#allocation3 + $0x40] sm:$0x3] %vm2268_vm4, %v9218_v34  ;;  %2278 = vst.msk [vmem:[#allocation3 + $0x58] sm:$0x3] %vm2268_vm4, %v9218_v34  ;;  %v9219_v1 = vld [vmem:[#allocation23_spill] sm:$0xff]  ;;  %v7459_v27 = vsel %vm1746_vm2, %v7218_v24, %v5091_v52  ;;  %v7463_v25 = vsel %vm1746_vm2, %v7231_v14, %v5096_v41  ;;  %v5117_v39 = vunpack.i.h.bf16 %v9220_v53  ;;  %v5122_v9 = vunpack.i.h.bf16 %v9221_v56 }
 0x128   : > { %5614 = vrot.lane.b32.xlu0 %v9217_v21, %s6312_s20  ;;  %2281 = vst.msk [vmem:[#allocation3 + $0x70] sm:$0x3] %vm2268_vm4, %v9218_v34  ;;  %2284 = vst.msk [vmem:[#allocation3 + $0x88] sm:$0x3] %vm2268_vm4, %v9218_v34  ;;  %v5112_v36 = vunpack.i.h.bf16 %v9219_v1  ;;  %v5111_v4 = vunpack.i.l.bf16 %v9219_v1  ;;  %v5116_v21 = vunpack.i.l.bf16 %v9220_v53  ;;  %v9222_v42 = vpack.i.bf16 %v7181_v10, %v7179_v45  ;;  %v9223_v10 = vld [vmem:[#allocation20_spill] sm:$0xff] }
 0x129   : > { %2287 = vst.msk [vmem:[#allocation3 + $0xa0] sm:$0x3] %vm2268_vm4, %v9218_v34  ;;  %2290 = vst.msk [vmem:[#allocation3 + $0xb8] sm:$0x3] %vm2268_vm4, %v9218_v34  ;;  %v7446_v18 = vpop.permute.xlu1 %5329  ;;  %v7477_v24 = vsel %vm1746_vm2, %v7239_v5, %v5102_v28  ;;  %v7481_v14 = vsel %vm1746_vm2, %v7243_v6, %v5101_v0  ;;  %v7485_v52 = vsel %vm1746_vm2, %v7251_v30, %v5106_v40  ;;  %v9224_v5 = vld [vmem:[#allocation26_spill] sm:$0xff]  ;;  %v9225_v0 = vld [vmem:[#allocation28_spill] sm:$0xff] }
 0x12a   : > { %2293 = vst.msk [vmem:[#allocation3 + $0xd0] sm:$0x3] %vm2268_vm4, %v9218_v34  ;;  %2296 = vst.msk [vmem:[#allocation3 + $0xe8] sm:$0x3] %vm2268_vm4, %v9218_v34  ;;  %v7455_v13 = vpop.permute.xlu0 %5334  ;;  %v7491_v45 = vsel %vm1746_vm2, %v7247_v31, %v5107_v61  ;;  %v5127_v41 = vunpack.i.h.bf16 %v9224_v5  ;;  %v2386_v28 = vld [vmem:[#allocation3 + $0x1] sm:$0xff]  ;;  %v7500_v40 = vsel %vm1746_vm2, %v7256_v8, %v5112_v36  ;;  %v7504_v30 = vsel %vm1746_vm2, %v7265_v44, %v5111_v4  ;;  %v9226_v44 = vld [vmem:[#allocation29_spill] sm:$0xff] }
 0x12b   : > { %2299 = vst.msk [vmem:[#allocation3 + $0x100] sm:$0x3] %vm2268_vm4, %v9218_v34  ;;  %2302 = vst.msk [vmem:[#allocation3 + $0x118] sm:$0x3] %vm2268_vm4, %v9218_v34  ;;  %5619 = vrot.lane.b32.xlu1 %v9222_v42, %s6312_s20  ;;  %v7508_v31 = vsel %vm1746_vm2, %v7273_v47, %v5116_v21  ;;  %v5136_v61 = vunpack.i.l.bf16 %v9225_v0  ;;  %v7515_v53 = vsel %vm1746_vm2, %v7269_v43, %v5117_v39  ;;  %v5137_v36 = vunpack.i.h.bf16 %v9225_v0  ;;  %v9228_v42 = vld [vmem:[#allocation30_spill] sm:$0xff] }
 0x12c   : > { %2305 = vst.msk [vmem:[#allocation3 + $0x130] sm:$0x3] %vm2268_vm4, %v9218_v34  ;;  %2308 = vst.msk [vmem:[#allocation3 + $0x148] sm:$0x3] %vm2268_vm4, %v9218_v34  ;;  %5624 = vrot.lane.b32.xlu0 %v9223_v10, %s6313_s21  ;;  %v7519_v8 = vsel %vm1746_vm2, %v7280_v12, %v5122_v9  ;;  %v5142_v4 = vunpack.i.h.bf16 %v9226_v44  ;;  %v9227_v47 = vpack.i.bf16 %v7201_v16, %v7199_v22  ;;  %v5147_v10 = vunpack.i.h.bf16 %v9228_v42  ;;  %v9231_v16 = vld [vmem:[#allocation27_spill] sm:$0xff] }
 0x12d   : > { %2311 = vst.msk [vmem:[#allocation3 + $0x160] sm:$0x3] %vm2268_vm4, %v9218_v34  ;;  %2314 = vst.msk [vmem:[#allocation3 + $0x178] sm:$0x3] %vm2268_vm4, %v9218_v34  ;;  %v7496_v6 = vpop.permute.xlu1 %5339  ;;  %v2387_v21 = vld [vmem:[#allocation3 + $0x9] sm:$0xff]  ;;  %v5146_v43 = vunpack.i.l.bf16 %v9228_v42  ;;  %v7540_v22 = vsel %vm1746_vm2, %v7300_v50, %v5127_v41  ;;  %v1772_v50 = vsel %vm1746_vm2, %v7324_v17, %v5137_v36 }
 0x12e   : > { %2317 = vst.msk [vmem:[#allocation3 + $0x190] sm:$0x3] %vm2268_vm4, %v9218_v34  ;;  %2320 = vst.msk [vmem:[#allocation3 + $0x1a8] sm:$0x3] %vm2268_vm4, %v9218_v34  ;;  %v7473_v34 = vsel %vm1746_vm2, %v7227_v26, %v5097_v33  ;;  %v5121_v26 = vunpack.i.l.bf16 %v9221_v56  ;;  %v5126_v33 = vunpack.i.l.bf16 %v9224_v5  ;;  %v7511_v1 = vpop.permute.xlu0 %5344  ;;  %v5141_v56 = vunpack.i.l.bf16 %v9226_v44  ;;  %v9233_v41 = vld [vmem:[#allocation32_spill] sm:$0xff] }
 0x12f   : > { %5629 = vrot.lane.b32.xlu1 %v9227_v47, %s6313_s21  ;;  %v5633_v39 = vpack.i.bf16 %v2387_v21, %v2386_v28  ;;  %9230 = vst [vmem:[#allocation7_spill] sm:$0xff] %v7540_v22  ;;  %v1771_v28 = vsel %vm1746_vm2, %v7328_v11, %v5136_v61  ;;  %v9232_v47 = vld [vmem:[#allocation31_spill] sm:$0xff]  ;;  %v5156_v42 = vunpack.i.l.bf16 %v9233_v41  ;;  %v1775_v61 = vsel %vm1746_vm2, %v7349_v23, %v5146_v43 }
 0x130   : > { %v7532_v12 = vsel %vm1746_vm2, %v7296_v63, %v5121_v26  ;;  %v7536_v9 = vsel %vm1746_vm2, %v7304_v59, %v5126_v33  ;;  %v5152_v63 = vunpack.i.h.bf16 %v9232_v47  ;;  %v5151_v26 = vunpack.i.l.bf16 %v9232_v47  ;;  %v9234_v47 = vld [vmem:[#allocation33_spill] sm:$0xff] }
 0x131   : > { %9229 = vst [vmem:[#allocation4_spill] sm:$0xff] %v7536_v9  ;;  %v7543_v0 = vpop.permute.xlu1 %5349  ;;  %5634 = vrot.lane.b32.xlu0 %v5633_v39, %s6307_s9  ;;  %v1774_v59 = vsel %vm1746_vm2, %v7337_v20, %v5142_v4  ;;  %v5157_v33 = vunpack.i.h.bf16 %v9233_v41  ;;  %v1773_v11 = vsel %vm1746_vm2, %v7341_v62, %v5141_v56  ;;  %v1776_v39 = vsel %vm1746_vm2, %v7345_v46, %v5147_v10  ;;  %v9235_v20 = vld [vmem:[#allocation34_spill] sm:$0xff]  ;;  %v9236_v4 = vld [vmem:[#allocation44_spill] sm:$0xff]  ;;  %v9237_v46 = vld [vmem:[#allocation45_spill] sm:$0xff] }
 0x132   : > { %v7550_v21 = vpop.permute.xlu0 %5354  ;;  %v5161_v44 = vunpack.i.l.bf16 %v9234_v47  ;;  %v5162_v17 = vunpack.i.h.bf16 %v9234_v47  ;;  %v5166_v36 = vunpack.i.l.bf16 %v9235_v20  ;;  %v5217_v5 = vunpack.i.h.bf16 %v9236_v4  ;;  %v9239_v9 = vld [vmem:[#allocation46_spill] sm:$0xff] }
 0x133   : > { %v5216_v41 = vunpack.i.l.bf16 %v9236_v4  ;;  %v1778_v62 = vsel %vm1746_vm2, %v7357_v54, %v5152_v63  ;;  %v1777_v23 = vsel %vm1746_vm2, %v7366_v49, %v5151_v26  ;;  %v5222_v56 = vunpack.i.h.bf16 %v9237_v46 }
 0x134   : > { %v5221_v10 = vunpack.i.l.bf16 %v9237_v46  ;;  %v7582_v47 = vsel %vm1779_vm5, %v7374_v32, %v5156_v42  ;;  %v7586_v4 = vsel %vm1779_vm5, %v7370_v48, %v5157_v33  ;;  %v5227_v35 = vunpack.i.h.bf16 %v9239_v9 }
 0x135   : > { %v7570_v22 = vpop.permute.xlu1 %5359  ;;  %v5226_v54 = vunpack.i.l.bf16 %v9239_v9  ;;  %v7592_v49 = vsel %vm1779_vm5, %v7381_v58, %v5161_v44  ;;  %v5167_v63 = vunpack.i.h.bf16 %v9235_v20  ;;  %v5297_v26 = vunpack.i.h.bf16 %v7223_v38 }
 0x136   : > { %v7578_v43 = vpop.permute.xlu0 %5364  ;;  %v5296_v46 = vunpack.i.l.bf16 %v7223_v38  ;;  %v7599_v32 = vsel %vm1779_vm5, %v7435_v7, %v5162_v17  ;;  %v7603_v48 = vsel %vm1779_vm5, %v7443_v55, %v5166_v36  ;;  %v1804_v9 = vsel %vm1779_vm5, %v1771_v28, %v5216_v41 }
 0x137   : > { %9238 = vst [vmem:[#allocation6_spill] sm:$0xff] %v7578_v43  ;;  %v1805_v33 = vsel %vm1779_vm5, %v1772_v50, %v5217_v5  ;;  %v1806_v44 = vsel %vm1779_vm5, %v1773_v11, %v5221_v10  ;;  %v1807_v42 = vsel %vm1779_vm5, %v1774_v59, %v5222_v56  ;;  %v5302_v38 = vunpack.i.h.bf16 %v7261_v37  ;;  %v9240_v59 = vld [vmem:[#allocation47_spill] sm:$0xff] }
 0x138   : > { %v5301_v20 = vunpack.i.l.bf16 %v7261_v37  ;;  %v1808_v17 = vsel %vm1779_vm5, %v1775_v61, %v5226_v54  ;;  %v1809_v55 = vsel %vm1779_vm5, %v1776_v39, %v5227_v35  ;;  %v1837_v28 = vsel %vm1812_vm6, %v1804_v9, %v5296_v46 }
 0x139   : > { %v7607_v58 = vpop.permute.xlu1 %5369  ;;  %v1838_v5 = vsel %vm1812_vm6, %v1805_v33, %v5297_v26  ;;  %v5307_v50 = vunpack.i.h.bf16 %v7276_v29  ;;  %v5306_v11 = vunpack.i.l.bf16 %v7276_v29  ;;  %v5232_v41 = vunpack.i.h.bf16 %v9240_v59 }
 0x13a   : > { %v5375_v7 = vpop.permute.xlu0 %5374  ;;  %v5231_v56 = vunpack.i.l.bf16 %v9240_v59  ;;  %v1839_v39 = vsel %vm1812_vm6, %v1806_v44, %v5301_v20  ;;  %v1840_v10 = vsel %vm1812_vm6, %v1807_v42, %v5302_v38  ;;  %v5312_v29 = vunpack.i.h.bf16 %v7307_v60  ;;  %v9241_v42 = vld [vmem:[#allocation35_spill] sm:$0xff] }
 0x13b   : > { %v5377_v36 = vunpack.i.h.bf16 %v5375_v7  ;;  %v5376_v43 = vunpack.i.l.bf16 %v5375_v7  ;;  %v5311_v9 = vunpack.i.l.bf16 %v7307_v60  ;;  %v5172_v38 = vunpack.i.h.bf16 %v9241_v42 }
 0x13c   : > { %v5171_v20 = vunpack.i.l.bf16 %v9241_v42  ;;  %vm3986_vm4 = vcmask 588800  }
 0x13d   : > { %v7622_v37 = vsel %vm1845_vm7, %v1837_v28, %v5376_v43  ;;  %v7625_v61 = vsel %vm1845_vm7, %v1838_v5, %v5377_v36  ;;  %v5380_v35 = vpop.permute.xlu1 %5379  ;;  %v1841_v43 = vsel %vm1812_vm6, %v1808_v17, %v5306_v11  ;;  %v1842_v36 = vsel %vm1812_vm6, %v1809_v55, %v5307_v50 }
 0x13e   : > { %v5382_v54 = vunpack.i.h.bf16 %v5380_v35  ;;  %v5381_v26 = vunpack.i.l.bf16 %v5380_v35  ;;  %v5385_v46 = vpop.permute.xlu0 %5384  ;;  %v1810_v17 = vsel %vm1779_vm5, %v1777_v23, %v5231_v56  ;;  %v1811_v55 = vsel %vm1779_vm5, %v1778_v62, %v5232_v41 }
 0x13f   : > { %v5387_v33 = vunpack.i.h.bf16 %v5385_v46  ;;  %v5386_v7 = vunpack.i.l.bf16 %v5385_v46  ;;  %v1844_v46 = vsel %vm1812_vm6, %v1811_v55, %v5312_v29  ;;  %v7666_v56 = vsel %vm1779_vm5, %v7459_v27, %v5171_v20 }
 0x140   : > { %v7634_v28 = vsel %vm1845_vm7, %v1839_v39, %v5381_v26  ;;  %v7637_v44 = vsel %vm1845_vm7, %v1840_v10, %v5382_v54  ;;  %v9244_v39 = vld [vmem:[#allocation48_spill] sm:$0xff]  ;;  %v1843_v26 = vsel %vm1812_vm6, %v1810_v17, %v5311_v9  ;;  %v5317_v29 = vunpack.i.h.bf16 %v7316_v3 }
 0x141   : > { %v7642_v5 = vsel %vm1845_vm7, %v1841_v43, %v5386_v7  ;;  %v7645_v60 = vsel %vm1845_vm7, %v1842_v36, %v5387_v33  ;;  %v5390_v59 = vpop.permute.xlu1 %5389  ;;  %v5237_v10 = vunpack.i.h.bf16 %v9244_v39  ;;  %v5236_v54 = vunpack.i.l.bf16 %v9244_v39  ;;  %v9245_v7 = vld [vmem:[#allocation36_spill] sm:$0xff]  ;;  %v9248_v36 = vld [vmem:[#allocation49_spill] sm:$0xff] }
 0x142   : > { %9242 = vst [vmem:[#allocation9_spill] sm:$0xff] %v7642_v5  ;;  %9243 = vst [vmem:[#allocation8_spill] sm:$0xff] %v7645_v60  ;;  %v5392_v50 = vunpack.i.h.bf16 %v5390_v59  ;;  %v5391_v11 = vunpack.i.l.bf16 %v5390_v59  ;;  %v5395_v35 = vpop.permute.xlu0 %5394  ;;  %v7655_v33 = vsel %vm1779_vm5, %v7439_v51, %v5167_v63  ;;  %v5177_v23 = vunpack.i.h.bf16 %v9245_v7 }
 0x143   : > { %v5176_v9 = vunpack.i.l.bf16 %v9245_v7  ;;  %v5316_v43 = vunpack.i.l.bf16 %v7316_v3  ;;  %v7673_v63 = vsel %vm1779_vm5, %v7450_v19, %v5172_v38  ;;  %v5241_v42 = vunpack.i.l.bf16 %v9248_v36 }
 0x144   : > { %v7659_v62 = vsel %vm1845_vm7, %v1843_v26, %v5391_v11  ;;  %v7662_v41 = vsel %vm1845_vm7, %v1844_v46, %v5392_v50  ;;  %v5397_v59 = vunpack.i.h.bf16 %v5395_v35  ;;  %v5396_v17 = vunpack.i.l.bf16 %v5395_v35  ;;  %v9249_v50 = vld [vmem:[#allocation37_spill] sm:$0xff] }
 0x145   : > { %9246 = vst [vmem:[#allocation10_spill] sm:$0xff] %v7659_v62  ;;  %9247 = vst [vmem:[#allocation12_spill] sm:$0xff] %v7662_v41  ;;  %v5400_v51 = vpop.permute.xlu1 %5399  ;;  %v5182_v27 = vunpack.i.h.bf16 %v9249_v50  ;;  %v5181_v20 = vunpack.i.l.bf16 %v9249_v50  ;;  %v1813_v11 = vsel %vm1812_vm6, %v7582_v47, %v5236_v54  ;;  %v1814_v3 = vsel %vm1812_vm6, %v7586_v4, %v5237_v10 }
 0x146   : > { %v5405_v55 = vpop.permute.xlu0 %5404  ;;  %v5242_v39 = vunpack.i.h.bf16 %v9248_v36  ;;  %v5321_v19 = vunpack.i.l.bf16 %v7362_v15  ;;  %v1846_v46 = vsel %vm1845_vm7, %v1813_v11, %v5316_v43  ;;  %v1847_v35 = vsel %vm1845_vm7, %v1814_v3, %v5317_v29 }
 0x147   : > { %v5407_v38 = vunpack.i.h.bf16 %v5405_v55  ;;  %v5406_v26 = vunpack.i.l.bf16 %v5405_v55  ;;  %v5322_v7 = vunpack.i.h.bf16 %v7362_v15  ;;  %v5401_v41 = vunpack.i.l.bf16 %v5400_v51 }
 0x148   : > { %v1815_v47 = vsel %vm1812_vm6, %v7592_v49, %v5241_v42  ;;  %v5402_v54 = vunpack.i.h.bf16 %v5400_v51  ;;  %v1879_v4 = vsel %vm1878_vm8, %v1846_v46, %v5396_v17  ;;  %v1880_v10 = vsel %vm1878_vm8, %v1847_v35, %v5397_v59 }
 0x149   : > { %v5410_v50 = vpop.permute.xlu1 %5409  ;;  %v1816_v29 = vsel %vm1812_vm6, %v7599_v32, %v5242_v39  ;;  %v1848_v15 = vsel %vm1845_vm7, %v1815_v47, %v5321_v19  ;;  %v1912_v43 = vsel %vm1911_vm9, %v1879_v4, %v5406_v26  ;;  %v1913_v11 = vsel %vm1911_vm9, %v1880_v10, %v5407_v38  ;;  %v9250_v19 = vld [vmem:[#allocation50_spill] sm:$0xff] }
 0x14a   : > { %v5415_v62 = vpop.permute.xlu0 %5414  ;;  %v5412_v36 = vunpack.i.h.bf16 %v5410_v50  ;;  %v5411_v60 = vunpack.i.l.bf16 %v5410_v50  ;;  %v1849_v49 = vsel %vm1845_vm7, %v1816_v29, %v5322_v7  ;;  %v1881_v51 = vsel %vm1878_vm8, %v1848_v15, %v5401_v41 }
 0x14b   : > { %v5417_v55 = vunpack.i.h.bf16 %v5415_v62  ;;  %v5416_v5 = vunpack.i.l.bf16 %v5415_v62  ;;  %v1882_v62 = vsel %vm1878_vm8, %v1849_v49, %v5402_v54  ;;  %v5247_v35 = vunpack.i.h.bf16 %v9250_v19  ;;  %v9251_v54 = vld [vmem:[#allocation38_spill] sm:$0xff] }
 0x14c   : > { %v5246_v26 = vunpack.i.l.bf16 %v9250_v19  ;;  %v1914_v38 = vsel %vm1911_vm9, %v1881_v51, %v5411_v60  ;;  %v1915_v7 = vsel %vm1911_vm9, %v1882_v62, %v5412_v36  ;;  %v7707_v41 = vsel %vm1779_vm5, %v7463_v25, %v5176_v9  ;;  %v9252_v9 = vld [vmem:[#allocation51_spill] sm:$0xff] }
 0x14d   : > { %v5420_v42 = vpop.permute.xlu1 %5419  ;;  %v1945_v59 = vsel %vm1944_vm10, %v1912_v43, %v5416_v5  ;;  %v1946_v17 = vsel %vm1944_vm10, %v1913_v11, %v5417_v55  ;;  %v7711_v5 = vsel %vm1779_vm5, %v7473_v34, %v5177_v23  ;;  %v5187_v4 = vunpack.i.h.bf16 %v9251_v54 }
 0x14e   : > { %v5422_v3 = vunpack.i.h.bf16 %v5420_v42  ;;  %v5421_v46 = vunpack.i.l.bf16 %v5420_v42  ;;  %v5425_v32 = vpop.permute.xlu0 %5424  ;;  %v1977_v39 = vpack.c.bf16 %v1946_v17, %v1945_v59  ;;  %v5327_v60 = vunpack.i.h.bf16 %v7377_v57 }
 0x14f   : > { %v5326_v10 = vunpack.i.l.bf16 %v7377_v57  ;;  %v5186_v25 = vunpack.i.l.bf16 %v9251_v54  ;;  %v5251_v29 = vunpack.i.l.bf16 %v9252_v9  ;;  %v5427_v34 = vunpack.i.h.bf16 %v5425_v32 }
 0x150   : > { %v1947_v50 = vsel %vm1944_vm10, %v1914_v38, %v5421_v46  ;;  %v1948_v47 = vsel %vm1944_vm10, %v1915_v7, %v5422_v3  ;;  %4754 = vmatprep.mubr.msk.bf16.mxu0 %vm2020_vm11, %v1977_v39  ;;  %v5426_v23 = vunpack.i.l.bf16 %v5425_v32  ;;  %v7723_v43 = vsel %vm1779_vm5, %v7481_v14, %v5181_v20 }
 0x151   : > { %v5430_v36 = vpop.permute.xlu1 %5429  ;;  %v1978_v55 = vpack.c.bf16 %v1948_v47, %v1947_v50  ;;  %v7727_v11 = vsel %vm1779_vm5, %v7477_v24, %v5182_v27  ;;  %v1817_v57 = vsel %vm1812_vm6, %v7603_v48, %v5246_v26  ;;  %v1818_v49 = vsel %vm1812_vm6, %v7655_v33, %v5247_v35 }
 0x152   : > { %v5435_v15 = vpop.permute.xlu0 %5434  ;;  %v5252_v51 = vunpack.i.h.bf16 %v9252_v9  ;;  %v5331_v42 = vunpack.i.l.bf16 %v7446_v18  ;;  %v1850_v14 = vsel %vm1845_vm7, %v1817_v57, %v5326_v10  ;;  %v1851_v20 = vsel %vm1845_vm7, %v1818_v49, %v5327_v60 }
 0x153   : > { %4755 = vmatmul.mubr.msk.bf16.vlgmr.msra.gmra.mrb[0].mxu0 %vm2020_vm11, %v1978_v55  ;;  %v5437_v59 = vunpack.i.h.bf16 %v5435_v15  ;;  %v5436_v17 = vunpack.i.l.bf16 %v5435_v15  ;;  %v5332_v24 = vunpack.i.h.bf16 %v7446_v18  ;;  %v5431_v27 = vunpack.i.l.bf16 %v5430_v36 }
 0x154   : > { %v1819_v48 = vsel %vm1812_vm6, %v7666_v56, %v5251_v29  ;;  %v1883_v33 = vsel %vm1878_vm8, %v1850_v14, %v5426_v23  ;;  %v1884_v3 = vsel %vm1878_vm8, %v1851_v20, %v5427_v34  ;;  %v5432_v46 = vunpack.i.h.bf16 %v5430_v36  ;;  %v9253_v34 = vld [vmem:[#allocation52_spill] sm:$0xff]  ;;  %v9254_v14 = vld [vmem:[#allocation39_spill] sm:$0xff] }
 0x155   : > { %v5440_v62 = vpop.permute.xlu1 %5439  ;;  %v1820_v38 = vsel %vm1812_vm6, %v7673_v63, %v5252_v51  ;;  %v1852_v18 = vsel %vm1845_vm7, %v1819_v48, %v5331_v42  ;;  %v1916_v7 = vsel %vm1911_vm9, %v1883_v33, %v5436_v17  ;;  %v1917_v50 = vsel %vm1911_vm9, %v1884_v3, %v5437_v59 }
 0x156   : > { %v5445_v32 = vpop.permute.xlu0 %5444  ;;  %v5442_v39 = vunpack.i.h.bf16 %v5440_v62  ;;  %v5441_v19 = vunpack.i.l.bf16 %v5440_v62  ;;  %v1853_v56 = vsel %vm1845_vm7, %v1820_v38, %v5332_v24  ;;  %v1885_v47 = vsel %vm1878_vm8, %v1852_v18, %v5431_v27 }
 0x157   : > { %v5447_v35 = vunpack.i.h.bf16 %v5445_v32  ;;  %v5446_v26 = vunpack.i.l.bf16 %v5445_v32  ;;  %v1886_v36 = vsel %vm1878_vm8, %v1853_v56, %v5432_v46  ;;  %v5257_v23 = vunpack.i.h.bf16 %v9253_v34  ;;  %v9256_v46 = vld [vmem:[#allocation40_spill] sm:$0xff] }
 0x158   : > { %v5256_v15 = vunpack.i.l.bf16 %v9253_v34  ;;  %v1918_v57 = vsel %vm1911_vm9, %v1885_v47, %v5441_v19  ;;  %v1919_v49 = vsel %vm1911_vm9, %v1886_v36, %v5442_v39  ;;  %v7759_v51 = vsel %vm1779_vm5, %v7485_v52, %v5186_v25  ;;  %v9255_v25 = vld [vmem:[#allocation53_spill] sm:$0xff] }
 0x159   : > { %v1949_v54 = vsel %vm1944_vm10, %v1916_v7, %v5446_v26  ;;  %v1950_v60 = vsel %vm1944_vm10, %v1917_v50, %v5447_v35  ;;  %v5450_v10 = vpop.permute.xlu1 %5449  ;;  %v7763_v42 = vsel %vm1779_vm5, %v7491_v45, %v5187_v4  ;;  %v5192_v20 = vunpack.i.h.bf16 %v9254_v14 }
 0x15a   : > { %v5452_v55 = vunpack.i.h.bf16 %v5450_v10  ;;  %v5451_v9 = vunpack.i.l.bf16 %v5450_v10  ;;  %v5455_v63 = vpop.permute.xlu0 %5454  ;;  %v1979_v29 = vpack.c.bf16 %v1950_v60, %v1949_v54  ;;  %v5337_v24 = vunpack.i.h.bf16 %v7455_v13 }
 0x15b   : > { %v5336_v27 = vunpack.i.l.bf16 %v7455_v13  ;;  %v5191_v52 = vunpack.i.l.bf16 %v9254_v14  ;;  %v5261_v33 = vunpack.i.l.bf16 %v9255_v25  ;;  %v5457_v45 = vunpack.i.h.bf16 %v5455_v63 }
 0x15c   : > { %v1951_v59 = vsel %vm1944_vm10, %v1918_v57, %v5451_v9  ;;  %v1952_v17 = vsel %vm1944_vm10, %v1919_v49, %v5452_v55  ;;  %4758 = vmatprep.mubr.msk.bf16.mxu0 %vm2020_vm11, %v1979_v29  ;;  %v5456_v4 = vunpack.i.l.bf16 %v5455_v63  ;;  %v5197_v32 = vunpack.i.h.bf16 %v9256_v46 }
 0x15d   : > { %v5460_v62 = vpop.permute.xlu1 %5459  ;;  %v1980_v48 = vpack.c.bf16 %v1952_v17, %v1951_v59  ;;  %v5196_v39 = vunpack.i.l.bf16 %v9256_v46  ;;  %v1821_v19 = vsel %vm1812_vm6, %v7707_v41, %v5256_v15  ;;  %v1822_v35 = vsel %vm1812_vm6, %v7711_v5, %v5257_v23 }
 0x15e   : > { %v5465_v3 = vpop.permute.xlu0 %5464  ;;  %v5262_v13 = vunpack.i.h.bf16 %v9255_v25  ;;  %v5341_v26 = vunpack.i.l.bf16 %v7496_v6  ;;  %v1854_v7 = vsel %vm1845_vm7, %v1821_v19, %v5336_v27  ;;  %v1855_v50 = vsel %vm1845_vm7, %v1822_v35, %v5337_v24 }
 0x15f   : > { %4759 = vmatmul.mubr.msk.bf16.gmra.mrb[4].mxu0 %vm2020_vm11, %v1980_v48  ;;  %v5467_v38 = vunpack.i.h.bf16 %v5465_v3  ;;  %v5466_v18 = vunpack.i.l.bf16 %v5465_v3  ;;  %v5342_v56 = vunpack.i.h.bf16 %v7496_v6  ;;  %v5461_v47 = vunpack.i.l.bf16 %v5460_v62  ;;  %v9257_v48 = vld [vmem:[#allocation54_spill] sm:$0xff] }
 0x160   : > { %v1823_v41 = vsel %vm1812_vm6, %v7723_v43, %v5261_v33  ;;  %v1887_v5 = vsel %vm1878_vm8, %v1854_v7, %v5456_v4  ;;  %v1888_v60 = vsel %vm1878_vm8, %v1855_v50, %v5457_v45  ;;  %v5462_v10 = vunpack.i.h.bf16 %v5460_v62 }
 0x161   : > { %v5470_v54 = vpop.permute.xlu1 %5469  ;;  %v1824_v34 = vsel %vm1812_vm6, %v7727_v11, %v5262_v13  ;;  %v1856_v6 = vsel %vm1845_vm7, %v1823_v41, %v5341_v26  ;;  %v1920_v23 = vsel %vm1911_vm9, %v1887_v5, %v5466_v18  ;;  %v1921_v15 = vsel %vm1911_vm9, %v1888_v60, %v5467_v38 }
 0x162   : > { %v5475_v36 = vpop.permute.xlu0 %5474  ;;  %v5472_v55 = vunpack.i.h.bf16 %v5470_v54  ;;  %v5471_v9 = vunpack.i.l.bf16 %v5470_v54  ;;  %v1857_v43 = vsel %vm1845_vm7, %v1824_v34, %v5342_v56  ;;  %v1889_v57 = vsel %vm1878_vm8, %v1856_v6, %v5461_v47  ;;  %v9259_v47 = vld [vmem:[#allocation41_spill] sm:$0xff] }
 0x163   : > { %v5477_v63 = vunpack.i.h.bf16 %v5475_v36  ;;  %v5476_v29 = vunpack.i.l.bf16 %v5475_v36  ;;  %v1890_v14 = vsel %vm1878_vm8, %v1857_v43, %v5462_v10  ;;  %v5267_v25 = vunpack.i.h.bf16 %v9257_v48 }
 0x164   : > { %v5266_v33 = vunpack.i.l.bf16 %v9257_v48  ;;  %v1922_v45 = vsel %vm1911_vm9, %v1889_v57, %v5471_v9  ;;  %v1923_v4 = vsel %vm1911_vm9, %v1890_v14, %v5472_v55  ;;  %v1794_v3 = vsel %vm1779_vm5, %v7504_v30, %v5191_v52 }
 0x165   : > { %v1953_v49 = vsel %vm1944_vm10, %v1920_v23, %v5476_v29  ;;  %v1954_v59 = vsel %vm1944_vm10, %v1921_v15, %v5477_v63  ;;  %v5480_v17 = vpop.permute.xlu1 %5479  ;;  %v1795_v46 = vsel %vm1779_vm5, %v7500_v40, %v5192_v20  ;;  %v7812_v13 = vsel %vm1779_vm5, %v7508_v31, %v5196_v39  ;;  %v9258_v40 = vld [vmem:[#allocation55_spill] sm:$0xff] }
 0x166   : > { %v5482_v24 = vunpack.i.h.bf16 %v5480_v17  ;;  %v5481_v27 = vunpack.i.l.bf16 %v5480_v17  ;;  %v5485_v11 = vpop.permute.xlu0 %5484  ;;  %v1981_v62 = vpack.c.bf16 %v1954_v59, %v1953_v49  ;;  %v5347_v26 = vunpack.i.h.bf16 %v7511_v1 }
 0x167   : > { %v5346_v38 = vunpack.i.l.bf16 %v7511_v1  ;;  %v7818_v30 = vsel %vm1779_vm5, %v7515_v53, %v5197_v32  ;;  %v5271_v20 = vunpack.i.l.bf16 %v9258_v40  ;;  %v5487_v52 = vunpack.i.h.bf16 %v5485_v11 }
 0x168   : > { %v1955_v19 = vsel %vm1944_vm10, %v1922_v45, %v5481_v27  ;;  %v1956_v35 = vsel %vm1944_vm10, %v1923_v4, %v5482_v24  ;;  %4762 = vmatprep.mubr.msk.bf16.mxu0 %vm2020_vm11, %v1981_v62  ;;  %v5486_v50 = vunpack.i.l.bf16 %v5485_v11  ;;  %v5202_v54 = vunpack.i.h.bf16 %v9259_v47  ;;  %v9260_v4 = vld [vmem:[#allocation56_spill] sm:$0xff] }
 0x169   : > { %v5490_v18 = vpop.permute.xlu1 %5489  ;;  %v1982_v7 = vpack.c.bf16 %v1956_v35, %v1955_v19  ;;  %v5201_v31 = vunpack.i.l.bf16 %v9259_v47  ;;  %v1825_v39 = vsel %vm1812_vm6, %v7759_v51, %v5266_v33  ;;  %v1826_v1 = vsel %vm1812_vm6, %v7763_v42, %v5267_v25 }
 0x16a   : > { %v5495_v56 = vpop.permute.xlu0 %5494  ;;  %v5272_v53 = vunpack.i.h.bf16 %v9258_v40  ;;  %v5351_v32 = vunpack.i.l.bf16 %v7543_v0  ;;  %v1858_v60 = vsel %vm1845_vm7, %v1825_v39, %v5346_v38  ;;  %v1859_v10 = vsel %vm1845_vm7, %v1826_v1, %v5347_v26  ;;  %v9261_v26 = vld [vmem:[#allocation42_spill] sm:$0xff]  ;;  %v9262_v1 = vld [vmem:[#allocation57_spill] sm:$0xff] }
 0x16b   : > { %4763 = vmatmul.mubr.msk.bf16.gmra.mrb[8].mxu0 %vm2020_vm11, %v1982_v7  ;;  %v5497_v41 = vunpack.i.h.bf16 %v5495_v56  ;;  %v5496_v5 = vunpack.i.l.bf16 %v5495_v56  ;;  %v5352_v36 = vunpack.i.h.bf16 %v7543_v0  ;;  %v5491_v55 = vunpack.i.l.bf16 %v5490_v18 }
 0x16c   : > { %v1827_v51 = vsel %vm1812_vm6, %v1794_v3, %v5271_v20  ;;  %v1891_v42 = vsel %vm1878_vm8, %v1858_v60, %v5486_v50  ;;  %v1892_v63 = vsel %vm1878_vm8, %v1859_v10, %v5487_v52  ;;  %v5492_v29 = vunpack.i.h.bf16 %v5490_v18  ;;  %v9263_v60 = vld [vmem:[#allocation43_spill] sm:$0xff] }
 0x16d   : > { %v5500_v9 = vpop.permute.xlu1 %5499  ;;  %v1828_v57 = vsel %vm1812_vm6, %v1795_v46, %v5272_v53  ;;  %v1860_v49 = vsel %vm1845_vm7, %v1827_v51, %v5351_v32  ;;  %v1924_v0 = vsel %vm1911_vm9, %v1891_v42, %v5496_v5  ;;  %v1925_v59 = vsel %vm1911_vm9, %v1892_v63, %v5497_v41 }
 0x16e   : > { %v5505_v34 = vpop.permute.xlu0 %5504  ;;  %v5502_v6 = vunpack.i.h.bf16 %v5500_v9  ;;  %v5501_v23 = vunpack.i.l.bf16 %v5500_v9  ;;  %v1861_v17 = vsel %vm1845_vm7, %v1828_v57, %v5352_v36  ;;  %v1893_v14 = vsel %vm1878_vm8, %v1860_v49, %v5491_v55 }
 0x16f   : > { %v5507_v15 = vunpack.i.h.bf16 %v5505_v34  ;;  %v5506_v43 = vunpack.i.l.bf16 %v5505_v34  ;;  %v1894_v62 = vsel %vm1878_vm8, %v1861_v17, %v5492_v29  ;;  %v5277_v3 = vunpack.i.h.bf16 %v9260_v4 }
 0x170   : > { %v5276_v46 = vunpack.i.l.bf16 %v9260_v4  ;;  %v1926_v19 = vsel %vm1911_vm9, %v1893_v14, %v5501_v23  ;;  %v1927_v35 = vsel %vm1911_vm9, %v1894_v62, %v5502_v6  ;;  %v5207_v38 = vunpack.i.h.bf16 %v9261_v26 }
 0x171   : > { %v1957_v24 = vsel %vm1944_vm10, %v1924_v0, %v5506_v43  ;;  %v1958_v27 = vsel %vm1944_vm10, %v1925_v59, %v5507_v15  ;;  %v5510_v11 = vpop.permute.xlu1 %5509  ;;  %v5206_v18 = vunpack.i.l.bf16 %v9261_v26  ;;  %v1798_v20 = vsel %vm1779_vm5, %v7532_v12, %v5201_v31 }
 0x172   : > { %v5512_v48 = vunpack.i.h.bf16 %v5510_v11  ;;  %v5511_v25 = vunpack.i.l.bf16 %v5510_v11  ;;  %v5515_v33 = vpop.permute.xlu0 %5514  ;;  %v1983_v45 = vpack.c.bf16 %v1958_v27, %v1957_v24  ;;  %v5357_v52 = vunpack.i.h.bf16 %v7550_v21 }
 0x173   : > { %v5356_v50 = vunpack.i.l.bf16 %v7550_v21  ;;  %v1799_v39 = vsel %vm1779_vm5, %v7519_v8, %v5202_v54  ;;  %v5281_v53 = vunpack.i.l.bf16 %v9262_v1  ;;  %v5517_v32 = vunpack.i.h.bf16 %v5515_v33 }
 0x174   : > { %v1959_v7 = vsel %vm1944_vm10, %v1926_v19, %v5511_v25  ;;  %v1960_v40 = vsel %vm1944_vm10, %v1927_v35, %v5512_v48  ;;  %4766 = vmatprep.mubr.msk.bf16.mxu0 %vm2020_vm11, %v1983_v45  ;;  %v5516_v41 = vunpack.i.l.bf16 %v5515_v33  ;;  %v5212_v10 = vunpack.i.h.bf16 %v9263_v60 }
 0x175   : > { %v5520_v56 = vpop.permute.xlu1 %5519  ;;  %v1984_v47 = vpack.c.bf16 %v1960_v40, %v1959_v7  ;;  %v5211_v36 = vunpack.i.l.bf16 %v9263_v60  ;;  %v1829_v12 = vsel %vm1812_vm6, %v7812_v13, %v5276_v46  ;;  %v1830_v21 = vsel %vm1812_vm6, %v7818_v30, %v5277_v3  ;;  %v9264_v3 = vld [vmem:[#allocation58_spill] sm:$0xff] }
 0x176   : > { %v5525_v5 = vpop.permute.xlu0 %5524  ;;  %v5282_v31 = vunpack.i.h.bf16 %v9262_v1  ;;  %v5361_v8 = vunpack.i.l.bf16 %v7570_v22  ;;  %v1862_v9 = vsel %vm1845_vm7, %v1829_v12, %v5356_v50  ;;  %v1863_v51 = vsel %vm1845_vm7, %v1830_v21, %v5357_v52  ;;  %v9267_v50 = vld [vmem:[#allocation5_spill] sm:$0xff]  ;;  %v9268_v1 = vld [vmem:[#allocation4_spill] sm:$0xff]  ;;  %v9271_v21 = vld [vmem:[#allocation59_spill] sm:$0xff] }
 0x177   : > { %4767 = vmatmul.mubr.msk.bf16.gmra.mrb[12].mxu0 %vm2020_vm11, %v1984_v47  ;;  %v5527_v54 = vunpack.i.h.bf16 %v5525_v5  ;;  %v5526_v55 = vunpack.i.l.bf16 %v5525_v5  ;;  %v5362_v42 = vunpack.i.h.bf16 %v7570_v22  ;;  %v5521_v63 = vunpack.i.l.bf16 %v5520_v56 }
 0x178   : > { %v1831_v13 = vsel %vm1812_vm6, %v1798_v20, %v5281_v53  ;;  %v1895_v30 = vsel %vm1878_vm8, %v1862_v9, %v5516_v41  ;;  %v1896_v34 = vsel %vm1878_vm8, %v1863_v51, %v5517_v32  ;;  %v5522_v6 = vunpack.i.h.bf16 %v5520_v56  ;;  %v9269_v32 = vld [vmem:[#allocation6_spill] sm:$0xff] }
 0x179   : > { %v5530_v29 = vpop.permute.xlu1 %5529  ;;  %v1832_v0 = vsel %vm1812_vm6, %v1799_v39, %v5282_v31  ;;  %v1864_v59 = vsel %vm1845_vm7, %v1831_v13, %v5361_v8  ;;  %v1928_v22 = vsel %vm1911_vm9, %v1895_v30, %v5526_v55  ;;  %v1929_v17 = vsel %vm1911_vm9, %v1896_v34, %v5527_v54 }
 0x17a   : > { %v5535_v23 = vpop.permute.xlu0 %5534  ;;  %v5532_v15 = vunpack.i.h.bf16 %v5530_v29  ;;  %v5531_v43 = vunpack.i.l.bf16 %v5530_v29  ;;  %v1865_v14 = vsel %vm1845_vm7, %v1832_v0, %v5362_v42  ;;  %v1897_v24 = vsel %vm1878_vm8, %v1864_v59, %v5521_v63 }
 0x17b   : > { %v5537_v57 = vunpack.i.h.bf16 %v5535_v23  ;;  %v5536_v49 = vunpack.i.l.bf16 %v5535_v23  ;;  %v1898_v48 = vsel %vm1878_vm8, %v1865_v14, %v5522_v6  ;;  %v5287_v46 = vunpack.i.h.bf16 %v9264_v3 }
 0x17c   : > { %v5286_v19 = vunpack.i.l.bf16 %v9264_v3  ;;  %v1930_v35 = vsel %vm1911_vm9, %v1897_v24, %v5531_v43  ;;  %v1931_v7 = vsel %vm1911_vm9, %v1898_v48, %v5532_v15  ;;  %v9265_v40 = vunpack.i.h.bf16 %v9231_v16 }
 0x17d   : > { %v1961_v27 = vsel %vm1944_vm10, %v1928_v22, %v5536_v49  ;;  %v1962_v11 = vsel %vm1944_vm10, %v1929_v17, %v5537_v57  ;;  %v5540_v62 = vpop.permute.xlu1 %5539  ;;  %v9266_v52 = vunpack.i.l.bf16 %v9231_v16  ;;  %v1800_v53 = vsel %vm1779_vm5, %v9268_v1, %v5206_v18  ;;  %v9270_v16 = vld [vmem:[#allocation7_spill] sm:$0xff] }
 0x17e   : > { %v5542_v25 = vunpack.i.h.bf16 %v5540_v62  ;;  %v5541_v33 = vunpack.i.l.bf16 %v5540_v62  ;;  %v5545_v45 = vpop.permute.xlu0 %5544  ;;  %v1985_v4 = vpack.c.bf16 %v1962_v11, %v1961_v27  ;;  %v1770_v20 = vsel %vm1746_vm2, %v7311_v2, %v9265_v40 }
 0x17f   : > { %v1769_v56 = vsel %vm1746_vm2, %v9267_v50, %v9266_v52  ;;  %v5367_v41 = vunpack.i.h.bf16 %v9269_v32  ;;  %v5366_v5 = vunpack.i.l.bf16 %v9269_v32  ;;  %v1801_v12 = vsel %vm1779_vm5, %v9270_v16, %v5207_v38 }
 0x180   : > { %v1963_v47 = vsel %vm1944_vm10, %v1930_v35, %v5541_v33  ;;  %v1964_v39 = vsel %vm1944_vm10, %v1931_v7, %v5542_v25  ;;  %4770 = vmatprep.mubr.msk.bf16.mxu0 %vm2020_vm11, %v1985_v4  ;;  %v5291_v31 = vunpack.i.l.bf16 %v9271_v21  ;;  %v5547_v8 = vunpack.i.h.bf16 %v5545_v45 }
 0x181   : > { %v5550_v60 = vpop.permute.xlu1 %5549  ;;  %v1986_v2 = vpack.c.bf16 %v1964_v39, %v1963_v47  ;;  %v5546_v54 = vunpack.i.l.bf16 %v5545_v45  ;;  %v1802_v9 = vsel %vm1779_vm5, %v1769_v56, %v5211_v36  ;;  %v1803_v18 = vsel %vm1779_vm5, %v1770_v20, %v5212_v10 }
 0x182   : > { %v5555_v55 = vpop.permute.xlu0 %5554  ;;  %v1833_v51 = vsel %vm1812_vm6, %v1800_v53, %v5286_v19  ;;  %v1834_v42 = vsel %vm1812_vm6, %v1801_v12, %v5287_v46  ;;  %v5292_v26 = vunpack.i.h.bf16 %v9271_v21  ;;  %v5371_v63 = vunpack.i.l.bf16 %v7607_v58 }
 0x183   : > { %4771 = vmatmul.mubr.msk.bf16.gmra.mrb[16].mxu0 %vm2020_vm11, %v1986_v2  ;;  %v5557_v38 = vunpack.i.h.bf16 %v5555_v55  ;;  %v5556_v29 = vunpack.i.l.bf16 %v5555_v55  ;;  %v1866_v13 = vsel %vm1845_vm7, %v1833_v51, %v5366_v5  ;;  %v1867_v30 = vsel %vm1845_vm7, %v1834_v42, %v5367_v41 }
 0x184   : > { %v5372_v36 = vunpack.i.h.bf16 %v7607_v58  ;;  %v5551_v34 = vunpack.i.l.bf16 %v5550_v60  ;;  %v1835_v6 = vsel %vm1812_vm6, %v1802_v9, %v5291_v31  ;;  %v1899_v23 = vsel %vm1878_vm8, %v1866_v13, %v5546_v54 }
 0x185   : > { %v5560_v10 = vpop.permute.xlu1 %5559  ;;  %v1900_v15 = vsel %vm1878_vm8, %v1867_v30, %v5547_v8  ;;  %v5552_v43 = vunpack.i.h.bf16 %v5550_v60  ;;  %v1836_v17 = vsel %vm1812_vm6, %v1803_v18, %v5292_v26  ;;  %v1868_v14 = vsel %vm1845_vm7, %v1835_v6, %v5371_v63 }
 0x186   : > { %v5565_v57 = vpop.permute.xlu0 %5564  ;;  %v5562_v49 = vunpack.i.h.bf16 %v5560_v10  ;;  %v5561_v0 = vunpack.i.l.bf16 %v5560_v10  ;;  %v1932_v58 = vsel %vm1911_vm9, %v1899_v23, %v5556_v29  ;;  %v1933_v24 = vsel %vm1911_vm9, %v1900_v15, %v5557_v38 }
 0x187   : > { %v5567_v59 = vunpack.i.h.bf16 %v5565_v57  ;;  %v5566_v22 = vunpack.i.l.bf16 %v5565_v57  ;;  %v1869_v27 = vsel %vm1845_vm7, %v1836_v17, %v5372_v36  ;;  %v1901_v11 = vsel %vm1878_vm8, %v1868_v14, %v5551_v34  ;;  %v9272_v57 = vld [vmem:[#allocation9_spill] sm:$0xff] }
 0x188   : > { %v1902_v33 = vsel %vm1878_vm8, %v1869_v27, %v5552_v43  ;;  %v1934_v19 = vsel %vm1911_vm9, %v1901_v11, %v5561_v0  ;;  %v9273_v0 = vld [vmem:[#allocation8_spill] sm:$0xff] }
 0x189   : > { %v1965_v62 = vsel %vm1944_vm10, %v1932_v58, %v5566_v22  ;;  %v1966_v48 = vsel %vm1944_vm10, %v1933_v24, %v5567_v59  ;;  %v5570_v25 = vpop.permute.xlu1 %5569  ;;  %v1935_v35 = vsel %vm1911_vm9, %v1902_v33, %v5562_v49 }
 0x18a   : > { %v5572_v45 = vunpack.i.h.bf16 %v5570_v25  ;;  %v5571_v4 = vunpack.i.l.bf16 %v5570_v25  ;;  %v5575_v3 = vpop.permute.xlu0 %5574  ;;  %v1987_v46 = vpack.c.bf16 %v1966_v48, %v1965_v62  ;;  %v9274_v48 = vld [vmem:[#allocation10_spill] sm:$0xff] }
 0x18b   : > { %v5577_v50 = vunpack.i.h.bf16 %v5575_v3  ;;  %v5576_v56 = vunpack.i.l.bf16 %v5575_v3  ;;  %v9275_v3 = vld [vmem:[#allocation12_spill] sm:$0xff] }
 0x18c   : > { %v1967_v7 = vsel %vm1944_vm10, %v1934_v19, %v5571_v4  ;;  %v1968_v40 = vsel %vm1944_vm10, %v1935_v35, %v5572_v45  ;;  %4774 = vmatprep.mubr.msk.bf16.mxu0 %vm2020_vm11, %v1987_v46 }
 0x18d   : > { %v5580_v20 = vpop.permute.xlu1 %5579  ;;  %v1988_v52 = vpack.c.bf16 %v1968_v40, %v1967_v7  ;;  %v1903_v41 = vsel %vm1878_vm8, %v7622_v37, %v5576_v56  ;;  %v1904_v5 = vsel %vm1878_vm8, %v7625_v61, %v5577_v50 }
 0x18e   : > { %v5585_v47 = vpop.permute.xlu0 %5584  ;;  %v5581_v53 = vunpack.i.l.bf16 %v5580_v20  ;;  %v5582_v60 = vunpack.i.h.bf16 %v5580_v20 }
 0x18f   : > { %4775 = vmatmul.mubr.msk.bf16.gmra.mrb[20].mxu0 %vm2020_vm11, %v1988_v52  ;;  %v5587_v39 = vunpack.i.h.bf16 %v5585_v47  ;;  %v5586_v1 = vunpack.i.l.bf16 %v5585_v47  ;;  %v2418_v47 = vld [vmem:[#allocation3 + $0x2] sm:$0xff] }
 0x190   : > { %v1905_v55 = vsel %vm1878_vm8, %v7634_v28, %v5581_v53  ;;  %v1906_v61 = vsel %vm1878_vm8, %v7637_v44, %v5582_v60  ;;  %v2577_v53 = vld [vmem:[#allocation3 + $0x198] sm:$0xff]  ;;  %v2610_v60 = vld [vmem:[#allocation3 + $0x1a1] sm:$0xff] }
 0x191   : > { %v5590_v32 = vpop.permute.xlu1 %5589  ;;  %v1936_v8 = vsel %vm1911_vm9, %v1903_v41, %v5586_v1  ;;  %v1937_v54 = vsel %vm1911_vm9, %v1904_v5, %v5587_v39  ;;  %v2419_v39 = vld [vmem:[#allocation3 + $0xa] sm:$0xff]  ;;  %v2609_v5 = vld [vmem:[#allocation3 + $0x199] sm:$0xff] }
 0x192   : > { %v5595_v2 = vpop.permute.xlu0 %5594  ;;  %v5592_v16 = vunpack.i.h.bf16 %v5590_v32  ;;  %v5591_v12 = vunpack.i.l.bf16 %v5590_v32  ;;  %v5638_v1 = vpack.i.bf16 %v2419_v39, %v2418_v47  ;;  %v2578_v32 = vld [vmem:[#allocation3 + $0x1a0] sm:$0xff] }
 0x193   : > { %v5597_v21 = vunpack.i.h.bf16 %v5595_v2  ;;  %v5596_v31 = vunpack.i.l.bf16 %v5595_v2  ;;  %v5643_v41 = vpack.i.bf16 %v2578_v32, %v2577_v53  ;;  %v5648_v2 = vpack.i.bf16 %v2610_v60, %v2609_v5 }
 0x194   : > { %v1938_v38 = vsel %vm1911_vm9, %v1905_v55, %v5591_v12  ;;  %v1939_v29 = vsel %vm1911_vm9, %v1906_v61, %v5592_v16  ;;  %5639 = vrot.lane.b32.xlu0 %v5638_v1, %s6309_s11  ;;  %v2641_v16 = vld [vmem:[#allocation3 + $0x19a] sm:$0xff]  ;;  %v2642_v12 = vld [vmem:[#allocation3 + $0x1a2] sm:$0xff] }
 0x195   : > { %v1969_v9 = vsel %vm1944_vm10, %v1936_v8, %v5596_v31  ;;  %v1970_v37 = vsel %vm1944_vm10, %v1937_v54, %v5597_v21  ;;  %v5600_v18 = vpop.permute.xlu1 %5599  ;;  %v5653_v21 = vpack.i.bf16 %v2642_v12, %v2641_v16  ;;  %v7980_v31 = vld [vmem:[%s9068_s2] ss:$0 sm:$0xff] }
 0x196   : > { %v5602_v51 = vunpack.i.h.bf16 %v5600_v18  ;;  %v5601_v42 = vunpack.i.l.bf16 %v5600_v18  ;;  %v5605_v26 = vpop.permute.xlu0 %5604  ;;  %v1989_v63 = vpack.c.bf16 %v1970_v37, %v1969_v9 }
 0x197   : > { %v5607_v34 = vunpack.i.h.bf16 %v5605_v26  ;;  %v5606_v10 = vunpack.i.l.bf16 %v5605_v26 }
 0x198   : > { %v1971_v13 = vsel %vm1944_vm10, %v1938_v38, %v5601_v42  ;;  %v1972_v28 = vsel %vm1944_vm10, %v1939_v29, %v5602_v51  ;;  %4778 = vmatprep.mubr.msk.bf16.mxu0 %vm2020_vm11, %v1989_v63  ;;  %5644 = vrot.lane.b32.xlu0 %v5643_v41, %s6314_s22 }
 0x199   : > { %v5610_v30 = vpop.permute.xlu1 %5609  ;;  %v1990_v36 = vpack.c.bf16 %v1972_v28, %v1971_v13  ;;  %v1907_v49 = vsel %vm1878_vm8, %v9272_v57, %v5606_v10  ;;  %v1908_v59 = vsel %vm1878_vm8, %v9273_v0, %v5607_v34 }
 0x19a   : > { %v5615_v6 = vpop.permute.xlu0 %5614  ;;  %v5611_v15 = vunpack.i.l.bf16 %v5610_v30  ;;  %v5612_v22 = vunpack.i.h.bf16 %v5610_v30 }
 0x19b   : > { %4779 = vmatmul.mubr.msk.bf16.gmra.mrb[24].mxu0 %vm2020_vm11, %v1990_v36  ;;  %v5617_v44 = vunpack.i.h.bf16 %v5615_v6  ;;  %v5616_v23 = vunpack.i.l.bf16 %v5615_v6 }
 0x19c   : > { %v1909_v25 = vsel %vm1878_vm8, %v9274_v48, %v5611_v15  ;;  %v1910_v46 = vsel %vm1878_vm8, %v9275_v3, %v5612_v22  ;;  %5649 = vrot.lane.b32.xlu0 %v5648_v2, %s6315_s23 }
 0x19d   : > { %v5620_v43 = vpop.permute.xlu1 %5619  ;;  %v1940_v11 = vsel %vm1911_vm9, %v1907_v49, %v5616_v23  ;;  %v1941_v62 = vsel %vm1911_vm9, %v1908_v59, %v5617_v44 }
 0x19e   : > { %v5625_v17 = vpop.permute.xlu0 %5624  ;;  %v5622_v14 = vunpack.i.h.bf16 %v5620_v43  ;;  %v5621_v58 = vunpack.i.l.bf16 %v5620_v43 }
 0x19f   : > { %v5627_v24 = vunpack.i.h.bf16 %v5625_v17  ;;  %v5626_v27 = vunpack.i.l.bf16 %v5625_v17 }
 0x1a0   : > { %v1942_v40 = vsel %vm1911_vm9, %v1909_v25, %v5621_v58  ;;  %v1943_v20 = vsel %vm1911_vm9, %v1910_v46, %v5622_v14  ;;  %5654 = vrot.lane.b32.xlu0 %v5653_v21, %s6316_s26 }
 0x1a1   : > { %v1973_v33 = vsel %vm1944_vm10, %v1940_v11, %v5626_v27  ;;  %v1974_v45 = vsel %vm1944_vm10, %v1941_v62, %v5627_v24  ;;  %v5630_v4 = vpop.permute.xlu1 %5629 }
 0x1a2   : > { %v5632_v19 = vunpack.i.h.bf16 %v5630_v4  ;;  %v5631_v35 = vunpack.i.l.bf16 %v5630_v4  ;;  %v1991_v7 = vpack.c.bf16 %v1974_v45, %v1973_v33 }
 0x1a4   : > { %v1975_v52 = vsel %vm1944_vm10, %v1942_v40, %v5631_v35  ;;  %v1976_v50 = vsel %vm1944_vm10, %v1943_v20, %v5632_v19  ;;  %4782 = vmatprep.mubr.msk.bf16.mxu0 %vm2020_vm11, %v1991_v7 }
 0x1a5   : > { %v1992_v56 = vpack.c.bf16 %v1976_v50, %v1975_v52 }
 0x1a7   : > { %4783 = vmatmul.mubr.msk.bf16.gmra.mrb[28].mxu0 %vm2020_vm11, %v1992_v56 }
 0x226   : > { %v4756_v8 = vpop.f32.mrb[0].mxu0 }
 0x227   : > { %v2116_v54 = vadd.f32 %v4756_v8, %v7980_v31  ;;  %v2107_v55 = vpop.f32.mrb[1].mxu0 }
 0x228   : > { %v2108_v9 = vadd.f32 %v7980_v31, %v2107_v55  ;;  %v4757_v37 = vpop.f32.mrb[2].mxu0 }
 0x229   : > { %v2236_v18 = vmax.f32 %v2116_v54, 0.0  ;;  %v2119_v61 = vadd.f32 %v4757_v37, %v7980_v31  ;;  %v2110_v51 = vpop.f32.mrb[3].mxu0 }
 0x22a   : > { %v2234_v42 = vmax.f32 %v2108_v9, 0.0  ;;  %v2111_v26 = vadd.f32 %v7980_v31, %v2110_v51 }
 0x22b   : > { %2324 = vst.msk [vmem:[#allocation3 + $0x31] sm:$0xff] %vm1746_vm2, %v2236_v18  ;;  %v2237_v63 = vmax.f32 %v2119_v61, 0.0 }
 0x22c   : > { %2322 = vst.msk [vmem:[#allocation3 + $0x19] sm:$0xff] %vm1746_vm2, %v2234_v42  ;;  %v2235_v38 = vmax.f32 %v2111_v26, 0.0 }
 0x22d   : > { %2325 = vst.msk [vmem:[#allocation3 + $0x39] sm:$0xff] %vm1746_vm2, %v2237_v63 }
 0x22e   : > { %2323 = vst.msk [vmem:[#allocation3 + $0x21] sm:$0xff] %vm1746_vm2, %v2235_v38 }
 0x232   : > { %v4760_v29 = vpop.f32.mrb[4].mxu0  ;;  %v2452_v30 = vld [vmem:[#allocation3 + $0x30] sm:$0xff] }
 0x233   : > { %v2132_v13 = vadd.f32 %v4760_v29, %v7980_v31  ;;  %v2123_v28 = vpop.f32.mrb[5].mxu0  ;;  %v2390_v6 = vld [vmem:[#allocation3 + $0x31] sm:$0xff]  ;;  %v2388_v27 = vld [vmem:[#allocation3 + $0x19] sm:$0xff] }
 0x234   : > { %v2124_v36 = vadd.f32 %v7980_v31, %v2123_v28  ;;  %v4761_v34 = vpop.f32.mrb[6].mxu0  ;;  %v2453_v10 = vld [vmem:[#allocation3 + $0x38] sm:$0xff] }
 0x235   : > { %v2391_v44 = vld [vmem:[#allocation3 + $0x39] sm:$0xff]  ;;  %v2240_v23 = vmax.f32 %v2132_v13, 0.0  ;;  %v2135_v15 = vadd.f32 %v4761_v34, %v7980_v31  ;;  %v2126_v43 = vpop.f32.mrb[7].mxu0  ;;  %v5668_v57 = vpack.i.bf16 %v2453_v10, %v2452_v30  ;;  %v2389_v14 = vld [vmem:[#allocation3 + $0x21] sm:$0xff] }
 0x236   : > { %v5658_v49 = vpack.i.bf16 %v2391_v44, %v2390_v6  ;;  %v2238_v0 = vmax.f32 %v2124_v36, 0.0  ;;  %v2127_v59 = vadd.f32 %v7980_v31, %v2126_v43  ;;  %v2422_v22 = vld [vmem:[#allocation3 + $0x32] sm:$0xff]  ;;  %v2423_v17 = vld [vmem:[#allocation3 + $0x3a] sm:$0xff]  ;;  %v5673_v62 = vpack.i.bf16 %v2389_v14, %v2388_v27  ;;  %v2421_v33 = vld [vmem:[#allocation3 + $0x22] sm:$0xff] }
 0x237   : > { %2328 = vst.msk [vmem:[#allocation3 + $0x61] sm:$0xff] %vm1746_vm2, %v2240_v23  ;;  %v2241_v58 = vmax.f32 %v2135_v15, 0.0  ;;  %5669 = vrot.lane.b32.xlu1 %v5668_v57, %s6311_s19  ;;  %v5663_v11 = vpack.i.bf16 %v2423_v17, %v2422_v22  ;;  %v2451_v48 = vld [vmem:[#allocation3 + $0x20] sm:$0xff]  ;;  %v2450_v45 = vld [vmem:[#allocation3 + $0x18] sm:$0xff] }
 0x238   : > { %5659 = vrot.lane.b32.xlu0 %v5658_v49, %s6307_s9  ;;  %2326 = vst.msk [vmem:[#allocation3 + $0x49] sm:$0xff] %vm1746_vm2, %v2238_v0  ;;  %v2239_v24 = vmax.f32 %v2127_v59, 0.0  ;;  %v2420_v25 = vld [vmem:[#allocation3 + $0x1a] sm:$0xff]  ;;  %v5683_v4 = vpack.i.bf16 %v2451_v48, %v2450_v45 }
 0x239   : > { %2329 = vst.msk [vmem:[#allocation3 + $0x69] sm:$0xff] %vm1746_vm2, %v2241_v58  ;;  %v5678_v3 = vpack.i.bf16 %v2421_v33, %v2420_v25 }
 0x23a   : > { %2327 = vst.msk [vmem:[#allocation3 + $0x51] sm:$0xff] %vm1746_vm2, %v2239_v24 }
 0x23b   : > { %5674 = vrot.lane.b32.xlu1 %v5673_v62, %s6307_s9 }
 0x23c   : > { %5664 = vrot.lane.b32.xlu0 %v5663_v11, %s6309_s11 }
 0x23e   : > { %v4764_v46 = vpop.f32.mrb[8].mxu0  ;;  %v2394_v20 = vld [vmem:[#allocation3 + $0x61] sm:$0xff] }
 0x23f   : > { %v2148_v19 = vadd.f32 %v4764_v46, %v7980_v31  ;;  %v2139_v35 = vpop.f32.mrb[9].mxu0  ;;  %5679 = vrot.lane.b32.xlu1 %v5678_v3, %s6309_s11  ;;  %v2392_v16 = vld [vmem:[#allocation3 + $0x49] sm:$0xff] }
 0x240   : > { %5684 = vrot.lane.b32.xlu0 %v5683_v4, %s6311_s19  ;;  %v2140_v7 = vadd.f32 %v7980_v31, %v2139_v35  ;;  %v4765_v40 = vpop.f32.mrb[10].mxu0  ;;  %v2395_v52 = vld [vmem:[#allocation3 + $0x69] sm:$0xff] }
 0x241   : > { %v2244_v50 = vmax.f32 %v2148_v19, 0.0  ;;  %v2151_v56 = vadd.f32 %v4765_v40, %v7980_v31  ;;  %v2142_v47 = vpop.f32.mrb[11].mxu0  ;;  %v5693_v39 = vpack.i.bf16 %v2395_v52, %v2394_v20  ;;  %v2426_v32 = vld [vmem:[#allocation3 + $0x62] sm:$0xff]  ;;  %v2427_v41 = vld [vmem:[#allocation3 + $0x6a] sm:$0xff]  ;;  %v2425_v54 = vld [vmem:[#allocation3 + $0x52] sm:$0xff] }
 0x242   : > { %v2242_v1 = vmax.f32 %v2140_v7, 0.0  ;;  %v2143_v53 = vadd.f32 %v7980_v31, %v2142_v47  ;;  %v2393_v5 = vld [vmem:[#allocation3 + $0x51] sm:$0xff]  ;;  %v5698_v12 = vpack.i.bf16 %v2427_v41, %v2426_v32 }
 0x243   : > { %2332 = vst.msk [vmem:[#allocation3 + $0x91] sm:$0xff] %vm1746_vm2, %v2244_v50  ;;  %v2245_v60 = vmax.f32 %v2151_v56, 0.0  ;;  %5689 = vrot.lane.b32.xlu1 %v5673_v62, %s6313_s21  ;;  %v5703_v21 = vpack.i.bf16 %v2393_v5, %v2392_v16  ;;  %v2424_v8 = vld [vmem:[#allocation3 + $0x4a] sm:$0xff] }
 0x244   : > { %5694 = vrot.lane.b32.xlu0 %v5693_v39, %s6307_s9  ;;  %2330 = vst.msk [vmem:[#allocation3 + $0x79] sm:$0xff] %vm1746_vm2, %v2242_v1  ;;  %v2243_v2 = vmax.f32 %v2143_v53, 0.0  ;;  %v5708_v55 = vpack.i.bf16 %v2425_v54, %v2424_v8  ;;  %v8042_v53 = vld [vmem:[#allocation3 + $0x48] sm:$0xff] }
 0x245   : > { %2333 = vst.msk [vmem:[#allocation3 + $0x99] sm:$0xff] %vm1746_vm2, %v2245_v60 }
 0x246   : > { %2331 = vst.msk [vmem:[#allocation3 + $0x81] sm:$0xff] %vm1746_vm2, %v2243_v2 }
 0x247   : > { %5704 = vrot.lane.b32.xlu1 %v5703_v21, %s6307_s9 }
 0x248   : > { %5699 = vrot.lane.b32.xlu0 %v5698_v12, %s6309_s11 }
 0x24a   : > { %v4768_v9 = vpop.f32.mrb[12].mxu0  ;;  %v2398_v42 = vld [vmem:[#allocation3 + $0x91] sm:$0xff] }
 0x24b   : > { %v2164_v37 = vadd.f32 %v4768_v9, %v7980_v31  ;;  %v2155_v18 = vpop.f32.mrb[13].mxu0  ;;  %5709 = vrot.lane.b32.xlu1 %v5708_v55, %s6309_s11  ;;  %v2396_v28 = vld [vmem:[#allocation3 + $0x79] sm:$0xff] }
 0x24c   : > { %v2156_v61 = vadd.f32 %v7980_v31, %v2155_v18  ;;  %v4769_v51 = vpop.f32.mrb[14].mxu0  ;;  %v2399_v26 = vld [vmem:[#allocation3 + $0x99] sm:$0xff] }
 0x24d   : > { %v2248_v63 = vmax.f32 %v2164_v37, 0.0  ;;  %v2167_v38 = vadd.f32 %v4769_v51, %v7980_v31  ;;  %v2158_v29 = vpop.f32.mrb[15].mxu0  ;;  %v5713_v13 = vpack.i.bf16 %v2399_v26, %v2398_v42  ;;  %v2397_v30 = vld [vmem:[#allocation3 + $0x81] sm:$0xff]  ;;  %v2430_v6 = vld [vmem:[#allocation3 + $0x92] sm:$0xff] }
 0x24e   : > { %v2246_v36 = vmax.f32 %v2156_v61, 0.0  ;;  %v2159_v34 = vadd.f32 %v7980_v31, %v2158_v29  ;;  %v5723_v10 = vpack.i.bf16 %v2397_v30, %v2396_v28  ;;  %v2431_v44 = vld [vmem:[#allocation3 + $0x9a] sm:$0xff]  ;;  %v2429_v43 = vld [vmem:[#allocation3 + $0x82] sm:$0xff] }
 0x24f   : > { %2336 = vst.msk [vmem:[#allocation3 + $0xc1] sm:$0xff] %vm1746_vm2, %v2248_v63  ;;  %v2249_v23 = vmax.f32 %v2167_v38, 0.0  ;;  %5714 = vrot.lane.b32.xlu0 %v5713_v13, %s6307_s9  ;;  %v2428_v15 = vld [vmem:[#allocation3 + $0x7a] sm:$0xff]  ;;  %v5718_v49 = vpack.i.bf16 %v2431_v44, %v2430_v6 }
 0x250   : > { %2334 = vst.msk [vmem:[#allocation3 + $0xa9] sm:$0xff] %vm1746_vm2, %v2246_v36  ;;  %v2247_v57 = vmax.f32 %v2159_v34, 0.0  ;;  %5724 = vrot.lane.b32.xlu1 %v5723_v10, %s6307_s9  ;;  %v5728_v0 = vpack.i.bf16 %v2429_v43, %v2428_v15 }
 0x251   : > { %2337 = vst.msk [vmem:[#allocation3 + $0xc9] sm:$0xff] %vm1746_vm2, %v2249_v23 }
 0x252   : > { %2335 = vst.msk [vmem:[#allocation3 + $0xb1] sm:$0xff] %vm1746_vm2, %v2247_v57 }
 0x253   : > { %5719 = vrot.lane.b32.xlu0 %v5718_v49, %s6309_s11 }
 0x254   : > { %5729 = vrot.lane.b32.xlu1 %v5728_v0, %s6309_s11 }
 0x256   : > { %v4772_v59 = vpop.f32.mrb[16].mxu0  ;;  %v2402_v24 = vld [vmem:[#allocation3 + $0xc1] sm:$0xff] }
 0x257   : > { %v2180_v22 = vadd.f32 %v4772_v59, %v7980_v31  ;;  %v2171_v17 = vpop.f32.mrb[17].mxu0  ;;  %v2400_v33 = vld [vmem:[#allocation3 + $0xa9] sm:$0xff] }
 0x258   : > { %v2172_v14 = vadd.f32 %v7980_v31, %v2171_v17  ;;  %v4773_v58 = vpop.f32.mrb[18].mxu0  ;;  %v2403_v27 = vld [vmem:[#allocation3 + $0xc9] sm:$0xff] }
 0x259   : > { %v2252_v11 = vmax.f32 %v2180_v22, 0.0  ;;  %v2183_v62 = vadd.f32 %v4773_v58, %v7980_v31  ;;  %v2174_v48 = vpop.f32.mrb[19].mxu0  ;;  %v5733_v25 = vpack.i.bf16 %v2403_v27, %v2402_v24  ;;  %v2401_v45 = vld [vmem:[#allocation3 + $0xb1] sm:$0xff]  ;;  %v2434_v19 = vld [vmem:[#allocation3 + $0xc2] sm:$0xff] }
 0x25a   : > { %v2250_v4 = vmax.f32 %v2172_v14, 0.0  ;;  %v2175_v3 = vadd.f32 %v7980_v31, %v2174_v48  ;;  %v5743_v46 = vpack.i.bf16 %v2401_v45, %v2400_v33  ;;  %v2435_v35 = vld [vmem:[#allocation3 + $0xca] sm:$0xff]  ;;  %v2433_v20 = vld [vmem:[#allocation3 + $0xb2] sm:$0xff] }
 0x25b   : > { %2340 = vst.msk [vmem:[#allocation3 + $0xf1] sm:$0xff] %vm1746_vm2, %v2252_v11  ;;  %v2253_v7 = vmax.f32 %v2183_v62, 0.0  ;;  %5734 = vrot.lane.b32.xlu0 %v5733_v25, %s6307_s9  ;;  %v2432_v40 = vld [vmem:[#allocation3 + $0xaa] sm:$0xff]  ;;  %v5738_v50 = vpack.i.bf16 %v2435_v35, %v2434_v19 }
 0x25c   : > { %2338 = vst.msk [vmem:[#allocation3 + $0xd9] sm:$0xff] %vm1746_vm2, %v2250_v4  ;;  %v2251_v52 = vmax.f32 %v2175_v3, 0.0  ;;  %5744 = vrot.lane.b32.xlu1 %v5743_v46, %s6307_s9  ;;  %v5748_v56 = vpack.i.bf16 %v2433_v20, %v2432_v40  ;;  %v6276_v48 = vld [vmem:[%s9069_s3] sm:$0xff]  }
 0x25d   : > { %2341 = vst.msk [vmem:[#allocation3 + $0xf9] sm:$0xff] %vm1746_vm2, %v2253_v7  ;;  %4862 = vmatprep.subr.bf16.mxu1 %v6276_v48  ;;  %4786 = vmatprep.subr.bf16.mxu0 %v6276_v48 }
 0x25e   : > { %2339 = vst.msk [vmem:[#allocation3 + $0xe1] sm:$0xff] %vm1746_vm2, %v2251_v52  ;;  %4867 = vmatpush3.bf16.msra.mxu1 %v6276_v48  ;;  %4787 = vmatpush3.bf16.msra.mxu0 %v6276_v48 }
 0x25f   : > { %5739 = vrot.lane.b32.xlu0 %v5738_v50, %s6309_s11 }
 0x260   : > { %5749 = vrot.lane.b32.xlu1 %v5748_v56, %s6309_s11  ;;  %v6277_v56 = vld [vmem:[%s9069_s3 + $0x8] sm:$0xff]  }
 0x261   : > { %4863 = vmatprep.subr.bf16.mxu1 %v6277_v56  ;;  %4788 = vmatprep.subr.bf16.mxu0 %v6277_v56 }
 0x262   : > { %v4776_v47 = vpop.f32.mrb[20].mxu0  ;;  %v8049_v2 = vld [vmem:[#allocation3 + $0xf0] sm:$0xff]  ;;  %4868 = vmatpush3.bf16.msra.mxu1 %v6277_v56  ;;  %4789 = vmatpush3.bf16.msra.mxu0 %v6277_v56 }
 0x263   : > { %v2196_v39 = vadd.f32 %v4776_v47, %v7980_v31  ;;  %v2187_v1 = vpop.f32.mrb[21].mxu0  ;;  %v8044_v32 = vld [vmem:[#allocation3 + $0xd8] sm:$0xff] }
 0x264   : > { %v2188_v41 = vadd.f32 %v7980_v31, %v2187_v1  ;;  %v4777_v5 = vpop.f32.mrb[22].mxu0  ;;  %v5753_v60 = vpack.i.bf16 %v8044_v32, %v8042_v53  ;;  %v8051_v16 = vld [vmem:[#allocation3 + $0xf8] sm:$0xff] }
 0x265   : > { %v2256_v12 = vmax.f32 %v2196_v39, 0.0  ;;  %v2199_v21 = vadd.f32 %v4777_v5, %v7980_v31  ;;  %v2190_v8 = vpop.f32.mrb[23].mxu0  ;;  %v5778_v54 = vpack.i.bf16 %v8051_v16, %v8049_v2  ;;  %v2407_v55 = vld [vmem:[#allocation3 + $0xf9] sm:$0xff]  ;;  %v2406_v61 = vld [vmem:[#allocation3 + $0xf1] sm:$0xff]  ;;  %v2405_v13 = vld [vmem:[#allocation3 + $0xe1] sm:$0xff] }
 0x266   : > { %v2254_v9 = vmax.f32 %v2188_v41, 0.0  ;;  %v2191_v37 = vadd.f32 %v7980_v31, %v2190_v8  ;;  %5754 = vrot.lane.b32.xlu0 %v5753_v60, %s6311_s19  ;;  %v5758_v42 = vpack.i.bf16 %v2407_v55, %v2406_v61  ;;  %v2438_v26 = vld [vmem:[#allocation3 + $0xf2] sm:$0xff]  ;;  %v2439_v63 = vld [vmem:[#allocation3 + $0xfa] sm:$0xff]  ;;  %v2437_v0 = vld [vmem:[#allocation3 + $0xe2] sm:$0xff]  ;;  %v8125_v8 = vpop.permute.xlu0 %5634 }
 0x267   : > { %2344 = vst.msk [vmem:[#allocation3 + $0x121] sm:$0xff] %vm1746_vm2, %v2256_v12  ;;  %v2257_v18 = vmax.f32 %v2199_v21, 0.0  ;;  %5779 = vrot.lane.b32.xlu1 %v5778_v54, %s6314_s22  ;;  %v5763_v38 = vpack.i.bf16 %v2439_v63, %v2438_v26  ;;  %v2404_v10 = vld [vmem:[#allocation3 + $0xd9] sm:$0xff]  ;;  %v6279_v21 = vld [vmem:[%s9069_s3 + $0x18] sm:$0xff]   ;;  %v6280_v55 = vld [vmem:[%s9069_s3 + $0x20] ss:$0 sps:$4 sm:$0xff]  }
 0x268   : > { %2342 = vst.msk [vmem:[#allocation3 + $0x109] sm:$0xff] %vm1746_vm2, %v2254_v9  ;;  %v2255_v51 = vmax.f32 %v2191_v37, 0.0  ;;  %v5793_v15 = vpack.i.bf16 %v2405_v13, %v2404_v10  ;;  %v2436_v49 = vld [vmem:[#allocation3 + $0xda] sm:$0xff]  ;;  %v4037_v37 = vsel %vm4035_vm12, %v6280_v55, 0 }
 0x269   : > { %2345 = vst.msk [vmem:[#allocation3 + $0x129] sm:$0xff] %vm1746_vm2, %v2257_v18  ;;  %v5798_v17 = vpack.i.bf16 %v2437_v0, %v2436_v49  ;;  %v8080_v58 = vld [vmem:[#allocation3 + $0xe0] sm:$0xff] }
 0x26a   : > { %2343 = vst.msk [vmem:[#allocation3 + $0x111] sm:$0xff] %vm1746_vm2, %v2255_v51  ;;  %5759 = vrot.lane.b32.xlu0 %v5758_v42, %s6307_s9  ;;  %v5803_v27 = vpack.i.bf16 %v8049_v2, %v8080_v58  ;;  %v6278_v41 = vld [vmem:[%s9069_s3 + $0x10] sm:$0xff]   ;;  %v8134_v26 = vpop.permute.xlu0 %5639 }
 0x26b   : > { %5784 = vrot.lane.b32.xlu1 %v5758_v42, %s6315_s23  ;;  %4864 = vmatprep.subr.bf16.mxu1 %v6278_v41 }
 0x26c   : > { %4790 = vmatprep.subr.bf16.mxu0 %v6278_v41  ;;  %4869 = vmatpush3.bf16.msra.mxu1 %v6278_v41 }
 0x26d   : > { %4791 = vmatpush3.bf16.msra.mxu0 %v6278_v41  ;;  %4865 = vmatprep.subr.bf16.mxu1 %v6279_v21 }
 0x26e   : > { %v4780_v29 = vpop.f32.mrb[24].mxu0  ;;  %5764 = vrot.lane.b32.xlu0 %v5763_v38, %s6309_s11  ;;  %v2410_v45 = vld [vmem:[#allocation3 + $0x121] sm:$0xff]  ;;  %4792 = vmatprep.subr.bf16.mxu0 %v6279_v21 }
 0x26f   : > { %v2212_v28 = vadd.f32 %v4780_v29, %v7980_v31  ;;  %v2203_v30 = vpop.f32.mrb[25].mxu0  ;;  %5789 = vrot.lane.b32.xlu1 %v5763_v38, %s6316_s26  ;;  %v8076_v14 = vld [vmem:[#allocation3 + $0x108] sm:$0xff]  ;;  %v8112_v5 = vld [vmem:[#allocation3 + $0x120] sm:$0xff]  ;;  %v8140_v29 = vpop.permute.xlu0 %5644 }
 0x270   : > { %v2204_v36 = vadd.f32 %v7980_v31, %v2203_v30  ;;  %v4781_v34 = vpop.f32.mrb[26].mxu0  ;;  %v5818_v24 = vpack.i.bf16 %v8076_v14, %v8051_v16  ;;  %v2411_v11 = vld [vmem:[#allocation3 + $0x129] sm:$0xff]  ;;  %4870 = vmatpush3.bf16.msra.mxu1 %v6279_v21 }
 0x271   : > { %v2260_v6 = vmax.f32 %v2212_v28, 0.0  ;;  %v2215_v44 = vadd.f32 %v4781_v34, %v7980_v31  ;;  %v2206_v23 = vpop.f32.mrb[27].mxu0  ;;  %v5823_v46 = vpack.i.bf16 %v2411_v11, %v2410_v45  ;;  %v2442_v40 = vld [vmem:[#allocation3 + $0x122] sm:$0xff]  ;;  %v2443_v20 = vld [vmem:[#allocation3 + $0x12a] sm:$0xff]  ;;  %4793 = vmatpush3.bf16.msra.mxu0 %v6279_v21  ;;  %4970 = vmatprep.subr.msk.bf16.mxu1 %vm4035_vm12, %v6280_v55 }
 0x272   : > { %v2258_v43 = vmax.f32 %v2204_v36, 0.0  ;;  %v2207_v57 = vadd.f32 %v7980_v31, %v2206_v23  ;;  %5769 = vrot.lane.b32.xlu0 %v5758_v42, %s6313_s21  ;;  %v5828_v1 = vpack.i.bf16 %v2443_v20, %v2442_v40  ;;  %v8118_v12 = vld [vmem:[#allocation3 + $0x110] sm:$0xff]  ;;  %4969 = vmatprep.subr.msk.bf16.mxu0 %vm4035_vm12, %v6280_v55 }
 0x273   : > { %2348 = vst.msk [vmem:[#allocation3 + $0x151] sm:$0xff] %vm1746_vm2, %v2260_v6  ;;  %v2261_v59 = vmax.f32 %v2215_v44, 0.0  ;;  %5794 = vrot.lane.b32.xlu1 %v5793_v15, %s6307_s9  ;;  %v5868_v54 = vpack.i.bf16 %v8118_v12, %v8076_v14  ;;  %v2598_v9 = vld [vmem:[#allocation3 + $0x111] sm:$0xff]  ;;  %v2597_v18 = vld [vmem:[#allocation3 + $0x109] sm:$0xff]  ;;  %v5883_v28 = vpack.i.bf16 %v8112_v5, %v8118_v12  ;;  %v8147_v10 = vpop.permute.xlu0 %5649 }
 0x274   : > { %2346 = vst.msk [vmem:[#allocation3 + $0x139] sm:$0xff] %vm1746_vm2, %v2258_v43  ;;  %v2259_v22 = vmax.f32 %v2207_v57, 0.0  ;;  %v5873_v61 = vpack.i.bf16 %v2598_v9, %v2597_v18  ;;  %v2629_v51 = vld [vmem:[#allocation3 + $0x10a] sm:$0xff]  ;;  %v2630_v42 = vld [vmem:[#allocation3 + $0x112] sm:$0xff]  ;;  %4871 = vmatpush3.bf16.msra.mxu1 %v4037_v37 }
 0x275   : > { %2349 = vst.msk [vmem:[#allocation3 + $0x159] sm:$0xff] %vm1746_vm2, %v2261_v59  ;;  %4795 = vmatpush3.bf16.msra.mxu0 %v4037_v37  ;;  %v5878_v63 = vpack.i.bf16 %v2630_v42, %v2629_v51 }
 0x276   : > { %2347 = vst.msk [vmem:[#allocation3 + $0x141] sm:$0xff] %vm1746_vm2, %v2259_v22  ;;  %5774 = vrot.lane.b32.xlu0 %v5763_v38, %s6317_s8 }
 0x277   : > { %5799 = vrot.lane.b32.xlu1 %v5798_v17, %s6309_s11  ;;  %v8153_v43 = vpop.permute.xlu0 %5654 }
 0x27a   : > { %v4784_v62 = vpop.f32.mrb[28].mxu0  ;;  %5819 = vrot.lane.b32.xlu0 %v5818_v24, %s6311_s19  ;;  %v2414_v36 = vld [vmem:[#allocation3 + $0x151] sm:$0xff] }
 0x27b   : > { %v2228_v25 = vadd.f32 %v4784_v62, %v7980_v31  ;;  %v2219_v33 = vpop.f32.mrb[29].mxu0  ;;  %5804 = vrot.lane.b32.xlu1 %v5803_v27, %s6311_s19  ;;  %v2474_v38 = vld [vmem:[#allocation3 + $0x138] sm:$0xff]  ;;  %v2571_v57 = vld [vmem:[#allocation3 + $0x150] sm:$0xff] }
 0x27c   : > { %v2220_v4 = vadd.f32 %v7980_v31, %v2219_v33  ;;  %v4785_v3 = vpop.f32.mrb[30].mxu0  ;;  %v2415_v30 = vld [vmem:[#allocation3 + $0x159] sm:$0xff] }
 0x27d   : > { %v2264_v19 = vmax.f32 %v2228_v25, 0.0  ;;  %v2231_v35 = vadd.f32 %v4785_v3, %v7980_v31  ;;  %v2222_v7 = vpop.f32.mrb[31].mxu0  ;;  %v5903_v34 = vpack.i.bf16 %v2415_v30, %v2414_v36  ;;  %v2446_v6 = vld [vmem:[#allocation3 + $0x152] sm:$0xff]  ;;  %v2447_v44 = vld [vmem:[#allocation3 + $0x15a] sm:$0xff]  ;;  %v2634_v33 = vld [vmem:[#allocation3 + $0x142] sm:$0xff] }
 0x27e   : > { %v2262_v52 = vmax.f32 %v2220_v4, 0.0  ;;  %v2223_v50 = vadd.f32 %v7980_v31, %v2222_v7  ;;  %5824 = vrot.lane.b32.xlu0 %v5823_v46, %s6307_s9  ;;  %v8106_v31 = vld [vmem:[#allocation3 + $0x128] sm:$0xff]  ;;  %v5908_v23 = vpack.i.bf16 %v2447_v44, %v2446_v6  ;;  %v2570_v22 = vld [vmem:[#allocation3 + $0x140] sm:$0xff] }
 0x27f   : > { %2352 = vst.msk [vmem:[#allocation3 + $0x181] sm:$0xff] %vm1746_vm2, %v2264_v19  ;;  %v2265_v47 = vmax.f32 %v2231_v35, 0.0  ;;  %5809 = vrot.lane.b32.xlu1 %v5793_v15, %s6313_s21  ;;  %v5843_v60 = vpack.i.bf16 %v8106_v31, %v8112_v5  ;;  %v5898_v13 = vpack.i.bf16 %v2474_v38, %v8106_v31  ;;  %v2572_v15 = vld [vmem:[#allocation3 + $0x158] sm:$0xff]  ;;  %v2602_v24 = vld [vmem:[#allocation3 + $0x141] sm:$0xff]  ;;  %v5963_v7 = vpack.i.bf16 %v2571_v57, %v2570_v22 }
 0x280   : > { %2350 = vst.msk [vmem:[#allocation3 + $0x169] sm:$0xff] %vm1746_vm2, %v2262_v52  ;;  %v2263_v39 = vmax.f32 %v2223_v50, 0.0  ;;  %v5923_v49 = vpack.i.bf16 %v2572_v15, %v2571_v57  ;;  %v2601_v11 = vld [vmem:[#allocation3 + $0x139] sm:$0xff]  ;;  %v2361_v52 = vld [vmem:[#allocation3 + $0x50] sm:$0xff] }
 0x281   : > { %2353 = vst.msk [vmem:[#allocation3 + $0x189] sm:$0xff] %vm1746_vm2, %v2265_v47  ;;  %v5953_v62 = vpack.i.bf16 %v2602_v24, %v2601_v11  ;;  %v2633_v25 = vld [vmem:[#allocation3 + $0x13a] sm:$0xff] }
 0x282   : > { %2351 = vst.msk [vmem:[#allocation3 + $0x171] sm:$0xff] %vm1746_vm2, %v2263_v39  ;;  %5829 = vrot.lane.b32.xlu0 %v5828_v1, %s6309_s11  ;;  %v5958_v4 = vpack.i.bf16 %v2634_v33, %v2633_v25  ;;  %v2517_v24 = vld [vmem:[#allocation3 + $0x3a] sm:$0xff] }
 0x283   : > { %5814 = vrot.lane.b32.xlu1 %v5798_v17, %s6317_s8  ;;  %v5948_v17 = vpack.i.bf16 %v2570_v22, %v2474_v38 }
 0x286   : > { %5834 = vrot.lane.b32.xlu0 %v5823_v46, %s6313_s21  ;;  %v2512_v39 = vld [vmem:[#allocation3 + $0x181] sm:$0xff] }
 0x287   : > { %5844 = vrot.lane.b32.xlu1 %v5843_v60, %s6314_s22  ;;  %v2575_v9 = vld [vmem:[#allocation3 + $0x180] sm:$0xff] }
 0x288   : > { %v2481_v40 = vld [vmem:[#allocation3 + $0x188] sm:$0xff] }
 0x289   : > { %v5983_v50 = vpack.i.bf16 %v2361_v52, %v2481_v40  ;;  %v2513_v56 = vld [vmem:[#allocation3 + $0x189] sm:$0xff]  ;;  %v5998_v18 = vpack.i.bf16 %v2481_v40, %v2575_v9  ;;  %v2606_v42 = vld [vmem:[#allocation3 + $0x171] sm:$0xff] }
 0x28a   : > { %5839 = vrot.lane.b32.xlu0 %v5828_v1, %s6317_s8  ;;  %v5988_v41 = vpack.i.bf16 %v2513_v56, %v2512_v39  ;;  %v2544_v60 = vld [vmem:[#allocation3 + $0x182] sm:$0xff]  ;;  %v2545_v21 = vld [vmem:[#allocation3 + $0x18a] sm:$0xff]  ;;  %v2638_v36 = vld [vmem:[#allocation3 + $0x172] sm:$0xff] }
 0x28b   : > { %5849 = vrot.lane.b32.xlu1 %v5823_v46, %s6315_s23  ;;  %v2478_v46 = vld [vmem:[#allocation3 + $0x168] sm:$0xff]  ;;  %v5993_v55 = vpack.i.bf16 %v2545_v21, %v2544_v60  ;;  %v8237_v39 = vld [vmem:[%s9071_s5] sm:$0x3] }
 0x28c   : > { %v5978_v19 = vpack.i.bf16 %v2478_v46, %v2572_v15  ;;  %v2637_v30 = vld [vmem:[#allocation3 + $0x16a] sm:$0xff]  ;;  %4971 = vmatprep.subr.msk.bf16.mxu1 %vm2069_vm3, %v8237_v39  ;;  %v2515_v21 = vld [vmem:[#allocation3 + $0x22] sm:$0xff] }
 0x28d   : > { %v6033_v44 = vpack.i.bf16 %v2638_v36, %v2637_v30  ;;  %v2484_v15 = vld [vmem:[#allocation3 + $0x31] sm:$0xff]  ;;  %v2581_v40 = vld [vmem:[#allocation3 + $0x49] sm:$0xff] }
 0x28e   : > { %5869 = vrot.lane.b32.xlu0 %v5868_v54, %s6314_s22  ;;  %v2613_v60 = vld [vmem:[#allocation3 + $0x4a] sm:$0xff] }
 0x28f   : > { %5854 = vrot.lane.b32.xlu1 %v5828_v1, %s6316_s26 }
 0x292   : > { %5874 = vrot.lane.b32.xlu0 %v5873_v61, %s6315_s23 }
 0x293   : > { %5859 = vrot.lane.b32.xlu1 %v5873_v61, %s6307_s9 }
 0x296   : > { %5879 = vrot.lane.b32.xlu0 %v5878_v63, %s6316_s26 }
 0x297   : > { %5864 = vrot.lane.b32.xlu1 %v5878_v63, %s6309_s11 }
 0x29a   : > { %5899 = vrot.lane.b32.xlu0 %v5898_v13, %s6311_s19  ;;  %v2605_v13 = vld [vmem:[#allocation3 + $0x169] sm:$0xff] }
 0x29b   : > { %5884 = vrot.lane.b32.xlu1 %v5883_v28, %s6311_s19  ;;  %v6028_v28 = vpack.i.bf16 %v2606_v42, %v2605_v13  ;;  %v2547_v13 = vld [vmem:[#allocation3 + $0x30] sm:$0xff] }
 0x29e   : > { %5904 = vrot.lane.b32.xlu0 %v5903_v34, %s6307_s9 }
 0x29f   : > { %5889 = vrot.lane.b32.xlu1 %v5873_v61, %s6313_s21  ;;  %v2574_v61 = vld [vmem:[#allocation3 + $0x170] sm:$0xff] }
 0x2a0   : > { %v6023_v51 = vpack.i.bf16 %v2574_v61, %v2478_v46  ;;  %v6043_v33 = vpack.i.bf16 %v2575_v9, %v2574_v61  ;;  %v6073_v46 = vpack.i.bf16 %v2361_v52, %v8042_v53  ;;  %v2614_v53 = vld [vmem:[#allocation3 + $0x52] sm:$0xff]  ;;  %v2514_v52 = vld [vmem:[#allocation3 + $0x1a] sm:$0xff] }
 0x2a1   : > { %v6093_v9 = vpack.i.bf16 %v2614_v53, %v2613_v60  ;;  %v6058_v61 = vpack.i.bf16 %v2515_v21, %v2514_v52 }
 0x2a2   : > { %5909 = vrot.lane.b32.xlu0 %v5908_v23, %s6309_s11 }
 0x2a3   : > { %5894 = vrot.lane.b32.xlu1 %v5878_v63, %s6317_s8 }
 0x2a6   : > { %5914 = vrot.lane.b32.xlu0 %v5903_v34, %s6313_s21 }
 0x2a7   : > { %5924 = vrot.lane.b32.xlu1 %v5923_v49, %s6314_s22 }
 0x2a9   : > { %v8157_v0 = vpop.permute.xlu1 %5669 }
 0x2aa   : > { %v8159_v59 = vpop.permute.xlu0 %5659  ;;  %5919 = vrot.lane.b32.xlu0 %v5908_v23, %s6317_s8 }
 0x2ab   : > { %5929 = vrot.lane.b32.xlu1 %v5903_v34, %s6315_s23 }
 0x2ad   : > { %v8163_v14 = vpop.permute.xlu1 %5674 }
 0x2ae   : > { %v8165_v27 = vpop.permute.xlu0 %5664  ;;  %5949 = vrot.lane.b32.xlu0 %v5948_v17, %s6314_s22  ;;  %v2516_v17 = vld [vmem:[#allocation3 + $0x32] sm:$0xff] }
 0x2af   : > { %5934 = vrot.lane.b32.xlu1 %v5908_v23, %s6316_s26  ;;  %v2485_v23 = vld [vmem:[#allocation3 + $0x39] sm:$0xff] }
 0x2b0   : > { %v6038_v49 = vpack.i.bf16 %v2485_v23, %v2484_v15  ;;  %v2362_v15 = vld [vmem:[#allocation3 + $0x60] sm:$0xff] }
 0x2b1   : > { %v8169_v48 = vpop.permute.xlu1 %5679 }
 0x2b2   : > { %5954 = vrot.lane.b32.xlu0 %v5953_v62, %s6315_s23  ;;  %v8173_v45 = vpop.permute.xlu0 %5684 }
 0x2b3   : > { %5939 = vrot.lane.b32.xlu1 %v5953_v62, %s6307_s9 }
 0x2b5   : > { %v8175_v3 = vpop.permute.xlu1 %5689 }
 0x2b6   : > { %5959 = vrot.lane.b32.xlu0 %v5958_v4, %s6316_s26  ;;  %v8181_v20 = vpop.permute.xlu0 %5694 }
 0x2b7   : > { %5944 = vrot.lane.b32.xlu1 %v5958_v4, %s6309_s11 }
 0x2b9   : > { %v8179_v35 = vpop.permute.xlu1 %5704 }
 0x2ba   : > { %5979 = vrot.lane.b32.xlu0 %v5978_v19, %s6311_s19  ;;  %v8189_v1 = vpop.permute.xlu0 %5699 }
 0x2bb   : > { %5964 = vrot.lane.b32.xlu1 %v5963_v7, %s6311_s19  ;;  %v2582_v7 = vld [vmem:[#allocation3 + $0x51] sm:$0xff] }
 0x2bc   : > { %v6083_v56 = vpack.i.bf16 %v2582_v7, %v2581_v40  ;;  %v2584_v7 = vld [vmem:[#allocation3 + $0x69] sm:$0xff] }
 0x2bd   : > { %v8186_v47 = vpop.permute.xlu1 %5709  ;;  %v2615_v40 = vld [vmem:[#allocation3 + $0x62] sm:$0xff] }
 0x2be   : > { %5984 = vrot.lane.b32.xlu0 %v5983_v50, %s6311_s19 }
 0x2bf   : > { %5969 = vrot.lane.b32.xlu1 %v5953_v62, %s6313_s21  ;;  %v6063_v62 = vpack.i.bf16 %v2517_v24, %v2516_v17 }
 0x2c1   : > { %v8193_v54 = vpop.permute.xlu0 %5714 }
 0x2c2   : > { %5989 = vrot.lane.b32.xlu0 %v5988_v41, %s6313_s21  ;;  %v8195_v37 = vpop.permute.xlu1 %5724 }
 0x2c3   : > { %5974 = vrot.lane.b32.xlu1 %v5958_v4, %s6317_s8 }
 0x2c5   : > { %v8199_v63 = vpop.permute.xlu0 %5719 }
 0x2c6   : > { %5994 = vrot.lane.b32.xlu0 %v5993_v55, %s6317_s8  ;;  %9276 = vst [vmem:[#allocation11_spill] sm:$0xff] %v8199_v63  ;;  %v8202_v38 = vpop.permute.xlu1 %5729 }
 0x2c7   : > { %5999 = vrot.lane.b32.xlu1 %v5998_v18, %s6314_s22  ;;  %9277 = vst [vmem:[#allocation14_spill] sm:$0xff] %v8202_v38 }
 0x2ca   : > { %6024 = vrot.lane.b32.xlu0 %v6023_v51, %s6314_s22  ;;  %v2548_v51 = vld [vmem:[#allocation3 + $0x38] sm:$0xff] }
 0x2cb   : > { %6004 = vrot.lane.b32.xlu1 %v5988_v41, %s6315_s23  ;;  %v6068_v30 = vpack.i.bf16 %v2548_v51, %v2547_v13 }
 0x2cd   : > { %v8205_v34 = vpop.permute.xlu0 %5734 }
 0x2ce   : > { %6029 = vrot.lane.b32.xlu0 %v6028_v28, %s6315_s23  ;;  %v8208_v6 = vpop.permute.xlu1 %5744  ;;  %v5737_v17 = vunpack.i.h.bf16 %v8205_v34  ;;  %v5736_v24 = vunpack.i.l.bf16 %v8205_v34  ;;  %v8274_v34 = vld [vmem:[#allocation3 + $0xc8] sm:$0xff] }
 0x2cf   : > { %9278 = vst [vmem:[#allocation13_spill] sm:$0xff] %v8208_v6  ;;  %6009 = vrot.lane.b32.xlu1 %v5993_v55, %s6316_s26 }
 0x2d1   : > { %v8213_v57 = vpop.permute.xlu0 %5739 }
 0x2d2   : > { %6034 = vrot.lane.b32.xlu0 %v6033_v44, %s6316_s26  ;;  %v8215_v22 = vpop.permute.xlu1 %5749  ;;  %v5742_v60 = vunpack.i.h.bf16 %v8213_v57  ;;  %v5741_v53 = vunpack.i.l.bf16 %v8213_v57  ;;  %v3684_v57 = vsel %vm1746_vm2, %v8274_v34, %v5737_v17 }
 0x2d3   : > { %6014 = vrot.lane.b32.xlu1 %v6028_v28, %s6307_s9  ;;  %9279 = vst [vmem:[#allocation16_spill] sm:$0xff] %v8215_v22 }
 0x2d4   : > { %v3716_v63 = vsel %vm1812_vm6, %v3684_v57, %v5742_v60 }
 0x2d6   : > { %6039 = vrot.lane.b32.xlu0 %v6038_v49, %s6313_s21 }
 0x2d7   : > { %6019 = vrot.lane.b32.xlu1 %v6033_v44, %s6309_s11 }
 0x2d8   : > { %v8219_v11 = vpop.permute.xlu0 %5754 }
 0x2d9   : > { %v8221_v25 = vpop.permute.xlu1 %5779  ;;  %v5757_v21 = vunpack.i.h.bf16 %v8219_v11 }
 0x2da   : > { %6064 = vrot.lane.b32.xlu0 %v6063_v62, %s6317_s8 }
 0x2db   : > { %6044 = vrot.lane.b32.xlu1 %v6043_v33, %s6311_s19 }
 0x2dc   : > { %v8225_v4 = vpop.permute.xlu0 %5759 }
 0x2dd   : > { %v8228_v19 = vpop.permute.xlu1 %5784 }
 0x2de   : > { %6074 = vrot.lane.b32.xlu0 %v6073_v46, %s6314_s22  ;;  %v5787_v60 = vunpack.i.h.bf16 %v8228_v19 }
 0x2df   : > { %6049 = vrot.lane.b32.xlu1 %v6028_v28, %s6313_s21 }
 0x2e0   : > { %v8232_v50 = vpop.permute.xlu0 %5764 }
 0x2e1   : > { %v8239_v41 = vpop.permute.xlu1 %5789 }
 0x2e2   : > { %6084 = vrot.lane.b32.xlu0 %v6083_v56, %s6315_s23 }
 0x2e3   : > { %6054 = vrot.lane.b32.xlu1 %v6033_v44, %s6317_s8  ;;  %v2363_v44 = vld [vmem:[#allocation3 + $0x68] sm:$0xff] }
 0x2e4   : > { %v8245_v55 = vpop.permute.xlu0 %5769  ;;  %v6123_v46 = vpack.i.bf16 %v2363_v44, %v2362_v15 }
 0x2e5   : > { %v8247_v18 = vpop.permute.xlu1 %5794 }
 0x2e6   : > { %6094 = vrot.lane.b32.xlu0 %v6093_v9, %s6316_s26 }
 0x2e7   : > { %6059 = vrot.lane.b32.xlu1 %v6058_v61, %s6317_s8  ;;  %v8272_v61 = vld [vmem:[#allocation3 + $0xc0] sm:$0xff] }
 0x2e8   : > { %v8251_v42 = vpop.permute.xlu0 %5774  ;;  %v3683_v15 = vsel %vm1746_vm2, %v8272_v61, %v5736_v24  ;;  %v5782_v24 = vunpack.i.h.bf16 %v8221_v25 }
 0x2e9   : > { %v8253_v28 = vpop.permute.xlu1 %5799  ;;  %v3715_v6 = vsel %vm1812_vm6, %v3683_v15, %v5741_v53  ;;  %v2364_v15 = vld [vmem:[#allocation3 + $0x78] sm:$0xff] }
 0x2ea   : > { %6104 = vrot.lane.b32.xlu0 %v6083_v56, %s6313_s21  ;;  %v2616_v56 = vld [vmem:[#allocation3 + $0x6a] sm:$0xff] }
 0x2eb   : > { %6069 = vrot.lane.b32.xlu1 %v6068_v30, %s6314_s22  ;;  %v6143_v44 = vpack.i.bf16 %v2616_v56, %v2615_v40  ;;  %v5781_v56 = vunpack.i.l.bf16 %v8221_v25  ;;  %v5791_v25 = vunpack.i.l.bf16 %v8239_v41 }
 0x2ec   : > { %v8257_v36 = vpop.permute.xlu0 %5819 }
 0x2ed   : > { %v8259_v23 = vpop.permute.xlu1 %5804 }
 0x2ee   : > { %6114 = vrot.lane.b32.xlu0 %v6093_v9, %s6317_s8  ;;  %v5806_v9 = vunpack.i.l.bf16 %v8259_v23 }
 0x2ef   : > { %6079 = vrot.lane.b32.xlu1 %v6038_v49, %s6315_s23  ;;  %v2583_v49 = vld [vmem:[#allocation3 + $0x61] sm:$0xff] }
 0x2f0   : > { %v8265_v33 = vpop.permute.xlu0 %5824  ;;  %v6133_v30 = vpack.i.bf16 %v2584_v7, %v2583_v49  ;;  %v3748_v7 = vsel %vm1878_vm8, %v3716_v63, %v5806_v9  ;;  %v2365_v9 = vld [vmem:[#allocation3 + $0x80] sm:$0xff]  ;;  %v5792_v49 = vunpack.i.h.bf16 %v8239_v41  ;;  %v5797_v41 = vunpack.i.h.bf16 %v8247_v18 }
 0x2f1   : > { %v5810_v52 = vpop.permute.xlu1 %5809 }
 0x2f2   : > { %6124 = vrot.lane.b32.xlu0 %v6123_v46, %s6314_s22  ;;  %v5812_v51 = vunpack.i.h.bf16 %v5810_v52  ;;  %v5811_v13 = vunpack.i.l.bf16 %v5810_v52 }
 0x2f3   : > { %6089 = vrot.lane.b32.xlu1 %v6063_v62, %s6316_s26  ;;  %v3747_v62 = vsel %vm1878_vm8, %v3715_v6, %v5757_v21  ;;  %v5786_v6 = vunpack.i.l.bf16 %v8228_v19 }
 0x2f4   : > { %v8281_v22 = vpop.permute.xlu0 %5829  ;;  %v3779_v52 = vsel %vm1944_vm10, %v3747_v62, %v5811_v13  ;;  %v3780_v53 = vsel %vm1944_vm10, %v3748_v7, %v5812_v51 }
 0x2f5   : > { %v5815_v38 = vpop.permute.xlu1 %5814 }
 0x2f6   : > { %v5817_v40 = vunpack.i.h.bf16 %v5815_v38  ;;  %v5816_v17 = vunpack.i.l.bf16 %v5815_v38  ;;  %6134 = vrot.lane.b32.xlu0 %v6133_v30, %s6315_s23 }
 0x2f7   : > { %6099 = vrot.lane.b32.xlu1 %v6123_v46, %s6311_s19 }
 0x2f8   : > { %v3812_v63 = vsel %vm3795_vm13, %v3779_v52, %v5816_v17  ;;  %v3813_v38 = vsel %vm3795_vm13, %v3780_v53, %v5817_v40  ;;  %v8297_v21 = vpop.permute.xlu0 %5834  ;;  %v5796_v40 = vunpack.i.l.bf16 %v8247_v18  ;;  %v5802_v52 = vunpack.i.h.bf16 %v8253_v28  ;;  %v2490_v18 = vld [vmem:[#allocation3 + $0x79] sm:$0xff] }
 0x2f9   : > { %v8301_v13 = vpop.permute.xlu1 %5844  ;;  %v3845_v51 = vsel %vm3828_vm14, %v3812_v63, %v5781_v56  ;;  %v3846_v46 = vsel %vm3828_vm14, %v3813_v38, %v5782_v24  ;;  %v6153_v24 = vpack.i.bf16 %v2365_v9, %v2364_v15  ;;  %v5801_v53 = vunpack.i.l.bf16 %v8253_v28 }
 0x2fa   : > { %6144 = vrot.lane.b32.xlu0 %v6143_v44, %s6316_s26  ;;  %v3878_v19 = vsel %vm3861_vm15, %v3845_v51, %v5786_v6  ;;  %v3879_v57 = vsel %vm3861_vm15, %v3846_v46, %v5787_v60  ;;  %v5821_v6 = vunpack.i.l.bf16 %v8257_v36  ;;  %v5807_v63 = vunpack.i.h.bf16 %v8259_v23  ;;  %v2522_v46 = vld [vmem:[#allocation3 + $0x7a] sm:$0xff] }
 0x2fb   : > { %6109 = vrot.lane.b32.xlu1 %v6133_v30, %s6313_s21  ;;  %v3911_v62 = vsel %vm3894_vm1, %v3878_v19, %v5791_v25  ;;  %v3912_v7 = vsel %vm3894_vm1, %v3879_v57, %v5792_v49  ;;  %v2491_v30 = vld [vmem:[#allocation3 + $0x81] sm:$0xff]  ;;  %v3686_v38 = vsel %vm1746_vm2, %v8080_v58, %v5797_v41  ;;  %v3685_v28 = vsel %vm1746_vm2, %v8044_v32, %v5796_v40 }
 0x2fc   : > { %v8313_v17 = vpop.permute.xlu0 %5839  ;;  %v3935_v56 = vpack.c.bf16 %v3912_v7, %v3911_v62  ;;  %v6163_v49 = vpack.i.bf16 %v2491_v30, %v2490_v18  ;;  %v3717_v25 = vsel %vm1812_vm6, %v3685_v28, %v5801_v53  ;;  %v3718_v51 = vsel %vm1812_vm6, %v3686_v38, %v5802_v52  ;;  %v2523_v19 = vld [vmem:[#allocation3 + $0x82] sm:$0xff]  ;;  %v2367_v7 = vld [vmem:[#allocation3 + $0x98] sm:$0xff] }
 0x2fd   : > { %v8317_v60 = vpop.permute.xlu1 %5849  ;;  %v3750_v57 = vsel %vm1878_vm8, %v3718_v51, %v5821_v6  ;;  %v5772_v58 = vunpack.i.h.bf16 %v8245_v55  ;;  %v5771_v32 = vunpack.i.l.bf16 %v8245_v55  ;;  %v6173_v62 = vpack.i.bf16 %v2523_v19, %v2522_v46  ;;  %v2366_v55 = vld [vmem:[#allocation3 + $0x90] sm:$0xff] }
 0x2fe   : > { %6154 = vrot.lane.b32.xlu0 %v6153_v24, %s6311_s19  ;;  %4812 = vmatprep.mubr.msk.bf16.mxu1 %vm3986_vm4, %v3935_v56  ;;  %v5777_v30 = vunpack.i.h.bf16 %v8251_v42  ;;  %v5776_v6 = vunpack.i.l.bf16 %v8251_v42 }
 0x2ff   : > { %6119 = vrot.lane.b32.xlu1 %v6143_v44, %s6317_s8  ;;  %v3749_v44 = vsel %vm1878_vm8, %v3717_v25, %v5807_v63  ;;  %v3782_v41 = vsel %vm1944_vm10, %v3750_v57, %v5772_v58  ;;  %v6183_v25 = vpack.i.bf16 %v2367_v7, %v2366_v55  ;;  %v2588_v57 = vld [vmem:[#allocation3 + $0x99] sm:$0xff] }
 0x300   : > { %v5870_v9 = vpop.permute.xlu0 %5869  ;;  %v3781_v40 = vsel %vm1944_vm10, %v3749_v44, %v5771_v32  ;;  %v3815_v38 = vsel %vm3795_vm13, %v3782_v41, %v5777_v30  ;;  %v2619_v30 = vld [vmem:[#allocation3 + $0x92] sm:$0xff] }
 0x301   : > { %v8330_v23 = vpop.permute.xlu1 %5854  ;;  %v5872_v56 = vunpack.i.h.bf16 %v5870_v9  ;;  %v5871_v52 = vunpack.i.l.bf16 %v5870_v9 }
 0x302   : > { %6164 = vrot.lane.b32.xlu0 %v6163_v49, %s6313_s21 }
 0x303   : > { %6129 = vrot.lane.b32.xlu1 %v6153_v24, %s6314_s22  ;;  %v3814_v24 = vsel %vm3795_vm13, %v3781_v40, %v5776_v6  ;;  %v3848_v51 = vsel %vm3828_vm14, %v3815_v38, %v5872_v56  ;;  %v4305_v56 = vsel %vm2069_vm3, %v8237_v39, 0  ;;  %v2620_v6 = vld [vmem:[#allocation3 + $0x9a] sm:$0xff]  ;;  %v5767_v39 = vunpack.i.h.bf16 %v8232_v50 }
 0x304   : > { %v5875_v15 = vpop.permute.xlu0 %5874  ;;  %v3847_v9 = vsel %vm3828_vm14, %v3814_v24, %v5871_v52  ;;  %v6203_v55 = vpack.i.bf16 %v2620_v6, %v2619_v30  ;;  %v2369_v24 = vld [vmem:[#allocation3 + $0xb0] sm:$0xff]  ;;  %v5766_v38 = vunpack.i.l.bf16 %v8232_v50 }
 0x305   : > { %v8340_v53 = vpop.permute.xlu1 %5859  ;;  %v5877_v63 = vunpack.i.h.bf16 %v5875_v15  ;;  %v5876_v18 = vunpack.i.l.bf16 %v5875_v15  ;;  %v2587_v15 = vld [vmem:[#allocation3 + $0x91] sm:$0xff] }
 0x306   : > { %6174 = vrot.lane.b32.xlu0 %v6173_v62, %s6317_s8  ;;  %v6193_v40 = vpack.i.bf16 %v2588_v57, %v2587_v15 }
 0x307   : > { %6139 = vrot.lane.b32.xlu1 %v6163_v49, %s6315_s23  ;;  %v3880_v44 = vsel %vm3861_vm15, %v3847_v9, %v5876_v18  ;;  %v3881_v58 = vsel %vm3861_vm15, %v3848_v51, %v5877_v63  ;;  %v5761_v63 = vunpack.i.l.bf16 %v8225_v4  ;;  %v5822_v9 = vunpack.i.h.bf16 %v8257_v36  ;;  %v2494_v36 = vld [vmem:[#allocation3 + $0xa9] sm:$0xff] }
 0x308   : > { %v5880_v28 = vpop.permute.xlu0 %5879 }
 0x309   : > { %v5882_v46 = vunpack.i.h.bf16 %v5880_v28  ;;  %v5881_v19 = vunpack.i.l.bf16 %v5880_v28  ;;  %v8350_v42 = vpop.permute.xlu1 %5864 }
 0x30a   : > { %6184 = vrot.lane.b32.xlu0 %v6183_v25, %s6314_s22 }
 0x30b   : > { %v3913_v49 = vsel %vm3894_vm1, %v3880_v44, %v5881_v19  ;;  %v3914_v32 = vsel %vm3894_vm1, %v3881_v58, %v5882_v46  ;;  %6149 = vrot.lane.b32.xlu1 %v6173_v62, %s6316_s26  ;;  %v5762_v62 = vunpack.i.h.bf16 %v8225_v4  ;;  %v2368_v46 = vld [vmem:[#allocation3 + $0xa8] sm:$0xff]  ;;  %v3687_v44 = vsel %vm1746_vm2, %v8049_v2, %v5761_v63 }
 0x30c   : > { %v3936_v7 = vpack.c.bf16 %v3914_v32, %v3913_v49  ;;  %v8358_v41 = vpop.permute.xlu0 %5899  ;;  %v6213_v58 = vpack.i.bf16 %v2369_v24, %v2368_v46  ;;  %v3719_v49 = vsel %vm1812_vm6, %v3687_v44, %v5766_v38  ;;  %v5847_v2 = vunpack.i.h.bf16 %v8301_v13 }
 0x30d   : > { %v8362_v52 = vpop.permute.xlu1 %5884  ;;  %v3688_v4 = vsel %vm1746_vm2, %v8051_v16, %v5762_v62  ;;  %v5846_v16 = vunpack.i.l.bf16 %v8301_v13  ;;  %v5852_v24 = vunpack.i.h.bf16 %v8317_v60  ;;  %v5856_v13 = vunpack.i.l.bf16 %v8330_v23 }
 0x30e   : > { %6194 = vrot.lane.b32.xlu0 %v6193_v40, %s6315_s23  ;;  %4813 = vmatmul.mubr.msk.bf16.vlgmr.msra.gmra.mrb[0].mxu1 %vm3986_vm4, %v3936_v7  ;;  %v5886_v51 = vunpack.i.l.bf16 %v8362_v52  ;;  %v3720_v32 = vsel %vm1812_vm6, %v3688_v4, %v5767_v39  ;;  %v5851_v39 = vunpack.i.l.bf16 %v8317_v60 }
 0x30f   : > { %6159 = vrot.lane.b32.xlu1 %v6183_v25, %s6311_s19  ;;  %4829 = vmatpush3.bf16.msra.mxu1 %v4305_v56  ;;  %v2495_v25 = vld [vmem:[#allocation3 + $0xb1] sm:$0xff]  ;;  %v3751_v56 = vsel %vm1878_vm8, %v3719_v49, %v5822_v9  ;;  %v5861_v49 = vunpack.i.l.bf16 %v8340_v53 }
 0x310   : > { %v8369_v18 = vpop.permute.xlu0 %5904  ;;  %v6223_v7 = vpack.i.bf16 %v2495_v25, %v2494_v36  ;;  %v5862_v36 = vunpack.i.h.bf16 %v8340_v53 }
 0x311   : > { %v5890_v28 = vpop.permute.xlu1 %5889 }
 0x312   : > { %6204 = vrot.lane.b32.xlu0 %v6203_v55, %s6316_s26  ;;  %v5892_v19 = vunpack.i.h.bf16 %v5890_v28  ;;  %v5891_v57 = vunpack.i.l.bf16 %v5890_v28  ;;  %v3690_v53 = vsel %vm1746_vm2, %v8118_v12, %v5862_v36  ;;  %v5837_v12 = vunpack.i.h.bf16 %v8297_v21 }
 0x313   : > { %6169 = vrot.lane.b32.xlu1 %v6193_v40, %s6313_s21  ;;  %v3752_v40 = vsel %vm1878_vm8, %v3720_v32, %v5886_v51  ;;  %v5857_v51 = vunpack.i.h.bf16 %v8330_v23  ;;  %v5841_v36 = vunpack.i.l.bf16 %v8313_v17 }
 0x314   : > { %v8381_v50 = vpop.permute.xlu0 %5909  ;;  %v3783_v62 = vsel %vm1944_vm10, %v3751_v56, %v5891_v57  ;;  %v3784_v63 = vsel %vm1944_vm10, %v3752_v40, %v5892_v19  ;;  %v2527_v57 = vld [vmem:[#allocation3 + $0xb2] sm:$0xff]  ;;  %v5867_v40 = vunpack.i.h.bf16 %v8350_v42 }
 0x315   : > { %v5895_v15 = vpop.permute.xlu1 %5894 }
 0x316   : > { %v5897_v30 = vunpack.i.h.bf16 %v5895_v15  ;;  %v5896_v6 = vunpack.i.l.bf16 %v5895_v15  ;;  %6214 = vrot.lane.b32.xlu0 %v6213_v58, %s6311_s19 }
 0x317   : > { %6179 = vrot.lane.b32.xlu1 %v6203_v55, %s6317_s8  ;;  %v2526_v55 = vld [vmem:[#allocation3 + $0xaa] sm:$0xff] }
 0x318   : > { %v3816_v38 = vsel %vm3795_vm13, %v3783_v62, %v5896_v6  ;;  %v3817_v28 = vsel %vm3795_vm13, %v3784_v63, %v5897_v30  ;;  %v8397_v9 = vpop.permute.xlu0 %5914  ;;  %v6233_v15 = vpack.i.bf16 %v2527_v57, %v2526_v55  ;;  %v5866_v30 = vunpack.i.l.bf16 %v8350_v42 }
 0x319   : > { %v3849_v25 = vsel %vm3828_vm14, %v3816_v38, %v5846_v16  ;;  %v3850_v46 = vsel %vm3828_vm14, %v3817_v28, %v5847_v2  ;;  %v8403_v19 = vpop.permute.xlu1 %5924  ;;  %v5887_v2 = vunpack.i.h.bf16 %v8362_v52  ;;  %v2376_v16 = vld [vmem:[#allocation3 + $0x108] sm:$0xff]  ;;  %v6243_v42 = vpack.i.bf16 %v8274_v34, %v8272_v61 }
 0x31a   : > { %6224 = vrot.lane.b32.xlu0 %v6223_v7, %s6313_s21  ;;  %v3882_v60 = vsel %vm3861_vm15, %v3849_v25, %v5851_v39  ;;  %v3883_v4 = vsel %vm3861_vm15, %v3850_v46, %v5852_v24  ;;  %v3689_v62 = vsel %vm1746_vm2, %v2376_v16, %v5861_v49  ;;  %v3722_v52 = vsel %vm1812_vm6, %v3690_v53, %v5867_v40  ;;  %v2592_v38 = vld [vmem:[#allocation3 + $0xc9] sm:$0xff]  ;;  %v2591_v61 = vld [vmem:[#allocation3 + $0xc1] sm:$0xff] }
 0x31b   : > { %6189 = vrot.lane.b32.xlu1 %v6213_v58, %s6314_s22  ;;  %v3915_v44 = vsel %vm3894_vm1, %v3882_v60, %v5856_v13  ;;  %v3916_v23 = vsel %vm3894_vm1, %v3883_v4, %v5857_v51  ;;  %v5901_v58 = vunpack.i.l.bf16 %v8358_v41  ;;  %v3721_v24 = vsel %vm1812_vm6, %v3689_v62, %v5866_v30  ;;  %v2623_v4 = vld [vmem:[#allocation3 + $0xc2] sm:$0xff] }
 0x31c   : > { %v8413_v32 = vpop.permute.xlu0 %5919  ;;  %v3937_v56 = vpack.c.bf16 %v3916_v23, %v3915_v44  ;;  %v5836_v51 = vunpack.i.l.bf16 %v8297_v21  ;;  %v6253_v13 = vpack.i.bf16 %v2592_v38, %v2591_v61  ;;  %v2624_v44 = vld [vmem:[#allocation3 + $0xca] sm:$0xff]  ;;  %v5842_v23 = vunpack.i.h.bf16 %v8313_v17 }
 0x31d   : > { %v8417_v6 = vpop.permute.xlu1 %5929  ;;  %v3754_v28 = vsel %vm1878_vm8, %v3722_v52, %v5901_v58  ;;  %v6263_v30 = vpack.i.bf16 %v2624_v44, %v2623_v4  ;;  %v5832_v61 = vunpack.i.h.bf16 %v8281_v22  ;;  %v2594_v4 = vld [vmem:[#allocation3 + $0xe1] sm:$0xff] }
 0x31e   : > { %6234 = vrot.lane.b32.xlu0 %v6233_v15, %s6317_s8  ;;  %4816 = vmatprep.mubr.msk.bf16.mxu1 %vm3986_vm4, %v3937_v56  ;;  %v3786_v25 = vsel %vm1944_vm10, %v3754_v28, %v5837_v12  ;;  %v5827_v12 = vunpack.i.h.bf16 %v8265_v33  ;;  %v2625_v44 = vld [vmem:[#allocation3 + $0xda] sm:$0xff] }
 0x31f   : > { %6199 = vrot.lane.b32.xlu1 %v6223_v7, %s6315_s23  ;;  %v3753_v7 = vsel %vm1878_vm8, %v3721_v24, %v5887_v2  ;;  %v3819_v56 = vsel %vm3795_vm13, %v3786_v25, %v5842_v23  ;;  %v2626_v23 = vld [vmem:[#allocation3 + $0xe2] sm:$0xff] }
 0x320   : > { %v5950_v63 = vpop.permute.xlu0 %5949  ;;  %v3785_v46 = vsel %vm1944_vm10, %v3753_v7, %v5836_v51  ;;  %v2562_v7 = vld [vmem:[#allocation3 + $0xe0] sm:$0xff]  ;;  %v5826_v51 = vunpack.i.l.bf16 %v8265_v33  ;;  %v3692_v33 = vsel %vm1746_vm2, %v8106_v31, %v5827_v12  ;;  %v5927_v31 = vunpack.i.h.bf16 %v8403_v19 }
 0x321   : > { %v8431_v39 = vpop.permute.xlu1 %5934  ;;  %v5952_v55 = vunpack.i.h.bf16 %v5950_v63  ;;  %v5951_v57 = vunpack.i.l.bf16 %v5950_v63 }
 0x322   : > { %6244 = vrot.lane.b32.xlu0 %v6243_v42, %s6314_s22 }
 0x323   : > { %6209 = vrot.lane.b32.xlu1 %v6233_v15, %s6316_s26  ;;  %v3818_v15 = vsel %vm3795_vm13, %v3785_v46, %v5841_v36  ;;  %v3852_v2 = vsel %vm3828_vm14, %v3819_v56, %v5952_v55  ;;  %v5902_v46 = vunpack.i.h.bf16 %v8358_v41  ;;  %v3724_v56 = vsel %vm1812_vm6, %v3692_v33, %v5832_v61 }
 0x324   : > { %v5955_v34 = vpop.permute.xlu0 %5954  ;;  %v3851_v58 = vsel %vm3828_vm14, %v3818_v15, %v5951_v57  ;;  %v2593_v15 = vld [vmem:[#allocation3 + $0xd9] sm:$0xff]  ;;  %v5637_v33 = vunpack.i.h.bf16 %v8125_v8 }
 0x325   : > { %v8441_v60 = vpop.permute.xlu1 %5939  ;;  %v5957_v21 = vunpack.i.h.bf16 %v5955_v34  ;;  %v5956_v49 = vunpack.i.l.bf16 %v5955_v34  ;;  %v5831_v34 = vunpack.i.l.bf16 %v8281_v22 }
 0x326   : > { %6254 = vrot.lane.b32.xlu0 %v6253_v13, %s6315_s23  ;;  %v5941_v61 = vunpack.i.l.bf16 %v8441_v60 }
 0x327   : > { %6219 = vrot.lane.b32.xlu1 %v6243_v42, %s6311_s19  ;;  %v3884_v17 = vsel %vm3861_vm15, %v3851_v58, %v5956_v49  ;;  %v3885_v63 = vsel %vm3861_vm15, %v3852_v2, %v5957_v21  ;;  %v3691_v21 = vsel %vm1746_vm2, %v8112_v5, %v5826_v51  ;;  %v6268_v58 = vpack.i.bf16 %v2626_v23, %v2625_v44 }
 0x328   : > { %v5960_v40 = vpop.permute.xlu0 %5959  ;;  %v3723_v41 = vsel %vm1812_vm6, %v3691_v21, %v5831_v34  ;;  %v5932_v5 = vunpack.i.h.bf16 %v8417_v6  ;;  %v2380_v21 = vld [vmem:[#allocation3 + $0x138] sm:$0xff] }
 0x329   : > { %v5962_v16 = vunpack.i.h.bf16 %v5960_v40  ;;  %v5961_v53 = vunpack.i.l.bf16 %v5960_v40  ;;  %v8451_v62 = vpop.permute.xlu1 %5944  ;;  %v3755_v2 = vsel %vm1878_vm8, %v3723_v41, %v5902_v46 }
 0x32a   : > { %6264 = vrot.lane.b32.xlu0 %v6263_v30, %s6316_s26  ;;  %v5947_v46 = vunpack.i.h.bf16 %v8451_v62 }
 0x32b   : > { %v3917_v42 = vsel %vm3894_vm1, %v3884_v17, %v5961_v53  ;;  %v3918_v24 = vsel %vm3894_vm1, %v3885_v63, %v5962_v16  ;;  %6229 = vrot.lane.b32.xlu1 %v6253_v13, %s6313_s21  ;;  %v2561_v13 = vld [vmem:[#allocation3 + $0xd8] sm:$0xff]  ;;  %v5926_v16 = vunpack.i.l.bf16 %v8403_v19  ;;  %v5931_v17 = vunpack.i.l.bf16 %v8417_v6 }
 0x32c   : > { %v3938_v52 = vpack.c.bf16 %v3918_v24, %v3917_v42  ;;  %v8459_v38 = vpop.permute.xlu0 %5979  ;;  %v6248_v57 = vpack.i.bf16 %v2562_v7, %v2561_v13  ;;  %v5936_v7 = vunpack.i.l.bf16 %v8431_v39  ;;  %v5942_v19 = vunpack.i.h.bf16 %v8441_v60 }
 0x32d   : > { %v8461_v28 = vpop.permute.xlu1 %5964  ;;  %v5981_v44 = vunpack.i.l.bf16 %v8459_v38 }
 0x32e   : > { %4817 = vmatmul.mubr.msk.bf16.gmra.mrb[4].mxu1 %vm3986_vm4, %v3938_v52  ;;  %v5966_v36 = vunpack.i.l.bf16 %v8461_v28  ;;  %v5937_v52 = vunpack.i.h.bf16 %v8431_v39  ;;  %v5946_v39 = vunpack.i.l.bf16 %v8451_v62  ;;  %v5967_v60 = vunpack.i.h.bf16 %v8461_v28 }
 0x32f   : > { %6239 = vrot.lane.b32.xlu1 %v6263_v30, %s6317_s8  ;;  %v6258_v30 = vpack.i.bf16 %v2594_v4, %v2593_v15  ;;  %v5636_v15 = vunpack.i.l.bf16 %v8125_v8  ;;  %v3693_v28 = vsel %vm1746_vm2, %v2380_v21, %v5941_v61  ;;  %v5642_v8 = vunpack.i.h.bf16 %v8134_v26 }
 0x330   : > { %v8469_v25 = vpop.permute.xlu0 %5984  ;;  %v3756_v63 = vsel %vm1878_vm8, %v3724_v56, %v5966_v36 }
 0x331   : > { %v5970_v55 = vpop.permute.xlu1 %5969 }
 0x332   : > { %v5972_v49 = vunpack.i.h.bf16 %v5970_v55  ;;  %v5971_v22 = vunpack.i.l.bf16 %v5970_v55 }
 0x333   : > { %6249 = vrot.lane.b32.xlu1 %v6248_v57, %s6314_s22 }
 0x334   : > { %v8480_v40 = vpop.permute.xlu0 %5989  ;;  %v3787_v12 = vsel %vm1944_vm10, %v3755_v2, %v5971_v22  ;;  %v3788_v51 = vsel %vm1944_vm10, %v3756_v63, %v5972_v49  ;;  %v2381_v49 = vld [vmem:[#allocation3 + $0x140] sm:$0xff]  ;;  %v5641_v63 = vunpack.i.l.bf16 %v8134_v26  ;;  %v5921_v26 = vunpack.i.l.bf16 %v8413_v32 }
 0x335   : > { %v5975_v53 = vpop.permute.xlu1 %5974  ;;  %v3694_v41 = vsel %vm1746_vm2, %v2381_v49, %v5942_v19  ;;  %v2354_v2 = vld [vmem:[#allocation3] sm:$0xff] }
 0x336   : > { %v5977_v42 = vunpack.i.h.bf16 %v5975_v53  ;;  %v5976_v24 = vunpack.i.l.bf16 %v5975_v53 }
 0x337   : > { %6259 = vrot.lane.b32.xlu1 %v6258_v30, %s6315_s23 }
 0x338   : > { %v3820_v6 = vsel %vm3795_vm13, %v3787_v12, %v5976_v24  ;;  %v3821_v34 = vsel %vm3795_vm13, %v3788_v51, %v5977_v42  ;;  %v8497_v13 = vpop.permute.xlu0 %5994  ;;  %v5917_v42 = vunpack.i.h.bf16 %v8397_v9  ;;  %v5916_v24 = vunpack.i.l.bf16 %v8397_v9 }
 0x339   : > { %v3853_v55 = vsel %vm3828_vm14, %v3820_v6, %v5926_v16  ;;  %v3854_v57 = vsel %vm3828_vm14, %v3821_v34, %v5927_v31  ;;  %v8503_v4 = vpop.permute.xlu1 %5999  ;;  %v2355_v31 = vld [vmem:[#allocation3 + $0x8] sm:$0xff]  ;;  %v3725_v16 = vsel %vm1812_vm6, %v3693_v28, %v5946_v39  ;;  %v5662_v28 = vunpack.i.h.bf16 %v8159_v59 }
 0x33a   : > { %v3886_v23 = vsel %vm3861_vm15, %v3853_v55, %v5931_v17  ;;  %v3887_v36 = vsel %vm3861_vm15, %v3854_v57, %v5932_v5  ;;  %v3726_v5 = vsel %vm1812_vm6, %v3694_v41, %v5947_v46  ;;  %v3757_v17 = vsel %vm1878_vm8, %v3725_v16, %v5967_v60 }
 0x33b   : > { %6269 = vrot.lane.b32.xlu1 %v6268_v58, %s6316_s26  ;;  %v3919_v62 = vsel %vm3894_vm1, %v3886_v23, %v5936_v7  ;;  %v3920_v22 = vsel %vm3894_vm1, %v3887_v36, %v5937_v52  ;;  %v3758_v58 = vsel %vm1878_vm8, %v3726_v5, %v5981_v44  ;;  %v3668_v52 = vsel %vm1746_vm2, %v2355_v31, %v5637_v33 }
 0x33c   : > { %v6025_v56 = vpop.permute.xlu0 %6024  ;;  %v3939_v30 = vpack.c.bf16 %v3920_v22, %v3919_v62  ;;  %v3667_v7 = vsel %vm1746_vm2, %v2354_v2, %v5636_v15  ;;  %v3790_v51 = vsel %vm1944_vm10, %v3758_v58, %v5917_v42  ;;  %v3789_v19 = vsel %vm1944_vm10, %v3757_v17, %v5916_v24 }
 0x33d   : > { %v8518_v53 = vpop.permute.xlu1 %6004  ;;  %v6027_v61 = vunpack.i.h.bf16 %v6025_v56  ;;  %v6026_v6 = vunpack.i.l.bf16 %v6025_v56  ;;  %v5922_v46 = vunpack.i.h.bf16 %v8413_v32  ;;  %v8536_v9 = vsel %vm1812_vm6, %v3667_v7, %v5641_v63 }
 0x33e   : > { %4820 = vmatprep.mubr.msk.bf16.mxu1 %vm3986_vm4, %v3939_v30  ;;  %v8539_v57 = vsel %vm1812_vm6, %v3668_v52, %v5642_v8  ;;  %v5647_v44 = vunpack.i.h.bf16 %v8140_v29  ;;  %v5646_v60 = vunpack.i.l.bf16 %v8140_v29  ;;  %v5652_v23 = vunpack.i.h.bf16 %v8147_v10 }
 0x33f   : > { %v5651_v36 = vunpack.i.l.bf16 %v8147_v10  ;;  %v3822_v33 = vsel %vm3795_vm13, %v3789_v19, %v5921_v26  ;;  %v3823_v32 = vsel %vm3795_vm13, %v3790_v51, %v5922_v46  ;;  %v5661_v56 = vunpack.i.l.bf16 %v8159_v59  ;;  %v6281_v19 = vld [vmem:[#allocation3 + $0x30] sm:$0xff] }
 0x340   : > { %v6030_v12 = vpop.permute.xlu0 %6029  ;;  %v3855_v49 = vsel %vm3828_vm14, %v3822_v33, %v6026_v6  ;;  %v3856_v62 = vsel %vm3828_vm14, %v3823_v32, %v6027_v61  ;;  %v5666_v31 = vunpack.i.l.bf16 %v8165_v27  ;;  %v5667_v17 = vunpack.i.h.bf16 %v8165_v27  ;;  %v6282_v27 = vld [vmem:[#allocation3 + $0x38] sm:$0xff]  ;;  %v2385_v46 = vld [vmem:[#allocation3 + $0x170] sm:$0xff] }
 0x341   : > { %v8531_v34 = vpop.permute.xlu1 %6009  ;;  %v6032_v39 = vunpack.i.h.bf16 %v6030_v12  ;;  %v6031_v55 = vunpack.i.l.bf16 %v6030_v12  ;;  %v5677_v8 = vunpack.i.h.bf16 %v8163_v14  ;;  %v5676_v63 = vunpack.i.l.bf16 %v8163_v14 }
 0x342   : > { %v5657_v59 = vunpack.i.h.bf16 %v8153_v43  ;;  %v5656_v52 = vunpack.i.l.bf16 %v8153_v43  ;;  %v5672_v7 = vunpack.i.h.bf16 %v8157_v0  ;;  %v5671_v12 = vunpack.i.l.bf16 %v8157_v0 }
 0x343   : > { %v3888_v30 = vsel %vm3861_vm15, %v3855_v49, %v6031_v55  ;;  %v3889_v2 = vsel %vm3861_vm15, %v3856_v62, %v6032_v39  ;;  %v3671_v61 = vsel %vm1746_vm2, %v6281_v19, %v5661_v56  ;;  %v3672_v6 = vsel %vm1746_vm2, %v6282_v27, %v5662_v28  ;;  %v6283_v49 = vld [vmem:[#allocation3 + $0x18] sm:$0xff] }
 0x344   : > { %v6035_v21 = vpop.permute.xlu0 %6034  ;;  %v8569_v39 = vsel %vm1812_vm6, %v3671_v61, %v5666_v31  ;;  %v5986_v55 = vunpack.i.l.bf16 %v8469_v25  ;;  %v3669_v62 = vsel %vm1746_vm2, %v6283_v49, %v5676_v63  ;;  %v5687_v56 = vunpack.i.h.bf16 %v8173_v45  ;;  %v2384_v31 = vld [vmem:[#allocation3 + $0x168] sm:$0xff] }
 0x345   : > { %v6037_v22 = vunpack.i.h.bf16 %v6035_v21  ;;  %v6036_v15 = vunpack.i.l.bf16 %v6035_v21  ;;  %v6015_v41 = vpop.permute.xlu1 %6014  ;;  %v8574_v21 = vsel %vm1812_vm6, %v3672_v6, %v5667_v17  ;;  %v5992_v17 = vunpack.i.h.bf16 %v8480_v40 }
 0x346   : > { %v6017_v58 = vunpack.i.h.bf16 %v6015_v41  ;;  %v6016_v14 = vunpack.i.l.bf16 %v6015_v41  ;;  %v5991_v19 = vunpack.i.l.bf16 %v8480_v40  ;;  %v5911_v27 = vunpack.i.l.bf16 %v8381_v50 }
 0x347   : > { %v3921_v16 = vsel %vm3894_vm1, %v3888_v30, %v6036_v15  ;;  %v3922_v5 = vsel %vm3894_vm1, %v3889_v2, %v6037_v22  ;;  %v6284_v22 = vld [vmem:[#allocation3 + $0x20] sm:$0xff]  ;;  %v5686_v30 = vunpack.i.l.bf16 %v8173_v45  ;;  %v5682_v2 = vunpack.i.h.bf16 %v8169_v48 }
 0x348   : > { %v3940_v42 = vpack.c.bf16 %v3922_v5, %v3921_v16  ;;  %v8559_v24 = vpop.permute.xlu0 %6039  ;;  %v3698_v33 = vsel %vm1746_vm2, %v2385_v46, %v6017_v58  ;;  %v3670_v15 = vsel %vm1746_vm2, %v6284_v22, %v5677_v8  ;;  %v5681_v58 = vunpack.i.l.bf16 %v8169_v48 }
 0x349   : > { %v6020_v51 = vpop.permute.xlu1 %6019  ;;  %v3697_v8 = vsel %vm1746_vm2, %v2384_v31, %v6016_v14  ;;  %v5996_v6 = vunpack.i.l.bf16 %v8497_v13  ;;  %v5912_v14 = vunpack.i.h.bf16 %v8381_v50  ;;  %v3702_v49 = vsel %vm1812_vm6, %v3670_v15, %v5682_v2  ;;  %v6285_v31 = vld [vmem:[#allocation3 + $0x150] sm:$0xff] }
 0x34a   : > { %v6022_v26 = vunpack.i.h.bf16 %v6020_v51  ;;  %4821 = vmatmul.mubr.msk.bf16.gmra.mrb[8].mxu1 %vm3986_vm4, %v3940_v42  ;;  %v6021_v32 = vunpack.i.l.bf16 %v6020_v51  ;;  %v5907_v42 = vunpack.i.h.bf16 %v8369_v18  ;;  %v5906_v51 = vunpack.i.l.bf16 %v8369_v18 }
 0x34b   : > { %v5997_v18 = vunpack.i.h.bf16 %v8497_v13  ;;  %v6286_v13 = vld [vmem:[#allocation3 + $0x158] sm:$0xff] }
 0x34c   : > { %v3730_v41 = vsel %vm1812_vm6, %v3698_v33, %v6022_v26  ;;  %v8579_v28 = vpop.permute.xlu0 %6064  ;;  %v3729_v61 = vsel %vm1812_vm6, %v3697_v8, %v6021_v32  ;;  %v3701_v32 = vsel %vm1812_vm6, %v3669_v62, %v5681_v58  ;;  %v6002_v58 = vunpack.i.h.bf16 %v8503_v4 }
 0x34d   : > { %v3762_v16 = vsel %vm1878_vm8, %v3730_v41, %v5986_v55  ;;  %v6045_v5 = vpop.permute.xlu1 %6044  ;;  %v5982_v55 = vunpack.i.h.bf16 %v8459_v38  ;;  %v5692_v38 = vunpack.i.h.bf16 %v8175_v3  ;;  %v6066_v45 = vunpack.i.l.bf16 %v8579_v28 }
 0x34e   : > { %v6047_v63 = vunpack.i.h.bf16 %v6045_v5  ;;  %v3794_v46 = vsel %vm1944_vm10, %v3762_v16, %v5992_v17  ;;  %v6046_v22 = vunpack.i.l.bf16 %v6045_v5  ;;  %v3695_v16 = vsel %vm1746_vm2, %v6285_v31, %v5906_v51 }
 0x34f   : > { %v3827_v17 = vsel %vm3795_vm13, %v3794_v46, %v5997_v18  ;;  %v6001_v51 = vunpack.i.l.bf16 %v8503_v4  ;;  %v6012_v18 = vunpack.i.h.bf16 %v8531_v34 }
 0x350   : > { %v3761_v48 = vsel %vm1878_vm8, %v3729_v61, %v6047_v63  ;;  %v8596_v26 = vpop.permute.xlu0 %6074  ;;  %v3696_v63 = vsel %vm1746_vm2, %v6286_v13, %v5907_v42  ;;  %v3860_v46 = vsel %vm3828_vm14, %v3827_v17, %v5647_v44  ;;  %v4200_v44 = vld [vmem:[%s6492_s30] sm:$0xff]  ;;  %v5691_v17 = vunpack.i.l.bf16 %v8175_v3 }
 0x351   : > { %v3793_v40 = vsel %vm1944_vm10, %v3761_v48, %v5991_v19  ;;  %v6050_v33 = vpop.permute.xlu1 %6049  ;;  %v3727_v19 = vsel %vm1812_vm6, %v3695_v16, %v5911_v27  ;;  %v3728_v2 = vsel %vm1812_vm6, %v3696_v63, %v5912_v14  ;;  %v3732_v13 = vsel %vm1878_vm8, %v8539_v57, %v5687_v56 }
 0x352   : > { %v3826_v41 = vsel %vm3795_vm13, %v3793_v40, %v5996_v6  ;;  %v6052_v50 = vunpack.i.h.bf16 %v6050_v33  ;;  %v6051_v8 = vunpack.i.l.bf16 %v6050_v33  ;;  %v3759_v5 = vsel %vm1878_vm8, %v3727_v19, %v5982_v55 }
 0x353   : > { %v3859_v15 = vsel %vm3828_vm14, %v3826_v41, %v5646_v60  ;;  %v3760_v42 = vsel %vm1878_vm8, %v3728_v2, %v6046_v22  ;;  %v6007_v60 = vunpack.i.h.bf16 %v8518_v53  ;;  %v6006_v55 = vunpack.i.l.bf16 %v8518_v53  ;;  %v4201_v22 = vld [vmem:[%s6492_s30 + $0x8] sm:$0xff] }
 0x354   : > { %v8610_v62 = vpop.permute.xlu0 %6084  ;;  %v3791_v48 = vsel %vm1944_vm10, %v3759_v5, %v6051_v8  ;;  %v3792_v14 = vsel %vm1944_vm10, %v3760_v42, %v6052_v50  ;;  %v3892_v4 = vsel %vm3861_vm15, %v3859_v15, %v5651_v36  ;;  %v6011_v41 = vunpack.i.l.bf16 %v8531_v34  ;;  %v4202_v5 = vld [vmem:[%s6492_s30 + $0x10] sm:$0xff] }
 0x355   : > { %v6055_v61 = vpop.permute.xlu1 %6054  ;;  %v3893_v53 = vsel %vm3861_vm15, %v3860_v46, %v5652_v23  ;;  %v3925_v34 = vsel %vm3894_vm1, %v3892_v4, %v5656_v52  ;;  %v4232_v23 = vpack.c.bf16 %v4201_v22, %v4200_v44  ;;  %v6042_v3 = vunpack.i.h.bf16 %v8559_v24 }
 0x356   : > { %v6057_v27 = vunpack.i.h.bf16 %v6055_v61  ;;  %v6056_v6 = vunpack.i.l.bf16 %v6055_v61  ;;  %v6041_v19 = vunpack.i.l.bf16 %v8559_v24  ;;  %v3926_v52 = vsel %vm3894_vm1, %v3893_v53, %v5657_v59 }
 0x357   : > { %v3731_v57 = vsel %vm1878_vm8, %v8536_v9, %v5686_v30  ;;  %v3733_v56 = vsel %vm1878_vm8, %v3701_v32, %v5671_v12  ;;  %v3734_v24 = vsel %vm1878_vm8, %v3702_v49, %v5672_v7  ;;  %v3942_v61 = vpack.c.bf16 %v3926_v52, %v3925_v34 }
 0x358   : > { %v3824_v40 = vsel %vm3795_vm13, %v3791_v48, %v6056_v6  ;;  %v3825_v29 = vsel %vm3795_vm13, %v3792_v14, %v6057_v27  ;;  %v8633_v33 = vpop.permute.xlu0 %6094  ;;  %v3764_v43 = vsel %vm1944_vm10, %v3732_v13, %v5692_v38  ;;  %v3763_v59 = vsel %vm1944_vm10, %v3731_v57, %v5691_v17  ;;  %v4205_v48 = vld [vmem:[%s6492_s30 + $0x28] sm:$0xff] }
 0x359   : > { %v3857_v31 = vsel %vm3828_vm14, %v3824_v40, %v6001_v51  ;;  %v3858_v16 = vsel %vm3828_vm14, %v3825_v29, %v6002_v58  ;;  %v8640_v36 = vpop.permute.xlu1 %6059  ;;  %v4203_v58 = vld [vmem:[%s6492_s30 + $0x18] sm:$0xff]  ;;  %v6067_v42 = vunpack.i.h.bf16 %v8579_v28  ;;  %v5756_v9 = vunpack.i.l.bf16 %v8219_v11 }
 0x35a   : > { %v3890_v50 = vsel %vm3861_vm15, %v3857_v31, %v6006_v55  ;;  %v3891_v8 = vsel %vm3861_vm15, %v3858_v16, %v6007_v60  ;;  %v6077_v12 = vunpack.i.h.bf16 %v8596_v26  ;;  %v6076_v0 = vunpack.i.l.bf16 %v8596_v26  ;;  %v4204_v60 = vld [vmem:[%s6492_s30 + $0x20] sm:$0xff] }
 0x35b   : > { %v3923_v10 = vsel %vm3894_vm1, %v3890_v50, %v6011_v41  ;;  %v3924_v63 = vsel %vm3894_vm1, %v3891_v8, %v6012_v18  ;;  %v4233_v7 = vpack.c.bf16 %v4203_v58, %v4202_v5  ;;  %v3765_v30 = vsel %vm1944_vm10, %v3733_v56, %v6041_v19  ;;  %v4206_v56 = vld [vmem:[%s6492_s30 + $0x30] sm:$0xff] }
 0x35c   : > { %v8659_v15 = vpop.permute.xlu0 %6104  ;;  %v3941_v2 = vpack.c.bf16 %v3924_v63, %v3923_v10  ;;  %v3766_v32 = vsel %vm1944_vm10, %v3734_v24, %v6042_v3  ;;  %v6087_v49 = vunpack.i.h.bf16 %v8610_v62  ;;  %v6086_v28 = vunpack.i.l.bf16 %v8610_v62  ;;  %v4207_v24 = vld [vmem:[%s6492_s30 + $0x38] sm:$0xff] }
 0x35d   : > { %v6070_v51 = vpop.permute.xlu1 %6069  ;;  %v6097_v11 = vunpack.i.h.bf16 %v8633_v33  ;;  %v6096_v27 = vunpack.i.l.bf16 %v8633_v33  ;;  %v6062_v26 = vunpack.i.h.bf16 %v8640_v36  ;;  %v6061_v6 = vunpack.i.l.bf16 %v8640_v36 }
 0x35e   : > { %4824 = vmatprep.mubr.msk.bf16.mxu1 %vm3986_vm4, %v3941_v2  ;;  %v3798_v14 = vsel %vm3795_vm13, %v3765_v30, %v6066_v45  ;;  %v3799_v4 = vsel %vm3795_vm13, %v3766_v32, %v6067_v42  ;;  %v6072_v55 = vunpack.i.h.bf16 %v6070_v51  ;;  %v6071_v62 = vunpack.i.l.bf16 %v6070_v51  ;;  %v4208_v42 = vld [vmem:[%s6492_s30 + $0x40] sm:$0xff]  ;;  %v4209_v45 = vld [vmem:[%s6492_s30 + $0x48] sm:$0xff] }
 0x35f   : > { %4825 = vmatmul.mubr.msk.bf16.gmra.mrb[12].mxu1 %vm3986_vm4, %v3942_v61  ;;  %v3831_v18 = vsel %vm3828_vm14, %v3798_v14, %v6076_v0  ;;  %v3832_v40 = vsel %vm3828_vm14, %v3799_v4, %v6077_v12  ;;  %v5987_v33 = vunpack.i.h.bf16 %v8469_v25  ;;  %v4234_v16 = vpack.c.bf16 %v4205_v48, %v4204_v60 }
 0x360   : > { %v6115_v38 = vpop.permute.xlu0 %6114  ;;  %4830 = vmatprep.mubr.msk.bf16.mxu1 %vm280_vm0, %v4232_v23  ;;  %v3864_v22 = vsel %vm3861_vm15, %v3831_v18, %v6086_v28  ;;  %v3865_v41 = vsel %vm3861_vm15, %v3832_v40, %v6087_v49  ;;  %v3796_v17 = vsel %vm3795_vm13, %v3763_v59, %v6061_v6  ;;  %v3797_v50 = vsel %vm3795_vm13, %v3764_v43, %v6062_v26  ;;  %v4210_v18 = vld [vmem:[%s6492_s30 + $0x50] sm:$0xff]  ;;  %v4211_v40 = vld [vmem:[%s6492_s30 + $0x58] sm:$0xff] }
 0x361   : > { %v6080_v46 = vpop.permute.xlu1 %6079  ;;  %v3897_v36 = vsel %vm3894_vm1, %v3864_v22, %v6096_v27  ;;  %v3898_v53 = vsel %vm3894_vm1, %v3865_v41, %v6097_v11  ;;  %v3829_v34 = vsel %vm3828_vm14, %v3796_v17, %v6071_v62  ;;  %v3830_v25 = vsel %vm3828_vm14, %v3797_v50, %v6072_v55 }
 0x362   : > { %v6082_v29 = vunpack.i.h.bf16 %v6080_v46  ;;  %v6081_v44 = vunpack.i.l.bf16 %v6080_v46  ;;  %v6107_v63 = vunpack.i.h.bf16 %v8659_v15  ;;  %v6106_v23 = vunpack.i.l.bf16 %v8659_v15 }
 0x363   : > { %v6117_v2 = vunpack.i.h.bf16 %v6115_v38  ;;  %v6116_v52 = vunpack.i.l.bf16 %v6115_v38  ;;  %v3735_v15 = vsel %vm1878_vm8, %v8569_v39, %v5756_v9  ;;  %v3736_v12 = vsel %vm1878_vm8, %v8574_v21, %v5987_v33  ;;  %v4213_v33 = vld [vmem:[%s6492_s30 + $0x68] sm:$0xff] }
 0x364   : > { %v6125_v31 = vpop.permute.xlu0 %6124  ;;  %v3862_v3 = vsel %vm3861_vm15, %v3829_v34, %v6081_v44  ;;  %v3863_v19 = vsel %vm3861_vm15, %v3830_v25, %v6082_v29  ;;  %v3928_v0 = vpack.c.bf16 %v3898_v53, %v3897_v36  ;;  %v3767_v32 = vsel %vm1944_vm10, %v3735_v15, %v6106_v23  ;;  %v4212_v44 = vld [vmem:[%s6492_s30 + $0x60] sm:$0xff]  ;;  %v6287_v34 = vld [vmem:[#allocation3 + $0x68] sm:$0xff] }
 0x365   : > { %v6090_v8 = vpop.permute.xlu1 %6089  ;;  %v6127_v51 = vunpack.i.h.bf16 %v6125_v31  ;;  %v6126_v61 = vunpack.i.l.bf16 %v6125_v31  ;;  %v3768_v49 = vsel %vm1944_vm10, %v3736_v12, %v6107_v63  ;;  %v4235_v39 = vpack.c.bf16 %v4207_v24, %v4206_v56  ;;  %v6290_v56 = vld [vmem:[#allocation3 + $0x50] sm:$0xff] }
 0x366   : > { %v6092_v13 = vunpack.i.h.bf16 %v6090_v8  ;;  %v6091_v10 = vunpack.i.l.bf16 %v6090_v8  ;;  %v3800_v9 = vsel %vm3795_vm13, %v3767_v32, %v6116_v52  ;;  %v3801_v28 = vsel %vm3795_vm13, %v3768_v49, %v6117_v2  ;;  %v6289_v52 = vld [vmem:[#allocation3 + $0x48] sm:$0xff] }
 0x367   : > { %4831 = vmatmul.mubr.msk.bf16.vlgmr.msra.gmra.mrb[16].mxu1 %vm280_vm0, %v4233_v7  ;;  %v4236_v21 = vpack.c.bf16 %v4209_v45, %v4208_v42  ;;  %v3833_v11 = vsel %vm3828_vm14, %v3800_v9, %v6126_v61  ;;  %v3834_v27 = vsel %vm3828_vm14, %v3801_v28, %v6127_v51  ;;  %v5697_v22 = vunpack.i.h.bf16 %v8181_v20  ;;  %v4217_v42 = vld [vmem:[%s6492_s30 + $0x88] sm:$0xff] }
 0x368   : > { %v3895_v5 = vsel %vm3894_vm1, %v3862_v3, %v6091_v10  ;;  %v3896_v58 = vsel %vm3894_vm1, %v3863_v19, %v6092_v13  ;;  %v6135_v57 = vpop.permute.xlu0 %6134  ;;  %4834 = vmatprep.mubr.msk.bf16.mxu1 %vm280_vm0, %v4234_v16  ;;  %v5696_v41 = vunpack.i.l.bf16 %v8181_v20  ;;  %v4237_v31 = vpack.c.bf16 %v4211_v40, %v4210_v18  ;;  %v6288_v10 = vld [vmem:[#allocation3 + $0x60] sm:$0xff]  ;;  %v4215_v19 = vld [vmem:[%s6492_s30 + $0x78] sm:$0xff] }
 0x369   : > { %v3927_v43 = vpack.c.bf16 %v3896_v58, %v3895_v5  ;;  %v8721_v59 = vpop.permute.xlu1 %6099  ;;  %v6137_v7 = vunpack.i.h.bf16 %v6135_v57  ;;  %v6136_v30 = vunpack.i.l.bf16 %v6135_v57  ;;  %v5706_v16 = vunpack.i.l.bf16 %v8179_v35 }
 0x36a   : > { %v4238_v53 = vpack.c.bf16 %v4213_v33, %v4212_v44  ;;  %v5707_v17 = vunpack.i.h.bf16 %v8179_v35  ;;  %v5711_v50 = vunpack.i.l.bf16 %v8186_v47  ;;  %v3676_v25 = vsel %vm1746_vm2, %v6287_v34, %v5697_v22  ;;  %v4214_v35 = vld [vmem:[%s6492_s30 + $0x70] sm:$0xff]  ;;  %v4220_v34 = vld [vmem:[%s6492_s30 + $0xa0] sm:$0xff] }
 0x36b   : > { %4796 = vmatprep.mubr.msk.bf16.mxu0 %vm3986_vm4, %v3927_v43  ;;  %v3866_v60 = vsel %vm3861_vm15, %v3833_v11, %v6136_v30  ;;  %v3867_v48 = vsel %vm3861_vm15, %v3834_v27, %v6137_v7  ;;  %v5712_v13 = vunpack.i.h.bf16 %v8186_v47  ;;  %v3675_v20 = vsel %vm1746_vm2, %v6288_v10, %v5696_v41 }
 0x36c   : > { %v6145_v38 = vpop.permute.xlu0 %6144  ;;  %4797 = vmatmul.mubr.msk.bf16.vlgmr.msra.gmra.mrb[32].mxu0 %vm3986_vm4, %v3928_v0  ;;  %v5702_v63 = vunpack.i.h.bf16 %v8189_v1  ;;  %v6102_v23 = vunpack.i.h.bf16 %v8721_v59  ;;  %v6101_v3 = vunpack.i.l.bf16 %v8721_v59  ;;  %v5701_v2 = vunpack.i.l.bf16 %v8189_v1  ;;  %v4216_v59 = vld [vmem:[%s6492_s30 + $0x80] sm:$0xff] }
 0x36d   : > { %v6147_v26 = vunpack.i.h.bf16 %v6145_v38  ;;  %v6146_v6 = vunpack.i.l.bf16 %v6145_v38  ;;  %v6110_v46 = vpop.permute.xlu1 %6109  ;;  %v3673_v47 = vsel %vm1746_vm2, %v6289_v52, %v5706_v16  ;;  %v3674_v24 = vsel %vm1746_vm2, %v6290_v56, %v5707_v17  ;;  %v4219_v16 = vld [vmem:[%s6492_s30 + $0x98] sm:$0xff] }
 0x36e   : > { %v6112_v5 = vunpack.i.h.bf16 %v6110_v46  ;;  %v6111_v58 = vunpack.i.l.bf16 %v6110_v46  ;;  %v3705_v15 = vsel %vm1812_vm6, %v3673_v47, %v5711_v50  ;;  %v3706_v1 = vsel %vm1812_vm6, %v3674_v24, %v5712_v13  ;;  %v4221_v13 = vld [vmem:[%s6492_s30 + $0xa8] sm:$0xff] }
 0x36f   : > { %v3899_v14 = vsel %vm3894_vm1, %v3866_v60, %v6146_v6  ;;  %v3900_v4 = vsel %vm3894_vm1, %v3867_v48, %v6147_v26  ;;  %4835 = vmatmul.mubr.msk.bf16.gmra.mrb[20].mxu1 %vm280_vm0, %v4235_v39  ;;  %v4239_v0 = vpack.c.bf16 %v4215_v19, %v4214_v35  ;;  %v3737_v7 = vsel %vm1878_vm8, %v3705_v15, %v6101_v3 }
 0x370   : > { %v3929_v55 = vpack.c.bf16 %v3900_v4, %v3899_v14  ;;  %v8740_v62 = vpop.permute.xlu0 %6154  ;;  %4838 = vmatprep.mubr.msk.bf16.mxu1 %vm280_vm0, %v4236_v21  ;;  %v3738_v30 = vsel %vm1878_vm8, %v3706_v1, %v6102_v23  ;;  %v3707_v39 = vsel %vm1812_vm6, %v3675_v20, %v5701_v2  ;;  %v3769_v9 = vsel %vm1944_vm10, %v3737_v7, %v6111_v58  ;;  %v4222_v1 = vld [vmem:[%s6492_s30 + $0xb0] sm:$0xff]  ;;  %v4225_v7 = vld [vmem:[%s6492_s30 + $0xc8] sm:$0xff] }
 0x371   : > { %v6120_v29 = vpop.permute.xlu1 %6119  ;;  %v3770_v28 = vsel %vm1944_vm10, %v3738_v30, %v6112_v5  ;;  %v4240_v21 = vpack.c.bf16 %v4217_v42, %v4216_v59  ;;  %v6157_v11 = vunpack.i.h.bf16 %v8740_v62  ;;  %v6156_v27 = vunpack.i.l.bf16 %v8740_v62 }
 0x372   : > { %4800 = vmatprep.mubr.msk.bf16.mxu0 %vm3986_vm4, %v3929_v55  ;;  %v6122_v51 = vunpack.i.h.bf16 %v6120_v29  ;;  %v6121_v61 = vunpack.i.l.bf16 %v6120_v29  ;;  %v4242_v47 = vpack.c.bf16 %v4221_v13, %v4220_v34  ;;  %v5717_v30 = vunpack.i.h.bf16 %v8193_v54 }
 0x373   : > { %v3739_v10 = vsel %vm1878_vm8, %v3707_v39, %v6156_v27 }
 0x374   : > { %v8751_v36 = vpop.permute.xlu0 %6164  ;;  %v3802_v26 = vsel %vm3795_vm13, %v3769_v9, %v6121_v61  ;;  %v3803_v6 = vsel %vm3795_vm13, %v3770_v28, %v6122_v51  ;;  %v5726_v9 = vunpack.i.l.bf16 %v8195_v37 }
 0x375   : > { %v6130_v8 = vpop.permute.xlu1 %6129  ;;  %v6167_v55 = vunpack.i.h.bf16 %v8751_v36  ;;  %v6166_v18 = vunpack.i.l.bf16 %v8751_v36  ;;  %v3708_v36 = vsel %vm1812_vm6, %v3676_v25, %v5702_v63 }
 0x376   : > { %v6132_v45 = vunpack.i.h.bf16 %v6130_v8  ;;  %v6131_v12 = vunpack.i.l.bf16 %v6130_v8  ;;  %v3740_v20 = vsel %vm1878_vm8, %v3708_v36, %v6157_v11 }
 0x377   : > { %4839 = vmatmul.mubr.msk.bf16.gmra.mrb[24].mxu1 %vm280_vm0, %v4237_v31  ;;  %v4218_v31 = vld [vmem:[%s6492_s30 + $0x90] sm:$0xff]  ;;  %v3771_v35 = vsel %vm1944_vm10, %v3739_v10, %v6166_v18  ;;  %v3772_v19 = vsel %vm1944_vm10, %v3740_v20, %v6167_v55  ;;  %v4227_v18 = vld [vmem:[%s6492_s30 + $0xd8] sm:$0xff] }
 0x378   : > { %v8766_v57 = vpop.permute.xlu0 %6174  ;;  %4842 = vmatprep.mubr.msk.bf16.mxu1 %vm280_vm0, %v4238_v53  ;;  %v3835_v60 = vsel %vm3828_vm14, %v3802_v26, %v6131_v12  ;;  %v3836_v48 = vsel %vm3828_vm14, %v3803_v6, %v6132_v45  ;;  %v4241_v25 = vpack.c.bf16 %v4219_v16, %v4218_v31  ;;  %v4223_v45 = vld [vmem:[%s6492_s30 + $0xb8] sm:$0xff]  ;;  %v6291_v26 = vld [vmem:[#allocation3 + $0x98] sm:$0xff]  ;;  %v4226_v55 = vld [vmem:[%s6492_s30 + $0xd0] sm:$0xff] }
 0x379   : > { %v6140_v43 = vpop.permute.xlu1 %6139  ;;  %v6177_v29 = vunpack.i.h.bf16 %v8766_v57  ;;  %v6176_v44 = vunpack.i.l.bf16 %v8766_v57  ;;  %v4243_v39 = vpack.c.bf16 %v4223_v45, %v4222_v1  ;;  %v3680_v6 = vsel %vm1746_vm2, %v6291_v26, %v5717_v30 }
 0x37a   : > { %v6142_v32 = vunpack.i.h.bf16 %v6140_v43  ;;  %v6141_v49 = vunpack.i.l.bf16 %v6140_v43  ;;  %v4245_v20 = vpack.c.bf16 %v4227_v18, %v4226_v55 }
 0x37b   : > { %v3804_v63 = vsel %vm3795_vm13, %v3771_v35, %v6176_v44  ;;  %v3805_v2 = vsel %vm3795_vm13, %v3772_v19, %v6177_v29  ;;  %v9281_v29 = vld [vmem:[#allocation11_spill] sm:$0xff] }
 0x37c   : > { %v6185_v38 = vpop.permute.xlu0 %6184  ;;  %v3868_v40 = vsel %vm3861_vm15, %v3835_v60, %v6141_v49  ;;  %v3869_v62 = vsel %vm3861_vm15, %v3836_v48, %v6142_v32  ;;  %v5716_v32 = vunpack.i.l.bf16 %v8193_v54  ;;  %v5727_v49 = vunpack.i.h.bf16 %v8195_v37  ;;  %v6292_v60 = vld [vmem:[#allocation3 + $0x90] sm:$0xff]  ;;  %v6293_v48 = vld [vmem:[#allocation3 + $0x80] sm:$0xff] }
 0x37d   : > { %v6150_v46 = vpop.permute.xlu1 %6149  ;;  %v6187_v53 = vunpack.i.h.bf16 %v6185_v38  ;;  %v6186_v17 = vunpack.i.l.bf16 %v6185_v38  ;;  %v5721_v44 = vunpack.i.l.bf16 %v9281_v29  ;;  %v5722_v31 = vunpack.i.h.bf16 %v9281_v29 }
 0x37e   : > { %v6152_v14 = vunpack.i.h.bf16 %v6150_v46  ;;  %v6151_v4 = vunpack.i.l.bf16 %v6150_v46  ;;  %v3679_v54 = vsel %vm1746_vm2, %v6292_v60, %v5716_v32 }
 0x37f   : > { %4843 = vmatmul.mubr.msk.bf16.gmra.mrb[28].mxu1 %vm280_vm0, %v4239_v0  ;;  %v3837_v5 = vsel %vm3828_vm14, %v3804_v63, %v6186_v17  ;;  %v3838_v58 = vsel %vm3828_vm14, %v3805_v2, %v6187_v53  ;;  %v4224_v0 = vld [vmem:[%s6492_s30 + $0xc0] sm:$0xff] }
 0x380   : > { %v3901_v33 = vsel %vm3894_vm1, %v3868_v40, %v6151_v4  ;;  %v3902_v22 = vsel %vm3894_vm1, %v3869_v62, %v6152_v14  ;;  %v6195_v41 = vpop.permute.xlu0 %6194  ;;  %4846 = vmatprep.mubr.msk.bf16.mxu1 %vm280_vm0, %v4240_v21  ;;  %v4244_v38 = vpack.c.bf16 %v4225_v7, %v4224_v0  ;;  %v9280_v21 = vld [vmem:[#allocation14_spill] sm:$0xff]  ;;  %v3678_v14 = vsel %vm1746_vm2, %v6293_v48, %v5727_v49  ;;  %v6294_v40 = vld [vmem:[#allocation3 + $0x78] sm:$0xff] }
 0x381   : > { %v3930_v50 = vpack.c.bf16 %v3902_v22, %v3901_v33  ;;  %v8798_v8 = vpop.permute.xlu1 %6159  ;;  %v6197_v23 = vunpack.i.h.bf16 %v6195_v41  ;;  %v6196_v3 = vunpack.i.l.bf16 %v6195_v41  ;;  %v5731_v11 = vunpack.i.l.bf16 %v9280_v21  ;;  %v4230_v49 = vld [vmem:[%s6492_s30 + $0xf0] sm:$0xff] }
 0x382   : > { %v5732_v46 = vunpack.i.h.bf16 %v9280_v21  ;;  %v6162_v37 = vunpack.i.h.bf16 %v8798_v8  ;;  %v6161_v4 = vunpack.i.l.bf16 %v8798_v8  ;;  %v3677_v62 = vsel %vm1746_vm2, %v6294_v40, %v5726_v9  ;;  %v4229_v8 = vld [vmem:[%s6492_s30 + $0xe8] sm:$0xff] }
 0x383   : > { %4801 = vmatmul.mubr.msk.bf16.gmra.mrb[36].mxu0 %vm3986_vm4, %v3930_v50  ;;  %v3870_v15 = vsel %vm3861_vm15, %v3837_v5, %v6196_v3  ;;  %v3871_v51 = vsel %vm3861_vm15, %v3838_v58, %v6197_v23  ;;  %v3709_v16 = vsel %vm1812_vm6, %v3677_v62, %v5731_v11  ;;  %v4228_v50 = vld [vmem:[%s6492_s30 + $0xe0] sm:$0xff]  ;;  %v3712_v9 = vsel %vm1812_vm6, %v3680_v6, %v5722_v31 }
 0x384   : > { %v6205_v52 = vpop.permute.xlu0 %6204  ;;  %v3710_v34 = vsel %vm1812_vm6, %v3678_v14, %v5732_v46  ;;  %v3741_v23 = vsel %vm1878_vm8, %v3709_v16, %v6161_v4 }
 0x385   : > { %v6207_v57 = vunpack.i.h.bf16 %v6205_v52  ;;  %v6206_v56 = vunpack.i.l.bf16 %v6205_v52  ;;  %v6170_v24 = vpop.permute.xlu1 %6169  ;;  %v3742_v3 = vsel %vm1878_vm8, %v3710_v34, %v6162_v37 }
 0x386   : > { %v6172_v33 = vunpack.i.h.bf16 %v6170_v24  ;;  %v6171_v22 = vunpack.i.l.bf16 %v6170_v24 }
 0x387   : > { %v3903_v61 = vsel %vm3894_vm1, %v3870_v15, %v6206_v56  ;;  %v3904_v43 = vsel %vm3894_vm1, %v3871_v51, %v6207_v57  ;;  %4847 = vmatmul.mubr.msk.bf16.gmra.mrb[0].mxu1 %vm280_vm0, %v4241_v25  ;;  %v3711_v25 = vsel %vm1812_vm6, %v3679_v54, %v5721_v44 }
 0x388   : > { %v3931_v59 = vpack.c.bf16 %v3904_v43, %v3903_v61  ;;  %v8816_v42 = vpop.permute.xlu0 %6214  ;;  %4850 = vmatprep.mubr.msk.bf16.mxu1 %vm280_vm0, %v4242_v47  ;;  %v3773_v63 = vsel %vm1944_vm10, %v3741_v23, %v6171_v22  ;;  %v3774_v2 = vsel %vm1944_vm10, %v3742_v3, %v6172_v33  ;;  %v4246_v47 = vpack.c.bf16 %v4229_v8, %v4228_v50  ;;  %v9283_v8 = vld [vmem:[#allocation16_spill] sm:$0xff] }
 0x389   : > { %v6180_v12 = vpop.permute.xlu1 %6179  ;;  %v6217_v5 = vunpack.i.h.bf16 %v8816_v42  ;;  %v6216_v58 = vunpack.i.l.bf16 %v8816_v42  ;;  %v5752_v34 = vunpack.i.h.bf16 %v9283_v8 }
 0x38a   : > { %4804 = vmatprep.mubr.msk.bf16.mxu0 %vm3986_vm4, %v3931_v59  ;;  %v6182_v36 = vunpack.i.h.bf16 %v6180_v12  ;;  %v6181_v53 = vunpack.i.l.bf16 %v6180_v12 }
 0x38b   : > { %v3744_v26 = vsel %vm1878_vm8, %v3712_v9, %v6217_v5 }
 0x38c   : > { %v8828_v28 = vpop.permute.xlu0 %6224  ;;  %v3806_v57 = vsel %vm3795_vm13, %v3773_v63, %v6181_v53  ;;  %v3807_v56 = vsel %vm3795_vm13, %v3774_v2, %v6182_v36  ;;  %v9282_v36 = vld [vmem:[#allocation13_spill] sm:$0xff] }
 0x38d   : > { %v6190_v27 = vpop.permute.xlu1 %6189  ;;  %v6227_v59 = vunpack.i.h.bf16 %v8828_v28  ;;  %v6226_v1 = vunpack.i.l.bf16 %v8828_v28  ;;  %v5747_v53 = vunpack.i.h.bf16 %v9282_v36 }
 0x38e   : > { %v6192_v13 = vunpack.i.h.bf16 %v6190_v27  ;;  %v6191_v10 = vunpack.i.l.bf16 %v6190_v27  ;;  %v3743_v27 = vsel %vm1878_vm8, %v3711_v25, %v6216_v58  ;;  %v6296_v25 = vld [vmem:[#allocation3 + $0xa8] sm:$0xff] }
 0x38f   : > { %4851 = vmatmul.mubr.msk.bf16.gmra.mrb[4].mxu1 %vm280_vm0, %v4243_v39  ;;  %v4231_v39 = vld [vmem:[%s6492_s30 + $0xf8] sm:$0xff]  ;;  %v3775_v54 = vsel %vm1944_vm10, %v3743_v27, %v6226_v1  ;;  %v3776_v48 = vsel %vm1944_vm10, %v3744_v26, %v6227_v59  ;;  %v8909_v27 = vld [vmem:[%s9070_s4] ss:$0 sm:$0xff] }
 0x390   : > { %v6235_v41 = vpop.permute.xlu0 %6234  ;;  %4854 = vmatprep.mubr.msk.bf16.mxu1 %vm280_vm0, %v4244_v38  ;;  %v3839_v15 = vsel %vm3828_vm14, %v3806_v57, %v6191_v10  ;;  %v3840_v51 = vsel %vm3828_vm14, %v3807_v56, %v6192_v13  ;;  %v4247_v14 = vpack.c.bf16 %v4231_v39, %v4230_v49  ;;  %v5751_v13 = vunpack.i.l.bf16 %v9283_v8 }
 0x391   : > { %v6200_v17 = vpop.permute.xlu1 %6199  ;;  %v6237_v12 = vunpack.i.h.bf16 %v6235_v41  ;;  %v6236_v0 = vunpack.i.l.bf16 %v6235_v41 }
 0x392   : > { %v6202_v35 = vunpack.i.h.bf16 %v6200_v17  ;;  %v6201_v19 = vunpack.i.l.bf16 %v6200_v17  ;;  %v5746_v17 = vunpack.i.l.bf16 %v9282_v36 }
 0x393   : > { %v3808_v37 = vsel %vm3795_vm13, %v3775_v54, %v6236_v0  ;;  %v3809_v6 = vsel %vm3795_vm13, %v3776_v48, %v6237_v12 }
 0x394   : > { %v6245_v52 = vpop.permute.xlu0 %6244  ;;  %v3872_v45 = vsel %vm3861_vm15, %v3839_v15, %v6201_v19  ;;  %v3873_v42 = vsel %vm3861_vm15, %v3840_v51, %v6202_v35  ;;  %v6295_v35 = vld [vmem:[#allocation3 + $0xb0] sm:$0xff]  ;;  %v3681_v63 = vsel %vm1746_vm2, %v6296_v25, %v5746_v17 }
 0x395   : > { %v6210_v24 = vpop.permute.xlu1 %6209  ;;  %v6247_v28 = vunpack.i.h.bf16 %v6245_v52  ;;  %v6246_v38 = vunpack.i.l.bf16 %v6245_v52  ;;  %v3682_v19 = vsel %vm1746_vm2, %v6295_v35, %v5747_v53  ;;  %v3713_v5 = vsel %vm1812_vm6, %v3681_v63, %v5751_v13 }
 0x396   : > { %v6212_v61 = vunpack.i.h.bf16 %v6210_v24  ;;  %v6211_v43 = vunpack.i.l.bf16 %v6210_v24  ;;  %v3714_v58 = vsel %vm1812_vm6, %v3682_v19, %v5752_v34 }
 0x397   : > { %4855 = vmatmul.mubr.msk.bf16.gmra.mrb[8].mxu1 %vm280_vm0, %v4245_v20  ;;  %v3841_v55 = vsel %vm3828_vm14, %v3808_v37, %v6246_v38  ;;  %v3842_v18 = vsel %vm3828_vm14, %v3809_v6, %v6247_v28  ;;  %v8916_v37 = vld [vmem:[%s9072_s6] ss:$0 sm:$0xff] }
 0x398   : > { %v3905_v7 = vsel %vm3894_vm1, %v3872_v45, %v6211_v43  ;;  %v3906_v30 = vsel %vm3894_vm1, %v3873_v42, %v6212_v61  ;;  %v6255_v32 = vpop.permute.xlu0 %6254  ;;  %4858 = vmatprep.mubr.msk.bf16.mxu1 %vm280_vm0, %v4246_v47 }
 0x399   : > { %v3932_v21 = vpack.c.bf16 %v3906_v30, %v3905_v7  ;;  %v6220_v11 = vpop.permute.xlu1 %6219  ;;  %v6257_v46 = vunpack.i.h.bf16 %v6255_v32  ;;  %v6256_v60 = vunpack.i.l.bf16 %v6255_v32 }
 0x39a   : > { %v6222_v10 = vunpack.i.h.bf16 %v6220_v11  ;;  %v6221_v20 = vunpack.i.l.bf16 %v6220_v11 }
 0x39b   : > { %4805 = vmatmul.mubr.msk.bf16.gmra.mrb[40].mxu0 %vm3986_vm4, %v3932_v21  ;;  %v3874_v44 = vsel %vm3861_vm15, %v3841_v55, %v6256_v60  ;;  %v3875_v33 = vsel %vm3861_vm15, %v3842_v18, %v6257_v46 }
 0x39c   : > { %v6265_v4 = vpop.permute.xlu0 %6264  ;;  %v3745_v24 = vsel %vm1878_vm8, %v3713_v5, %v6221_v20  ;;  %v3746_v15 = vsel %vm1878_vm8, %v3714_v58, %v6222_v10 }
 0x39d   : > { %v6267_v40 = vunpack.i.h.bf16 %v6265_v4  ;;  %v6266_v62 = vunpack.i.l.bf16 %v6265_v4  ;;  %v6230_v29 = vpop.permute.xlu1 %6229 }
 0x39e   : > { %v6232_v23 = vunpack.i.h.bf16 %v6230_v29  ;;  %v6231_v3 = vunpack.i.l.bf16 %v6230_v29 }
 0x39f   : > { %v3907_v22 = vsel %vm3894_vm1, %v3874_v44, %v6266_v62  ;;  %v3908_v41 = vsel %vm3894_vm1, %v3875_v33, %v6267_v40  ;;  %4859 = vmatmul.mubr.msk.bf16.gmra.mrb[12].mxu1 %vm280_vm0, %v4247_v14 }
 0x3a0   : > { %v3933_v31 = vpack.c.bf16 %v3908_v41, %v3907_v22  ;;  %v3777_v43 = vsel %vm1944_vm10, %v3745_v24, %v6231_v3  ;;  %v3778_v59 = vsel %vm1944_vm10, %v3746_v15, %v6232_v23 }
 0x3a1   : > { %v6240_v16 = vpop.permute.xlu1 %6239 }
 0x3a2   : > { %4808 = vmatprep.mubr.msk.bf16.mxu0 %vm3986_vm4, %v3933_v31  ;;  %v6242_v2 = vunpack.i.h.bf16 %v6240_v16  ;;  %v6241_v52 = vunpack.i.l.bf16 %v6240_v16 }
 0x3a4   : > { %v3810_v1 = vsel %vm3795_vm13, %v3777_v43, %v6241_v52  ;;  %v3811_v45 = vsel %vm3795_vm13, %v3778_v59, %v6242_v2 }
 0x3a5   : > { %v6250_v50 = vpop.permute.xlu1 %6249 }
 0x3a6   : > { %v6252_v57 = vunpack.i.h.bf16 %v6250_v50  ;;  %v6251_v56 = vunpack.i.l.bf16 %v6250_v50 }
 0x3a8   : > { %v3843_v12 = vsel %vm3828_vm14, %v3810_v1, %v6251_v56  ;;  %v3844_v0 = vsel %vm3828_vm14, %v3811_v45, %v6252_v57 }
 0x3a9   : > { %v6260_v47 = vpop.permute.xlu1 %6259 }
 0x3aa   : > { %v6262_v51 = vunpack.i.h.bf16 %v6260_v47  ;;  %v6261_v61 = vunpack.i.l.bf16 %v6260_v47  ;;  %v8958_v47 = vadd.f32 %v8916_v37, %v8909_v27 }
 0x3ac   : > { %v3876_v32 = vsel %vm3861_vm15, %v3843_v12, %v6261_v61  ;;  %v3877_v49 = vsel %vm3861_vm15, %v3844_v0, %v6262_v51 }
 0x3ad   : > { %v6270_v42 = vpop.permute.xlu1 %6269 }
 0x3ae   : > { %v6272_v7 = vunpack.i.h.bf16 %v6270_v42  ;;  %v6271_v30 = vunpack.i.l.bf16 %v6270_v42 }
 0x3b0   : > { %v3909_v39 = vsel %vm3894_vm1, %v3876_v32, %v6271_v30  ;;  %v3910_v9 = vsel %vm3894_vm1, %v3877_v49, %v6272_v7 }
 0x3b1   : > { %v3934_v28 = vpack.c.bf16 %v3910_v9, %v3909_v39 }
 0x3b3   : > { %4809 = vmatmul.mubr.msk.bf16.gmra.mrb[44].mxu0 %vm3986_vm4, %v3934_v28 }
 0x43a   : > { %v4832_v38 = vpop.f32.mrb[16].mxu1 }
 0x43b   : > { %v4341_v21 = vpop.f32.mrb[17].mxu1 }
 0x43c   : > { %v4833_v11 = vpop.f32.mrb[18].mxu1 }
 0x43d   : > { %v4344_v26 = vpop.f32.mrb[19].mxu1 }
 0x43f   : > { %v4798_v46 = vpop.f32.mrb[32].mxu0 }
 0x440   : > { %v4082_v60 = vadd.f32 %v4798_v46, %v8909_v27  ;;  %v4073_v54 = vpop.f32.mrb[33].mxu0 }
 0x441   : > { %v4074_v48 = vadd.f32 %v8909_v27, %v4073_v54  ;;  %v4799_v14 = vpop.f32.mrb[34].mxu0 }
 0x442   : > { %v4085_v6 = vadd.f32 %v4799_v14, %v8909_v27  ;;  %v4873_v4 = vadd.f32 %v4832_v38, %v4082_v60  ;;  %v4076_v55 = vpop.f32.mrb[35].mxu0  ;;  %v4836_v18 = vpop.f32.mrb[20].mxu1 }
 0x443   : > { %v4077_v40 = vadd.f32 %v8909_v27, %v4076_v55  ;;  %v4876_v62 = vadd.f32 %v4341_v21, %v4074_v48  ;;  %v4357_v29 = vpop.f32.mrb[21].mxu1 }
 0x444   : > { %v4874_v44 = vadd.f32 %v4873_v4, %v8916_v37  ;;  %v4879_v33 = vadd.f32 %v8916_v37, %v4085_v6  ;;  %v4837_v22 = vpop.f32.mrb[22].mxu1 }
 0x445   : > { %v4877_v41 = vadd.f32 %v4876_v62, %v8916_v37  ;;  %v4882_v31 = vadd.f32 %v8916_v37, %v4077_v40  ;;  %v4360_v16 = vpop.f32.mrb[23].mxu1 }
 0x446   : > { %v4502_v36 = vmax.f32 %v4874_v44, 0.0  ;;  %v4880_v53 = vadd.f32 %v4879_v33, %v4833_v11 }
 0x447   : > { %v4500_v17 = vmax.f32 %v4877_v41, 0.0  ;;  %v4883_v50 = vadd.f32 %v4882_v31, %v4344_v26 }
 0x448   : > { %4534 = vst.msk [vmem:[%s8927_s29 + $0x10] sm:$0xff] %vm1746_vm2, %v4502_v36  ;;  %v4503_v8 = vmax.f32 %v4880_v53, 0.0 }
 0x449   : > { %4532 = vst.msk [vmem:[%s8927_s29] sm:$0xff] %vm1746_vm2, %v4500_v17  ;;  %v4501_v34 = vmax.f32 %v4883_v50, 0.0 }
 0x44a   : > { %4535 = vst.msk [vmem:[%s8927_s29 + $0x18] sm:$0xff] %vm1746_vm2, %v4503_v8  ;;  %v8937_v13 = vpop.f32.mrb[24].mxu1 }
 0x44b   : > { %4533 = vst.msk [vmem:[%s8927_s29 + $0x8] sm:$0xff] %vm1746_vm2, %v4501_v34  ;;  %v8941_v10 = vpop.f32.mrb[25].mxu1 }
 0x44c   : > { %v8943_v20 = vpop.f32.mrb[26].mxu1 }
 0x44d   : > { %v8945_v23 = vpop.f32.mrb[27].mxu1 }
 0x452   : > { %v8947_v3 = vpop.f32.mrb[28].mxu1 }
 0x453   : > { %v8949_v35 = vpop.f32.mrb[29].mxu1 }
 0x454   : > { %v8951_v19 = vpop.f32.mrb[30].mxu1 }
 0x455   : > { %v8953_v25 = vpop.f32.mrb[31].mxu1 }
 0x456   : > { %v4802_v63 = vpop.f32.mrb[36].mxu0 }
 0x457   : > { %v4098_v2 = vadd.f32 %v4802_v63, %v8909_v27  ;;  %v4089_v52 = vpop.f32.mrb[37].mxu0 }
 0x458   : > { %v4090_v5 = vadd.f32 %v8909_v27, %v4089_v52  ;;  %v4803_v58 = vpop.f32.mrb[38].mxu0 }
 0x459   : > { %v4885_v57 = vadd.f32 %v8916_v37, %v4098_v2  ;;  %v4101_v56 = vadd.f32 %v4803_v58, %v8909_v27  ;;  %v4092_v24 = vpop.f32.mrb[39].mxu0 }
 0x45a   : > { %v4888_v15 = vadd.f32 %v8916_v37, %v4090_v5  ;;  %v4093_v51 = vadd.f32 %v8909_v27, %v4092_v24  ;;  %v4848_v61 = vpop.f32.mrb[0].mxu1 }
 0x45b   : > { %v4886_v43 = vadd.f32 %v4885_v57, %v4836_v18  ;;  %v4891_v59 = vadd.f32 %v8916_v37, %v4101_v56  ;;  %v4921_v1 = vadd.f32 %v8958_v47, %v4848_v61  ;;  %v4405_v45 = vpop.f32.mrb[1].mxu1 }
 0x45c   : > { %v4889_v42 = vadd.f32 %v4888_v15, %v4357_v29  ;;  %v4894_v12 = vadd.f32 %v8916_v37, %v4093_v51  ;;  %v4923_v0 = vadd.f32 %v8958_v47, %v4405_v45  ;;  %v4849_v7 = vpop.f32.mrb[2].mxu1 }
 0x45d   : > { %v4506_v30 = vmax.f32 %v4886_v43, 0.0  ;;  %v4892_v32 = vadd.f32 %v4891_v59, %v4837_v22  ;;  %v4518_v49 = vmax.f32 %v4921_v1, 0.0  ;;  %v4925_v39 = vadd.f32 %v8958_v47, %v4849_v7  ;;  %v4408_v9 = vpop.f32.mrb[3].mxu1 }
 0x45e   : > { %v4504_v28 = vmax.f32 %v4889_v42, 0.0  ;;  %v4895_v38 = vadd.f32 %v4894_v12, %v4360_v16  ;;  %v4516_v21 = vmax.f32 %v4923_v0, 0.0  ;;  %v4927_v11 = vadd.f32 %v8958_v47, %v4408_v9 }
 0x45f   : > { %4538 = vst.msk [vmem:[%s8927_s29 + $0x30] sm:$0xff] %vm1746_vm2, %v4506_v30  ;;  %v4507_v26 = vmax.f32 %v4892_v32, 0.0  ;;  %4550 = vst.msk [vmem:[%s8927_s29 + $0x90] sm:$0xff] %vm1746_vm2, %v4518_v49  ;;  %v4519_v46 = vmax.f32 %v4925_v39, 0.0 }
 0x460   : > { %4536 = vst.msk [vmem:[%s8927_s29 + $0x20] sm:$0xff] %vm1746_vm2, %v4504_v28  ;;  %v4505_v60 = vmax.f32 %v4895_v38, 0.0  ;;  %4548 = vst.msk [vmem:[%s8927_s29 + $0x80] sm:$0xff] %vm1746_vm2, %v4516_v21  ;;  %v4517_v54 = vmax.f32 %v4927_v11, 0.0 }
 0x461   : > { %4539 = vst.msk [vmem:[%s8927_s29 + $0x38] sm:$0xff] %vm1746_vm2, %v4507_v26  ;;  %4551 = vst.msk [vmem:[%s8927_s29 + $0x98] sm:$0xff] %vm1746_vm2, %v4519_v46 }
 0x462   : > { %4537 = vst.msk [vmem:[%s8927_s29 + $0x28] sm:$0xff] %vm1746_vm2, %v4505_v60  ;;  %4549 = vst.msk [vmem:[%s8927_s29 + $0x88] sm:$0xff] %vm1746_vm2, %v4517_v54  ;;  %v4852_v48 = vpop.f32.mrb[4].mxu1 }
 0x463   : > { %v4929_v14 = vadd.f32 %v8958_v47, %v4852_v48  ;;  %v4421_v6 = vpop.f32.mrb[5].mxu1 }
 0x464   : > { %v4931_v4 = vadd.f32 %v8958_v47, %v4421_v6  ;;  %v4853_v55 = vpop.f32.mrb[6].mxu1 }
 0x465   : > { %v4522_v18 = vmax.f32 %v4929_v14, 0.0  ;;  %v4933_v40 = vadd.f32 %v8958_v47, %v4853_v55  ;;  %v4424_v62 = vpop.f32.mrb[7].mxu1 }
 0x466   : > { %v4520_v29 = vmax.f32 %v4931_v4, 0.0  ;;  %v4935_v44 = vadd.f32 %v8958_v47, %v4424_v62 }
 0x467   : > { %4554 = vst.msk [vmem:[%s8927_s29 + $0xb0] sm:$0xff] %vm1746_vm2, %v4522_v18  ;;  %v4523_v33 = vmax.f32 %v4933_v40, 0.0 }
 0x468   : > { %4552 = vst.msk [vmem:[%s8927_s29 + $0xa0] sm:$0xff] %vm1746_vm2, %v4520_v29  ;;  %v4521_v22 = vmax.f32 %v4935_v44, 0.0 }
 0x469   : > { %4555 = vst.msk [vmem:[%s8927_s29 + $0xb8] sm:$0xff] %vm1746_vm2, %v4523_v33 }
 0x46a   : > { %4553 = vst.msk [vmem:[%s8927_s29 + $0xa8] sm:$0xff] %vm1746_vm2, %v4521_v22  ;;  %v4856_v41 = vpop.f32.mrb[8].mxu1 }
 0x46b   : > { %v4937_v31 = vadd.f32 %v8958_v47, %v4856_v41  ;;  %v4437_v16 = vpop.f32.mrb[9].mxu1 }
 0x46c   : > { %v4939_v36 = vadd.f32 %v8958_v47, %v4437_v16  ;;  %v4857_v53 = vpop.f32.mrb[10].mxu1 }
 0x46d   : > { %v4526_v17 = vmax.f32 %v4937_v31, 0.0  ;;  %v4941_v50 = vadd.f32 %v8958_v47, %v4857_v53  ;;  %v4440_v8 = vpop.f32.mrb[11].mxu1 }
 0x46e   : > { %v4524_v34 = vmax.f32 %v4939_v36, 0.0  ;;  %v4943_v63 = vadd.f32 %v8958_v47, %v4440_v8  ;;  %v4806_v2 = vpop.f32.mrb[40].mxu0 }
 0x46f   : > { %4558 = vst.msk [vmem:[%s8927_s29 + $0xd0] sm:$0xff] %vm1746_vm2, %v4526_v17  ;;  %v4527_v52 = vmax.f32 %v4941_v50, 0.0  ;;  %v4114_v5 = vadd.f32 %v4806_v2, %v8909_v27  ;;  %v4105_v58 = vpop.f32.mrb[41].mxu0 }
 0x470   : > { %4556 = vst.msk [vmem:[%s8927_s29 + $0xc0] sm:$0xff] %vm1746_vm2, %v4524_v34  ;;  %v4525_v57 = vmax.f32 %v4943_v63, 0.0  ;;  %v4106_v56 = vadd.f32 %v8909_v27, %v4105_v58  ;;  %v4807_v24 = vpop.f32.mrb[42].mxu0 }
 0x471   : > { %4559 = vst.msk [vmem:[%s8927_s29 + $0xd8] sm:$0xff] %vm1746_vm2, %v4527_v52  ;;  %v4897_v15 = vadd.f32 %v8916_v37, %v4114_v5  ;;  %v4117_v51 = vadd.f32 %v4807_v24, %v8909_v27  ;;  %v4108_v61 = vpop.f32.mrb[43].mxu0 }
 0x472   : > { %4557 = vst.msk [vmem:[%s8927_s29 + $0xc8] sm:$0xff] %vm1746_vm2, %v4525_v57  ;;  %v4900_v43 = vadd.f32 %v8916_v37, %v4106_v56  ;;  %v4109_v59 = vadd.f32 %v8909_v27, %v4108_v61  ;;  %v4860_v1 = vpop.f32.mrb[12].mxu1 }
 0x473   : > { %v4898_v45 = vadd.f32 %v4897_v15, %v8937_v13  ;;  %v4903_v42 = vadd.f32 %v8916_v37, %v4117_v51  ;;  %v4945_v12 = vadd.f32 %v8958_v47, %v4860_v1  ;;  %v4453_v0 = vpop.f32.mrb[13].mxu1 }
 0x474   : > { %v4901_v7 = vadd.f32 %v4900_v43, %v8941_v10  ;;  %v4906_v30 = vadd.f32 %v8916_v37, %v4109_v59  ;;  %v4947_v32 = vadd.f32 %v8958_v47, %v4453_v0  ;;  %v4861_v49 = vpop.f32.mrb[14].mxu1 }
 0x475   : > { %v4510_v39 = vmax.f32 %v4898_v45, 0.0  ;;  %v4904_v9 = vadd.f32 %v4903_v42, %v8943_v20  ;;  %v4530_v13 = vmax.f32 %v4945_v12, 0.0  ;;  %v4949_v28 = vadd.f32 %v8958_v47, %v4861_v49  ;;  %v4456_v38 = vpop.f32.mrb[15].mxu1 }
 0x476   : > { %v4508_v21 = vmax.f32 %v4901_v7, 0.0  ;;  %v4907_v10 = vadd.f32 %v4906_v30, %v8945_v23  ;;  %v4528_v11 = vmax.f32 %v4947_v32, 0.0  ;;  %v4951_v26 = vadd.f32 %v8958_v47, %v4456_v38 }
 0x477   : > { %4542 = vst.msk [vmem:[%s8927_s29 + $0x50] sm:$0xff] %vm1746_vm2, %v4510_v39  ;;  %v4511_v46 = vmax.f32 %v4904_v9, 0.0  ;;  %4562 = vst.msk [vmem:[%s8927_s29 + $0xf0] sm:$0xff] %vm1746_vm2, %v4530_v13  ;;  %v4531_v20 = vmax.f32 %v4949_v28, 0.0 }
 0x478   : > { %4540 = vst.msk [vmem:[%s8927_s29 + $0x40] sm:$0xff] %vm1746_vm2, %v4508_v21  ;;  %v4509_v60 = vmax.f32 %v4907_v10, 0.0  ;;  %4560 = vst.msk [vmem:[%s8927_s29 + $0xe0] sm:$0xff] %vm1746_vm2, %v4528_v11  ;;  %v4529_v54 = vmax.f32 %v4951_v26, 0.0 }
 0x479   : > { %4543 = vst.msk [vmem:[%s8927_s29 + $0x58] sm:$0xff] %vm1746_vm2, %v4511_v46  ;;  %4563 = vst.msk [vmem:[%s8927_s29 + $0xf8] sm:$0xff] %vm1746_vm2, %v4531_v20 }
 0x47a   : > { %4541 = vst.msk [vmem:[%s8927_s29 + $0x48] sm:$0xff] %vm1746_vm2, %v4509_v60  ;;  %4561 = vst.msk [vmem:[%s8927_s29 + $0xe8] sm:$0xff] %vm1746_vm2, %v4529_v54 }
 0x486   : > { %v4810_v23 = vpop.f32.mrb[44].mxu0 }
 0x487   : > { %v4130_v47 = vadd.f32 %v4810_v23, %v8909_v27  ;;  %v4121_v48 = vpop.f32.mrb[45].mxu0 }
 0x488   : > { %v4122_v14 = vadd.f32 %v8909_v27, %v4121_v48  ;;  %v4811_v6 = vpop.f32.mrb[46].mxu0 }
 0x489   : > { %v4909_v4 = vadd.f32 %v8916_v37, %v4130_v47  ;;  %v4133_v55 = vadd.f32 %v4811_v6, %v8909_v27  ;;  %v4124_v18 = vpop.f32.mrb[47].mxu0 }
 0x48a   : > { %v4912_v40 = vadd.f32 %v8916_v37, %v4122_v14  ;;  %v4125_v62 = vadd.f32 %v8909_v27, %v4124_v18 }
 0x48b   : > { %v4910_v29 = vadd.f32 %v4909_v4, %v8947_v3  ;;  %v4915_v44 = vadd.f32 %v8916_v37, %v4133_v55 }
 0x48c   : > { %v4913_v33 = vadd.f32 %v4912_v40, %v8949_v35  ;;  %v4918_v22 = vadd.f32 %v8916_v37, %v4125_v62 }
 0x48d   : > { %v4514_v41 = vmax.f32 %v4910_v29, 0.0  ;;  %v4916_v31 = vadd.f32 %v4915_v44, %v8951_v19 }
 0x48e   : > { %v4512_v16 = vmax.f32 %v4913_v33, 0.0  ;;  %v4919_v36 = vadd.f32 %v4918_v22, %v8953_v25 }
 0x48f   : > { %4546 = vst.msk [vmem:[%s8927_s29 + $0x70] sm:$0xff] %vm1746_vm2, %v4514_v41  ;;  %v4515_v53 = vmax.f32 %v4916_v31, 0.0 }
 0x490   : > { %4544 = vst.msk [vmem:[%s8927_s29 + $0x60] sm:$0xff] %vm1746_vm2, %v4512_v16  ;;  %v4513_v27 = vmax.f32 %v4919_v36, 0.0 }
 0x491   : > { %4547 = vst.msk [vmem:[%s8927_s29 + $0x78] sm:$0xff] %vm1746_vm2, %v4515_v53 }
 0x492   : > { %4545 = vst.msk [vmem:[%s8927_s29 + $0x68] sm:$0xff] %vm1746_vm2, %v4513_v27 }
 0x493 PF: > { %s17_s24 = sadd.s32 1, %s6303_s24  }
 0x494   : > { %p14_p4 = scmp.ge.s32.totalorder %s17_s24, 4  }
 0x496   :  { %16 = sbr.rel (!%p14_p4) target bundleno = 1 (0x1), region = 82 }

</bundles_post_ra>
